<compile_context>
chip_gen: v6e
topology: v6e:2x2x1
jax: 0.10.0
libtpu: 0.0.40
codegen_flags: <defaults>
</compile_context>

<pallas_src>
import functools

import jax
import jax.numpy as jnp
from jax import lax
from jax.experimental import pallas as pl
from jax.experimental.pallas import tpu as pltpu

F32 = jnp.float32


def _vmem():
    return pl.BlockSpec(memory_space=pltpu.MemorySpace.VMEM)


# ----------------------------------------------------------------------------
# Single fused kernel: encoder + pooler + net MLP + GRU decoder + masked NLL
# ----------------------------------------------------------------------------
def _policy_kernel(n_heads,
                   # encoder inputs
                   ids_ref, type_ref, bias_ref, pos_ref,
                   wemb_ref, temb_ref, eln_g_ref, eln_b_ref,
                   wqkv_ref, bqkv_ref, wo_ref, bo_ref, ln1_g_ref, ln1_b_ref,
                   w1_ref, b1_ref, w2_ref, b2_ref, ln2_g_ref, ln2_b_ref,
                   wp_ref, bp_ref,
                   # decoder inputs
                   nw1_ref, nb1_ref, nw2_ref, nb2_ref,
                   demb_ref, wih_ref, whh_ref, bih_ref, bhh_ref,
                   pw_ref, pb_ref,
                   dec_in_ref, tgt_ref,
                   # output + scratch
                   loss_ref, out_buf):
    B, S = bias_ref.shape
    H = wqkv_ref.shape[0]
    dH = H // n_heads
    N = B * S
    Hd = whh_ref.shape[0]
    V = demb_ref.shape[0]
    T = out_buf.shape[0]

    def layer_norm(v, g, b):
        mu = jnp.mean(v, axis=-1, keepdims=True)
        var = jnp.mean(jnp.square(v - mu), axis=-1, keepdims=True)
        return (v - mu) * lax.rsqrt(var + 1e-12) * g + b

    # --- embeddings: gathers as one-hot matmuls over VMEM-resident tables (toy vocab) ---
    Vw = wemb_ref.shape[0]
    Vt = temb_ref.shape[0]
    ids = ids_ref[...]                                               # [N, 1] int32
    typ = type_ref[...]                                              # [N, 1] int32
    oh_w = (lax.broadcasted_iota(jnp.int32, (N, Vw), 1) == ids).astype(F32)
    oh_t = (lax.broadcasted_iota(jnp.int32, (N, Vt), 1) == typ).astype(F32)
    x = jnp.dot(oh_w, wemb_ref[...], preferred_element_type=F32)
    x = x + jnp.dot(oh_t, temb_ref[...], preferred_element_type=F32)
    x = x + pos_ref[...]                                             # pre-tiled (N, H)
    x = layer_norm(x, eln_g_ref[...], eln_b_ref[...])                # embedding LayerNorm

    # --- self-attention: one fused QKV matmul; heads unrolled (static, tiny),
    #     single output projection on the concatenated head contexts ---
    qkv = jnp.dot(x, wqkv_ref[...], preferred_element_type=F32) + bqkv_ref[...]   # [N, 3H]
    bias = bias_ref[...][:, None, :]                                 # [B, 1, S] additive
    scale = 1.0 / (dH ** 0.5)
    ctx_heads = []
    for h in range(n_heads):
        qh = qkv[:, h * dH:(h + 1) * dH].reshape(B, S, dH)
        kh = qkv[:, H + h * dH:H + (h + 1) * dH].reshape(B, S, dH)
        vh = qkv[:, 2 * H + h * dH:2 * H + (h + 1) * dH].reshape(B, S, dH)
        s = jnp.einsum("bqd,bkd->bqk", qh, kh, preferred_element_type=F32) * scale
        s = s + bias
        m = jnp.max(s, axis=-1, keepdims=True)
        p = jnp.exp(s - m)
        p = p / jnp.sum(p, axis=-1, keepdims=True)                   # exact softmax
        ctx_heads.append(jnp.einsum("bqk,bkd->bqd", p, vh, preferred_element_type=F32))
    ctx = jnp.concatenate(ctx_heads, axis=-1).reshape(N, H)
    attn_out = jnp.dot(ctx, wo_ref[...], preferred_element_type=F32) + bo_ref[...]
    x = layer_norm(x + attn_out, ln1_g_ref[...], ln1_b_ref[...])

    # --- FFN ---
    ff = jax.nn.gelu(jnp.dot(x, w1_ref[...], preferred_element_type=F32) + b1_ref[...],
                     approximate=True)
    ff = jnp.dot(ff, w2_ref[...], preferred_element_type=F32) + b2_ref[...]
    x = layer_norm(x + ff, ln2_g_ref[...], ln2_b_ref[...])

    # --- pooler: static slice of the [CLS] row of every sequence, tanh(linear) ---
    cls = x.reshape(B, S, H)[:, 0:1, :].reshape(B, H)
    pooled = jnp.tanh(
        jnp.dot(cls, wp_ref[...], preferred_element_type=F32) + bp_ref[...])      # [B, H]

    # --- net MLP: Linear -> ReLU -> Linear (decoder init state) ---
    hid = jnp.maximum(
        jnp.dot(pooled, nw1_ref[...], preferred_element_type=F32) + nb1_ref[...], 0.0)
    h = jnp.dot(hid, nw2_ref[...], preferred_element_type=F32) + nb2_ref[...]     # [B, Hd]

    # --- teacher-forced input embeddings (one-hot matmul; row 0 is the padding row) ---
    TB = T * B
    oh = (lax.broadcasted_iota(jnp.int32, (TB, V), 1) == dec_in_ref[...]).astype(F32)
    emb = jnp.dot(oh, demb_ref[...], preferred_element_type=F32)                   # [T*B, E]

    # GRU input projection hoisted out of the recurrence (no cross-step dependence)
    gi_all = (jnp.dot(emb, wih_ref[...], preferred_element_type=F32)
              + bih_ref[...]).reshape(T, B, 3 * Hd)

    whh = whh_ref[...]
    bhh = bhh_ref[...]
    for t in range(T):                        # T small & static; unrolled recurrence
        gi = gi_all[t]                        # [B, 3Hd], sublane-aligned (B padded to 8)
        gh = jnp.dot(h, whh, preferred_element_type=F32) + bhh
        r = jax.nn.sigmoid(gi[:, 0:Hd] + gh[:, 0:Hd])
        z = jax.nn.sigmoid(gi[:, Hd:2 * Hd] + gh[:, Hd:2 * Hd])
        n = jnp.tanh(gi[:, 2 * Hd:3 * Hd] + r * gh[:, 2 * Hd:3 * Hd])
        h = (1.0 - z) * n + z * h
        out_buf[t] = h                        # aligned full-tile store into VMEM scratch

    # --- projection -> log_softmax -> masked NLL (ignore_index=0, 'word' averaging) ---
    outs = out_buf[...].reshape(TB, Hd)
    logits = jnp.dot(outs, pw_ref[...], preferred_element_type=F32) + pb_ref[...]
    m = jnp.max(logits, axis=-1, keepdims=True)
    lse = m + jnp.log(jnp.sum(jnp.exp(logits - m), axis=-1, keepdims=True))
    logp = logits - lse                                               # [T*B, V]
    lab = tgt_ref[...]                                                # [T*B, 1] int32
    vid = lax.broadcasted_iota(jnp.int32, logp.shape, 1)
    tgt_logp = jnp.sum(jnp.where(vid == lab, logp, 0.0), axis=-1, keepdims=True)
    mask = (lab != 0).astype(F32)
    nll_sum = -jnp.sum(tgt_logp * mask, axis=(0, 1), keepdims=True)   # (1, 1)
    cnt = jnp.sum(mask, axis=(0, 1), keepdims=True)                   # (1, 1)
    loss_ref[...] = nll_sum / jnp.maximum(cnt, 1.0)


# ----------------------------------------------------------------------------
# Forward (TEACH_FORCE path of MultiDiscretePolicy.forward) — ONE pallas_call
# ----------------------------------------------------------------------------
def multi_discrete_policy_forward(cfg, params, input_ids, attention_mask,
                                  token_type_ids, labels):
    B0, S = input_ids.shape
    T = labels.shape[1] - 1                               # a_maxlen - 1
    H = cfg["b_dim"]
    Hd = cfg["dec_h"]
    B = ((B0 + 7) // 8) * 8                               # pad batch to a sublane multiple

    def pad_b(a):
        return jnp.pad(a, ((0, B - B0),) + ((0, 0),) * (a.ndim - 1))

    input_ids = pad_b(input_ids.astype(jnp.int32))
    token_type_ids = pad_b(token_type_ids.astype(jnp.int32))
    attn_mask = pad_b(attention_mask.astype(F32))
    labels = pad_b(labels.astype(jnp.int32))              # padded rows -> label 0 -> masked

    p = params["bert"]
    pos_tiled = jnp.tile(p["pos_emb"][:S, :], (B, 1))     # (B*S, H): no in-kernel reshape
    bias = (1.0 - attn_mask) * (-10000.0)                 # (B, S) additive attention bias

    # teacher-forced inputs / shifted targets, time-major so each GRU step and the loss
    # rows are contiguous, sublane-aligned tiles.
    dec_in_tm = jnp.transpose(labels[:, :-1]).reshape(T * B, 1)
    tgt_tm = jnp.transpose(labels[:, 1:]).reshape(T * B, 1)

    args = [
        input_ids.reshape(B * S, 1),
        token_type_ids.reshape(B * S, 1),
        bias,
        pos_tiled,
        p["word_emb"], p["type_emb"],
        p["emb_ln_g"].reshape(1, H), p["emb_ln_b"].reshape(1, H),
        p["wqkv"], p["bqkv"].reshape(1, 3 * H),
        p["wo"], p["bo"].reshape(1, H),
        p["ln1_g"].reshape(1, H), p["ln1_b"].reshape(1, H),
        p["w1"], p["b1"].reshape(1, -1),
        p["w2"], p["b2"].reshape(1, H),
        p["ln2_g"].reshape(1, H), p["ln2_b"].reshape(1, H),
        p["w_pool"], p["b_pool"].reshape(1, H),
        params["net_w1"], params["net_b1"].reshape(1, -1),
        params["net_w2"], params["net_b2"].reshape(1, -1),
        params["dec_emb"],
        params["gru_wih"], params["gru_whh"],
        params["gru_bih"].reshape(1, -1), params["gru_bhh"].reshape(1, -1),
        params["proj_w"], params["proj_b"].reshape(1, -1),
        dec_in_tm, tgt_tm,
    ]

    loss = pl.pallas_call(
        functools.partial(_policy_kernel, cfg["n_heads"]),
        out_shape=jax.ShapeDtypeStruct((1, 1), F32),
        in_specs=[_vmem() for _ in args],
        out_specs=_vmem(),
        scratch_shapes=[pltpu.VMEM((T, B, Hd), F32)],
    )(*args)
    return loss[0, 0]


# ----------------------------------------------------------------------------
# Deterministic parameter init (shapes follow the module's __init__)
# ----------------------------------------------------------------------------
def init_params(key, cfg):
    H = cfg["b_dim"]
    I = cfg["intermediate"]
    E = cfg["embed_size"]
    Hd = cfg["dec_h"]
    V = cfg["label_num"]
    ks = iter(jax.random.split(key, 40))

    def nrm(shape, scale=0.05):
        return (scale * jax.random.normal(next(ks), shape)).astype(F32)

    bert = dict(
        word_emb=nrm((cfg["vocab_size"], H)),
        pos_emb=nrm((cfg["max_pos"], H)),
        type_emb=nrm((cfg["type_vocab"], H)),
        emb_ln_g=jnp.ones((H,), F32), emb_ln_b=jnp.zeros((H,), F32),
        # query/key/value weights stored pre-concatenated -> single fused QKV matmul
        wqkv=nrm((H, 3 * H)), bqkv=jnp.zeros((3 * H,), F32),
        wo=nrm((H, H)), bo=jnp.zeros((H,), F32),
        ln1_g=jnp.ones((H,), F32), ln1_b=jnp.zeros((H,), F32),
        w1=nrm((H, I)), b1=jnp.zeros((I,), F32),
        w2=nrm((I, H)), b2=jnp.zeros((H,), F32),
        ln2_g=jnp.ones((H,), F32), ln2_b=jnp.zeros((H,), F32),
        w_pool=nrm((H, H)), b_pool=jnp.zeros((H,), F32),
    )
    dec_emb = nrm((V, E)).at[0].set(0.0)  # nn.Embedding(label_num, embed_size, padding_idx=0)
    return dict(
        bert=bert,
        net_w1=nrm((H, cfg["h_dim"])), net_b1=jnp.zeros((cfg["h_dim"],), F32),
        net_w2=nrm((cfg["h_dim"], Hd)), net_b2=jnp.zeros((Hd,), F32),
        dec_emb=dec_emb,
        gru_wih=nrm((E, 3 * Hd)), gru_whh=nrm((Hd, 3 * Hd)),
        gru_bih=jnp.zeros((3 * Hd,), F32), gru_bhh=jnp.zeros((3 * Hd,), F32),
        proj_w=nrm((Hd, V)), proj_b=jnp.zeros((V,), F32),
    )


# ----------------------------------------------------------------------------
if __name__ == "__main__":
    cfg = dict(
        vocab_size=32,   # synthetic BERT vocab
        max_pos=16,
        type_vocab=2,
        b_dim=32,        # cfg.b_dim (BERT hidden / pooled size)
        n_heads=2,
        intermediate=64,
        h_dim=32,        # cfg.h_dim
        dec_h=16,        # cfg.h_dim // 2
        label_num=16,    # cfg.label_num
        embed_size=16,   # cfg.embed_size (cat_mlp=False -> decoder input size)
        a_maxlen=8,      # cfg.a_maxlen
    )

    key = jax.random.PRNGKey(0)
    pkey, k1, k2 = jax.random.split(key, 3)
    params = init_params(pkey, cfg)

    B, S = 2, 8
    input_ids = jax.random.randint(k1, (B, S), 0, cfg["vocab_size"], dtype=jnp.int32)
    attention_mask = jnp.ones((B, S), dtype=jnp.int32).at[1, 6:].set(0)
    token_type_ids = jnp.zeros((B, S), dtype=jnp.int32)
    labels = jax.random.randint(k2, (B, cfg["a_maxlen"]), 3, cfg["label_num"], dtype=jnp.int32)
    labels = labels.at[:, 0].set(1)   # go_id
    labels = labels.at[:, -1].set(2)  # eos_id

    fwd = jax.jit(functools.partial(multi_discrete_policy_forward, cfg))
    loss = fwd(params, input_ids, attention_mask, token_type_ids, labels)
    jax.block_until_ready(loss)
    assert loss.shape == () and bool(jnp.isfinite(loss))
    print("KERNEL_OK")
</pallas_src>

<mosaic_0001>
module attributes {stable_mosaic.version = 11 : i64} {
  func.func @_policy_kernel(%arg0: memref<64x1xi32, #tpu.memory_space<vmem>>, %arg1: memref<64x1xi32, #tpu.memory_space<vmem>>, %arg2: memref<8x8xf32, #tpu.memory_space<vmem>>, %arg3: memref<64x32xf32, #tpu.memory_space<vmem>>, %arg4: memref<32x32xf32, #tpu.memory_space<vmem>>, %arg5: memref<2x32xf32, #tpu.memory_space<vmem>>, %arg6: memref<1x32xf32, #tpu.memory_space<vmem>>, %arg7: memref<1x32xf32, #tpu.memory_space<vmem>>, %arg8: memref<32x96xf32, #tpu.memory_space<vmem>>, %arg9: memref<1x96xf32, #tpu.memory_space<vmem>>, %arg10: memref<32x32xf32, #tpu.memory_space<vmem>>, %arg11: memref<1x32xf32, #tpu.memory_space<vmem>>, %arg12: memref<1x32xf32, #tpu.memory_space<vmem>>, %arg13: memref<1x32xf32, #tpu.memory_space<vmem>>, %arg14: memref<32x64xf32, #tpu.memory_space<vmem>>, %arg15: memref<1x64xf32, #tpu.memory_space<vmem>>, %arg16: memref<64x32xf32, #tpu.memory_space<vmem>>, %arg17: memref<1x32xf32, #tpu.memory_space<vmem>>, %arg18: memref<1x32xf32, #tpu.memory_space<vmem>>, %arg19: memref<1x32xf32, #tpu.memory_space<vmem>>, %arg20: memref<32x32xf32, #tpu.memory_space<vmem>>, %arg21: memref<1x32xf32, #tpu.memory_space<vmem>>, %arg22: memref<32x32xf32, #tpu.memory_space<vmem>>, %arg23: memref<1x32xf32, #tpu.memory_space<vmem>>, %arg24: memref<32x16xf32, #tpu.memory_space<vmem>>, %arg25: memref<1x16xf32, #tpu.memory_space<vmem>>, %arg26: memref<16x16xf32, #tpu.memory_space<vmem>>, %arg27: memref<16x48xf32, #tpu.memory_space<vmem>>, %arg28: memref<16x48xf32, #tpu.memory_space<vmem>>, %arg29: memref<1x48xf32, #tpu.memory_space<vmem>>, %arg30: memref<1x48xf32, #tpu.memory_space<vmem>>, %arg31: memref<16x16xf32, #tpu.memory_space<vmem>>, %arg32: memref<1x16xf32, #tpu.memory_space<vmem>>, %arg33: memref<56x1xi32, #tpu.memory_space<vmem>>, %arg34: memref<56x1xi32, #tpu.memory_space<vmem>>, %arg35: memref<1x1xf32, #tpu.memory_space<vmem>>, %arg36: memref<7x8x16xf32, #tpu.memory_space<vmem>>) attributes {dimension_semantics = [], scalar_prefetch = 0 : i64, scratch_operands = 1 : i64, tpu.core_type = #tpu.core_type<tc>} {
    %c0 = arith.constant 0 : index
    %c0_0 = arith.constant 0 : index
    %0 = vector.load %arg0[%c0, %c0_0] : memref<64x1xi32, #tpu.memory_space<vmem>>, vector<64x1xi32>
    %c0_1 = arith.constant 0 : index
    %c0_2 = arith.constant 0 : index
    %1 = vector.load %arg1[%c0_1, %c0_2] : memref<64x1xi32, #tpu.memory_space<vmem>>, vector<64x1xi32>
    %2 = tpu.iota {dimensions = array<i32: 1>} : vector<64x32xi32>
    %3 = vector.broadcast %0 : vector<64x1xi32> to vector<64x32xi32>
    %4 = arith.cmpi eq, %2, %3 : vector<64x32xi32>
    %5 = arith.extui %4 : vector<64x32xi1> to vector<64x32xi32>
    %6 = arith.sitofp %5 : vector<64x32xi32> to vector<64x32xf32>
    %7 = tpu.iota {dimensions = array<i32: 1>} : vector<64x2xi32>
    %8 = vector.broadcast %1 : vector<64x1xi32> to vector<64x2xi32>
    %9 = arith.cmpi eq, %7, %8 : vector<64x2xi32>
    %10 = arith.extui %9 : vector<64x2xi1> to vector<64x2xi32>
    %11 = arith.sitofp %10 : vector<64x2xi32> to vector<64x2xf32>
    %c0_3 = arith.constant 0 : index
    %c0_4 = arith.constant 0 : index
    %12 = vector.load %arg4[%c0_3, %c0_4] : memref<32x32xf32, #tpu.memory_space<vmem>>, vector<32x32xf32>
    %cst = arith.constant dense<0.000000e+00> : vector<64x32xf32>
    %13 = tpu.matmul %6, %12, %cst {dimension_numbers = #tpu.dot_dimension_numbers<[1], [0], [0], [1], [0, 0, 1, 1], [], []>} : vector<64x32xf32>, vector<32x32xf32>, vector<64x32xf32> -> vector<64x32xf32>
    %c0_5 = arith.constant 0 : index
    %c0_6 = arith.constant 0 : index
    %14 = vector.load %arg5[%c0_5, %c0_6] : memref<2x32xf32, #tpu.memory_space<vmem>>, vector<2x32xf32>
    %cst_7 = arith.constant dense<0.000000e+00> : vector<64x32xf32>
    %15 = tpu.matmul %11, %14, %cst_7 {dimension_numbers = #tpu.dot_dimension_numbers<[1], [0], [0], [1], [0, 0, 1, 1], [], []>} : vector<64x2xf32>, vector<2x32xf32>, vector<64x32xf32> -> vector<64x32xf32>
    %16 = arith.addf %13, %15 : vector<64x32xf32>
    %c0_8 = arith.constant 0 : index
    %c0_9 = arith.constant 0 : index
    %17 = vector.load %arg3[%c0_8, %c0_9] : memref<64x32xf32, #tpu.memory_space<vmem>>, vector<64x32xf32>
    %18 = arith.addf %16, %17 : vector<64x32xf32>
    %c0_10 = arith.constant 0 : index
    %c0_11 = arith.constant 0 : index
    %19 = vector.load %arg6[%c0_10, %c0_11] : memref<1x32xf32, #tpu.memory_space<vmem>>, vector<1x32xf32>
    %c0_12 = arith.constant 0 : index
    %c0_13 = arith.constant 0 : index
    %20 = vector.load %arg7[%c0_12, %c0_13] : memref<1x32xf32, #tpu.memory_space<vmem>>, vector<1x32xf32>
    %cst_14 = arith.constant dense<0.000000e+00> : vector<64xf32>
    %21 = vector.multi_reduction <add>, %18, %cst_14 [1] : vector<64x32xf32> to vector<64xf32>
    %22 = vector.shape_cast %21 : vector<64xf32> to vector<64x1xf32>
    %cst_15 = arith.constant 3.200000e+01 : f32
    %23 = vector.broadcast %cst_15 : f32 to vector<64x1xf32>
    %24 = arith.divf %22, %23 : vector<64x1xf32>
    %25 = vector.broadcast %24 : vector<64x1xf32> to vector<64x32xf32>
    %26 = arith.subf %18, %25 : vector<64x32xf32>
    %27 = arith.mulf %26, %26 : vector<64x32xf32>
    %cst_16 = arith.constant dense<0.000000e+00> : vector<64xf32>
    %28 = vector.multi_reduction <add>, %27, %cst_16 [1] : vector<64x32xf32> to vector<64xf32>
    %29 = vector.shape_cast %28 : vector<64xf32> to vector<64x1xf32>
    %cst_17 = arith.constant 3.200000e+01 : f32
    %30 = vector.broadcast %cst_17 : f32 to vector<64x1xf32>
    %31 = arith.divf %29, %30 : vector<64x1xf32>
    %32 = vector.broadcast %24 : vector<64x1xf32> to vector<64x32xf32>
    %33 = arith.subf %18, %32 : vector<64x32xf32>
    %cst_18 = arith.constant 9.99999996E-13 : f32
    %34 = vector.broadcast %cst_18 : f32 to vector<64x1xf32>
    %35 = arith.addf %31, %34 : vector<64x1xf32>
    %36 = math.rsqrt %35 : vector<64x1xf32>
    %37 = vector.broadcast %36 : vector<64x1xf32> to vector<64x32xf32>
    %38 = arith.mulf %33, %37 : vector<64x32xf32>
    %39 = vector.broadcast %19 : vector<1x32xf32> to vector<64x32xf32>
    %40 = arith.mulf %38, %39 : vector<64x32xf32>
    %41 = vector.broadcast %20 : vector<1x32xf32> to vector<64x32xf32>
    %42 = arith.addf %40, %41 : vector<64x32xf32>
    %c0_19 = arith.constant 0 : index
    %c0_20 = arith.constant 0 : index
    %43 = vector.load %arg8[%c0_19, %c0_20] : memref<32x96xf32, #tpu.memory_space<vmem>>, vector<32x96xf32>
    %cst_21 = arith.constant dense<0.000000e+00> : vector<64x96xf32>
    %44 = tpu.matmul %42, %43, %cst_21 {dimension_numbers = #tpu.dot_dimension_numbers<[1], [0], [0], [1], [0, 0, 1, 1], [], []>} : vector<64x32xf32>, vector<32x96xf32>, vector<64x96xf32> -> vector<64x96xf32>
    %c0_22 = arith.constant 0 : index
    %c0_23 = arith.constant 0 : index
    %45 = vector.load %arg9[%c0_22, %c0_23] : memref<1x96xf32, #tpu.memory_space<vmem>>, vector<1x96xf32>
    %46 = vector.broadcast %45 : vector<1x96xf32> to vector<64x96xf32>
    %47 = arith.addf %44, %46 : vector<64x96xf32>
    %c0_24 = arith.constant 0 : index
    %c0_25 = arith.constant 0 : index
    %48 = vector.load %arg2[%c0_24, %c0_25] : memref<8x8xf32, #tpu.memory_space<vmem>>, vector<8x8xf32>
    %49 = vector.shape_cast %48 : vector<8x8xf32> to vector<8x1x8xf32>
    %50 = vector.extract_strided_slice %47 {offsets = [0, 0], sizes = [64, 16], strides = [1, 1]} : vector<64x96xf32> to vector<64x16xf32>
    %51 = vector.shape_cast %50 : vector<64x16xf32> to vector<8x8x16xf32>
    %52 = vector.extract_strided_slice %47 {offsets = [0, 32], sizes = [64, 16], strides = [1, 1]} : vector<64x96xf32> to vector<64x16xf32>
    %53 = vector.shape_cast %52 : vector<64x16xf32> to vector<8x8x16xf32>
    %54 = vector.extract_strided_slice %47 {offsets = [0, 64], sizes = [64, 16], strides = [1, 1]} : vector<64x96xf32> to vector<64x16xf32>
    %55 = vector.shape_cast %54 : vector<64x16xf32> to vector<8x8x16xf32>
    "tpu.trace_start"() <{level = 10 : i32, message = "bqd,bkd->bqk"}> : () -> ()
    %cst_26 = arith.constant dense<0.000000e+00> : vector<8x8x8xf32>
    %56 = tpu.matmul %51, %53, %cst_26 {dimension_numbers = #tpu.dot_dimension_numbers<[2], [2], [1], [1], [0, 0, 0, 1, 1, 1], [0], [0]>} : vector<8x8x16xf32>, vector<8x8x16xf32>, vector<8x8x8xf32> -> vector<8x8x8xf32>
    "tpu.trace_stop"() : () -> ()
    %cst_27 = arith.constant 2.500000e-01 : f32
    %57 = vector.broadcast %cst_27 : f32 to vector<8x8x8xf32>
    %58 = arith.mulf %56, %57 : vector<8x8x8xf32>
    %59 = vector.broadcast %49 : vector<8x1x8xf32> to vector<8x8x8xf32>
    %60 = arith.addf %58, %59 : vector<8x8x8xf32>
    %cst_28 = arith.constant dense<0xFF800000> : vector<8x8xf32>
    %61 = vector.multi_reduction <maximumf>, %60, %cst_28 [2] : vector<8x8x8xf32> to vector<8x8xf32>
    %62 = vector.shape_cast %61 : vector<8x8xf32> to vector<8x8x1xf32>
    %63 = vector.broadcast %62 : vector<8x8x1xf32> to vector<8x8x8xf32>
    %64 = arith.subf %60, %63 : vector<8x8x8xf32>
    %65 = math.exp %64 : vector<8x8x8xf32>
    %cst_29 = arith.constant dense<0.000000e+00> : vector<8x8xf32>
    %66 = vector.multi_reduction <add>, %65, %cst_29 [2] : vector<8x8x8xf32> to vector<8x8xf32>
    %67 = vector.shape_cast %66 : vector<8x8xf32> to vector<8x8x1xf32>
    %68 = vector.broadcast %67 : vector<8x8x1xf32> to vector<8x8x8xf32>
    %69 = arith.divf %65, %68 : vector<8x8x8xf32>
    "tpu.trace_start"() <{level = 10 : i32, message = "bqk,bkd->bqd"}> : () -> ()
    %cst_30 = arith.constant dense<0.000000e+00> : vector<8x8x16xf32>
    %70 = tpu.matmul %69, %55, %cst_30 {dimension_numbers = #tpu.dot_dimension_numbers<[2], [1], [1], [2], [0, 0, 0, 1, 1, 2], [0], [0]>} : vector<8x8x8xf32>, vector<8x8x16xf32>, vector<8x8x16xf32> -> vector<8x8x16xf32>
    "tpu.trace_stop"() : () -> ()
    %71 = vector.extract_strided_slice %47 {offsets = [0, 16], sizes = [64, 16], strides = [1, 1]} : vector<64x96xf32> to vector<64x16xf32>
    %72 = vector.shape_cast %71 : vector<64x16xf32> to vector<8x8x16xf32>
    %73 = vector.extract_strided_slice %47 {offsets = [0, 48], sizes = [64, 16], strides = [1, 1]} : vector<64x96xf32> to vector<64x16xf32>
    %74 = vector.shape_cast %73 : vector<64x16xf32> to vector<8x8x16xf32>
    %75 = vector.extract_strided_slice %47 {offsets = [0, 80], sizes = [64, 16], strides = [1, 1]} : vector<64x96xf32> to vector<64x16xf32>
    %76 = vector.shape_cast %75 : vector<64x16xf32> to vector<8x8x16xf32>
    "tpu.trace_start"() <{level = 10 : i32, message = "bqd,bkd->bqk"}> : () -> ()
    %cst_31 = arith.constant dense<0.000000e+00> : vector<8x8x8xf32>
    %77 = tpu.matmul %72, %74, %cst_31 {dimension_numbers = #tpu.dot_dimension_numbers<[2], [2], [1], [1], [0, 0, 0, 1, 1, 1], [0], [0]>} : vector<8x8x16xf32>, vector<8x8x16xf32>, vector<8x8x8xf32> -> vector<8x8x8xf32>
    "tpu.trace_stop"() : () -> ()
    %cst_32 = arith.constant 2.500000e-01 : f32
    %78 = vector.broadcast %cst_32 : f32 to vector<8x8x8xf32>
    %79 = arith.mulf %77, %78 : vector<8x8x8xf32>
    %80 = vector.broadcast %49 : vector<8x1x8xf32> to vector<8x8x8xf32>
    %81 = arith.addf %79, %80 : vector<8x8x8xf32>
    %cst_33 = arith.constant dense<0xFF800000> : vector<8x8xf32>
    %82 = vector.multi_reduction <maximumf>, %81, %cst_33 [2] : vector<8x8x8xf32> to vector<8x8xf32>
    %83 = vector.shape_cast %82 : vector<8x8xf32> to vector<8x8x1xf32>
    %84 = vector.broadcast %83 : vector<8x8x1xf32> to vector<8x8x8xf32>
    %85 = arith.subf %81, %84 : vector<8x8x8xf32>
    %86 = math.exp %85 : vector<8x8x8xf32>
    %cst_34 = arith.constant dense<0.000000e+00> : vector<8x8xf32>
    %87 = vector.multi_reduction <add>, %86, %cst_34 [2] : vector<8x8x8xf32> to vector<8x8xf32>
    %88 = vector.shape_cast %87 : vector<8x8xf32> to vector<8x8x1xf32>
    %89 = vector.broadcast %88 : vector<8x8x1xf32> to vector<8x8x8xf32>
    %90 = arith.divf %86, %89 : vector<8x8x8xf32>
    "tpu.trace_start"() <{level = 10 : i32, message = "bqk,bkd->bqd"}> : () -> ()
    %cst_35 = arith.constant dense<0.000000e+00> : vector<8x8x16xf32>
    %91 = tpu.matmul %90, %76, %cst_35 {dimension_numbers = #tpu.dot_dimension_numbers<[2], [1], [1], [2], [0, 0, 0, 1, 1, 2], [0], [0]>} : vector<8x8x8xf32>, vector<8x8x16xf32>, vector<8x8x16xf32> -> vector<8x8x16xf32>
    "tpu.trace_stop"() : () -> ()
    %92 = tpu.concatenate %70, %91 in 2 : vector<8x8x16xf32>, vector<8x8x16xf32> -> vector<8x8x32xf32>
    %93 = vector.shape_cast %92 : vector<8x8x32xf32> to vector<64x32xf32>
    %c0_36 = arith.constant 0 : index
    %c0_37 = arith.constant 0 : index
    %94 = vector.load %arg10[%c0_36, %c0_37] : memref<32x32xf32, #tpu.memory_space<vmem>>, vector<32x32xf32>
    %cst_38 = arith.constant dense<0.000000e+00> : vector<64x32xf32>
    %95 = tpu.matmul %93, %94, %cst_38 {dimension_numbers = #tpu.dot_dimension_numbers<[1], [0], [0], [1], [0, 0, 1, 1], [], []>} : vector<64x32xf32>, vector<32x32xf32>, vector<64x32xf32> -> vector<64x32xf32>
    %c0_39 = arith.constant 0 : index
    %c0_40 = arith.constant 0 : index
    %96 = vector.load %arg11[%c0_39, %c0_40] : memref<1x32xf32, #tpu.memory_space<vmem>>, vector<1x32xf32>
    %97 = vector.broadcast %96 : vector<1x32xf32> to vector<64x32xf32>
    %98 = arith.addf %95, %97 : vector<64x32xf32>
    %99 = arith.addf %42, %98 : vector<64x32xf32>
    %c0_41 = arith.constant 0 : index
    %c0_42 = arith.constant 0 : index
    %100 = vector.load %arg12[%c0_41, %c0_42] : memref<1x32xf32, #tpu.memory_space<vmem>>, vector<1x32xf32>
    %c0_43 = arith.constant 0 : index
    %c0_44 = arith.constant 0 : index
    %101 = vector.load %arg13[%c0_43, %c0_44] : memref<1x32xf32, #tpu.memory_space<vmem>>, vector<1x32xf32>
    %cst_45 = arith.constant dense<0.000000e+00> : vector<64xf32>
    %102 = vector.multi_reduction <add>, %99, %cst_45 [1] : vector<64x32xf32> to vector<64xf32>
    %103 = vector.shape_cast %102 : vector<64xf32> to vector<64x1xf32>
    %cst_46 = arith.constant 3.200000e+01 : f32
    %104 = vector.broadcast %cst_46 : f32 to vector<64x1xf32>
    %105 = arith.divf %103, %104 : vector<64x1xf32>
    %106 = vector.broadcast %105 : vector<64x1xf32> to vector<64x32xf32>
    %107 = arith.subf %99, %106 : vector<64x32xf32>
    %108 = arith.mulf %107, %107 : vector<64x32xf32>
    %cst_47 = arith.constant dense<0.000000e+00> : vector<64xf32>
    %109 = vector.multi_reduction <add>, %108, %cst_47 [1] : vector<64x32xf32> to vector<64xf32>
    %110 = vector.shape_cast %109 : vector<64xf32> to vector<64x1xf32>
    %cst_48 = arith.constant 3.200000e+01 : f32
    %111 = vector.broadcast %cst_48 : f32 to vector<64x1xf32>
    %112 = arith.divf %110, %111 : vector<64x1xf32>
    %113 = vector.broadcast %105 : vector<64x1xf32> to vector<64x32xf32>
    %114 = arith.subf %99, %113 : vector<64x32xf32>
    %cst_49 = arith.constant 9.99999996E-13 : f32
    %115 = vector.broadcast %cst_49 : f32 to vector<64x1xf32>
    %116 = arith.addf %112, %115 : vector<64x1xf32>
    %117 = math.rsqrt %116 : vector<64x1xf32>
    %118 = vector.broadcast %117 : vector<64x1xf32> to vector<64x32xf32>
    %119 = arith.mulf %114, %118 : vector<64x32xf32>
    %120 = vector.broadcast %100 : vector<1x32xf32> to vector<64x32xf32>
    %121 = arith.mulf %119, %120 : vector<64x32xf32>
    %122 = vector.broadcast %101 : vector<1x32xf32> to vector<64x32xf32>
    %123 = arith.addf %121, %122 : vector<64x32xf32>
    %c0_50 = arith.constant 0 : index
    %c0_51 = arith.constant 0 : index
    %124 = vector.load %arg14[%c0_50, %c0_51] : memref<32x64xf32, #tpu.memory_space<vmem>>, vector<32x64xf32>
    %cst_52 = arith.constant dense<0.000000e+00> : vector<64x64xf32>
    %125 = tpu.matmul %123, %124, %cst_52 {dimension_numbers = #tpu.dot_dimension_numbers<[1], [0], [0], [1], [0, 0, 1, 1], [], []>} : vector<64x32xf32>, vector<32x64xf32>, vector<64x64xf32> -> vector<64x64xf32>
    %c0_53 = arith.constant 0 : index
    %c0_54 = arith.constant 0 : index
    %126 = vector.load %arg15[%c0_53, %c0_54] : memref<1x64xf32, #tpu.memory_space<vmem>>, vector<1x64xf32>
    %127 = vector.broadcast %126 : vector<1x64xf32> to vector<64x64xf32>
    %128 = arith.addf %125, %127 : vector<64x64xf32>
    %129 = arith.mulf %128, %128 : vector<64x64xf32>
    %130 = arith.mulf %128, %129 : vector<64x64xf32>
    %cst_55 = arith.constant 4.471500e-02 : f32
    %131 = vector.broadcast %cst_55 : f32 to vector<64x64xf32>
    %132 = arith.mulf %131, %130 : vector<64x64xf32>
    %133 = arith.addf %128, %132 : vector<64x64xf32>
    %cst_56 = arith.constant 0.797884583 : f32
    %134 = vector.broadcast %cst_56 : f32 to vector<64x64xf32>
    %135 = arith.mulf %134, %133 : vector<64x64xf32>
    %136 = math.tanh %135 : vector<64x64xf32>
    %cst_57 = arith.constant 1.000000e+00 : f32
    %137 = vector.broadcast %cst_57 : f32 to vector<64x64xf32>
    %138 = arith.addf %137, %136 : vector<64x64xf32>
    %cst_58 = arith.constant 5.000000e-01 : f32
    %139 = vector.broadcast %cst_58 : f32 to vector<64x64xf32>
    %140 = arith.mulf %139, %138 : vector<64x64xf32>
    %141 = arith.mulf %128, %140 : vector<64x64xf32>
    %c0_59 = arith.constant 0 : index
    %c0_60 = arith.constant 0 : index
    %142 = vector.load %arg16[%c0_59, %c0_60] : memref<64x32xf32, #tpu.memory_space<vmem>>, vector<64x32xf32>
    %cst_61 = arith.constant dense<0.000000e+00> : vector<64x32xf32>
    %143 = tpu.matmul %141, %142, %cst_61 {dimension_numbers = #tpu.dot_dimension_numbers<[1], [0], [0], [1], [0, 0, 1, 1], [], []>} : vector<64x64xf32>, vector<64x32xf32>, vector<64x32xf32> -> vector<64x32xf32>
    %c0_62 = arith.constant 0 : index
    %c0_63 = arith.constant 0 : index
    %144 = vector.load %arg17[%c0_62, %c0_63] : memref<1x32xf32, #tpu.memory_space<vmem>>, vector<1x32xf32>
    %145 = vector.broadcast %144 : vector<1x32xf32> to vector<64x32xf32>
    %146 = arith.addf %143, %145 : vector<64x32xf32>
    %147 = arith.addf %123, %146 : vector<64x32xf32>
    %c0_64 = arith.constant 0 : index
    %c0_65 = arith.constant 0 : index
    %148 = vector.load %arg18[%c0_64, %c0_65] : memref<1x32xf32, #tpu.memory_space<vmem>>, vector<1x32xf32>
    %c0_66 = arith.constant 0 : index
    %c0_67 = arith.constant 0 : index
    %149 = vector.load %arg19[%c0_66, %c0_67] : memref<1x32xf32, #tpu.memory_space<vmem>>, vector<1x32xf32>
    %cst_68 = arith.constant dense<0.000000e+00> : vector<64xf32>
    %150 = vector.multi_reduction <add>, %147, %cst_68 [1] : vector<64x32xf32> to vector<64xf32>
    %151 = vector.shape_cast %150 : vector<64xf32> to vector<64x1xf32>
    %cst_69 = arith.constant 3.200000e+01 : f32
    %152 = vector.broadcast %cst_69 : f32 to vector<64x1xf32>
    %153 = arith.divf %151, %152 : vector<64x1xf32>
    %154 = vector.broadcast %153 : vector<64x1xf32> to vector<64x32xf32>
    %155 = arith.subf %147, %154 : vector<64x32xf32>
    %156 = arith.mulf %155, %155 : vector<64x32xf32>
    %cst_70 = arith.constant dense<0.000000e+00> : vector<64xf32>
    %157 = vector.multi_reduction <add>, %156, %cst_70 [1] : vector<64x32xf32> to vector<64xf32>
    %158 = vector.shape_cast %157 : vector<64xf32> to vector<64x1xf32>
    %cst_71 = arith.constant 3.200000e+01 : f32
    %159 = vector.broadcast %cst_71 : f32 to vector<64x1xf32>
    %160 = arith.divf %158, %159 : vector<64x1xf32>
    %161 = vector.broadcast %153 : vector<64x1xf32> to vector<64x32xf32>
    %162 = arith.subf %147, %161 : vector<64x32xf32>
    %cst_72 = arith.constant 9.99999996E-13 : f32
    %163 = vector.broadcast %cst_72 : f32 to vector<64x1xf32>
    %164 = arith.addf %160, %163 : vector<64x1xf32>
    %165 = math.rsqrt %164 : vector<64x1xf32>
    %166 = vector.broadcast %165 : vector<64x1xf32> to vector<64x32xf32>
    %167 = arith.mulf %162, %166 : vector<64x32xf32>
    %168 = vector.broadcast %148 : vector<1x32xf32> to vector<64x32xf32>
    %169 = arith.mulf %167, %168 : vector<64x32xf32>
    %170 = vector.broadcast %149 : vector<1x32xf32> to vector<64x32xf32>
    %171 = arith.addf %169, %170 : vector<64x32xf32>
    %172 = vector.shape_cast %171 : vector<64x32xf32> to vector<8x8x32xf32>
    %173 = vector.extract_strided_slice %172 {offsets = [0, 0, 0], sizes = [8, 1, 32], strides = [1, 1, 1]} : vector<8x8x32xf32> to vector<8x1x32xf32>
    %174 = vector.shape_cast %173 : vector<8x1x32xf32> to vector<8x32xf32>
    %c0_73 = arith.constant 0 : index
    %c0_74 = arith.constant 0 : index
    %175 = vector.load %arg20[%c0_73, %c0_74] : memref<32x32xf32, #tpu.memory_space<vmem>>, vector<32x32xf32>
    %cst_75 = arith.constant dense<0.000000e+00> : vector<8x32xf32>
    %176 = tpu.matmul %174, %175, %cst_75 {dimension_numbers = #tpu.dot_dimension_numbers<[1], [0], [0], [1], [0, 0, 1, 1], [], []>} : vector<8x32xf32>, vector<32x32xf32>, vector<8x32xf32> -> vector<8x32xf32>
    %c0_76 = arith.constant 0 : index
    %c0_77 = arith.constant 0 : index
    %177 = vector.load %arg21[%c0_76, %c0_77] : memref<1x32xf32, #tpu.memory_space<vmem>>, vector<1x32xf32>
    %178 = vector.broadcast %177 : vector<1x32xf32> to vector<8x32xf32>
    %179 = arith.addf %176, %178 : vector<8x32xf32>
    %180 = math.tanh %179 : vector<8x32xf32>
    %c0_78 = arith.constant 0 : index
    %c0_79 = arith.constant 0 : index
    %181 = vector.load %arg22[%c0_78, %c0_79] : memref<32x32xf32, #tpu.memory_space<vmem>>, vector<32x32xf32>
    %cst_80 = arith.constant dense<0.000000e+00> : vector<8x32xf32>
    %182 = tpu.matmul %180, %181, %cst_80 {dimension_numbers = #tpu.dot_dimension_numbers<[1], [0], [0], [1], [0, 0, 1, 1], [], []>} : vector<8x32xf32>, vector<32x32xf32>, vector<8x32xf32> -> vector<8x32xf32>
    %c0_81 = arith.constant 0 : index
    %c0_82 = arith.constant 0 : index
    %183 = vector.load %arg23[%c0_81, %c0_82] : memref<1x32xf32, #tpu.memory_space<vmem>>, vector<1x32xf32>
    %184 = vector.broadcast %183 : vector<1x32xf32> to vector<8x32xf32>
    %185 = arith.addf %182, %184 : vector<8x32xf32>
    %cst_83 = arith.constant 0.000000e+00 : f32
    %186 = vector.broadcast %cst_83 : f32 to vector<8x32xf32>
    %187 = arith.maximumf %185, %186 : vector<8x32xf32>
    %c0_84 = arith.constant 0 : index
    %c0_85 = arith.constant 0 : index
    %188 = vector.load %arg24[%c0_84, %c0_85] : memref<32x16xf32, #tpu.memory_space<vmem>>, vector<32x16xf32>
    %cst_86 = arith.constant dense<0.000000e+00> : vector<8x16xf32>
    %189 = tpu.matmul %187, %188, %cst_86 {dimension_numbers = #tpu.dot_dimension_numbers<[1], [0], [0], [1], [0, 0, 1, 1], [], []>} : vector<8x32xf32>, vector<32x16xf32>, vector<8x16xf32> -> vector<8x16xf32>
    %c0_87 = arith.constant 0 : index
    %c0_88 = arith.constant 0 : index
    %190 = vector.load %arg25[%c0_87, %c0_88] : memref<1x16xf32, #tpu.memory_space<vmem>>, vector<1x16xf32>
    %191 = vector.broadcast %190 : vector<1x16xf32> to vector<8x16xf32>
    %192 = arith.addf %189, %191 : vector<8x16xf32>
    %193 = tpu.iota {dimensions = array<i32: 1>} : vector<56x16xi32>
    %c0_89 = arith.constant 0 : index
    %c0_90 = arith.constant 0 : index
    %194 = vector.load %arg33[%c0_89, %c0_90] : memref<56x1xi32, #tpu.memory_space<vmem>>, vector<56x1xi32>
    %195 = vector.broadcast %194 : vector<56x1xi32> to vector<56x16xi32>
    %196 = arith.cmpi eq, %193, %195 : vector<56x16xi32>
    %197 = arith.extui %196 : vector<56x16xi1> to vector<56x16xi32>
    %198 = arith.sitofp %197 : vector<56x16xi32> to vector<56x16xf32>
    %c0_91 = arith.constant 0 : index
    %c0_92 = arith.constant 0 : index
    %199 = vector.load %arg26[%c0_91, %c0_92] : memref<16x16xf32, #tpu.memory_space<vmem>>, vector<16x16xf32>
    %cst_93 = arith.constant dense<0.000000e+00> : vector<56x16xf32>
    %200 = tpu.matmul %198, %199, %cst_93 {dimension_numbers = #tpu.dot_dimension_numbers<[1], [0], [0], [1], [0, 0, 1, 1], [], []>} : vector<56x16xf32>, vector<16x16xf32>, vector<56x16xf32> -> vector<56x16xf32>
    %c0_94 = arith.constant 0 : index
    %c0_95 = arith.constant 0 : index
    %201 = vector.load %arg27[%c0_94, %c0_95] : memref<16x48xf32, #tpu.memory_space<vmem>>, vector<16x48xf32>
    %cst_96 = arith.constant dense<0.000000e+00> : vector<56x48xf32>
    %202 = tpu.matmul %200, %201, %cst_96 {dimension_numbers = #tpu.dot_dimension_numbers<[1], [0], [0], [1], [0, 0, 1, 1], [], []>} : vector<56x16xf32>, vector<16x48xf32>, vector<56x48xf32> -> vector<56x48xf32>
    %c0_97 = arith.constant 0 : index
    %c0_98 = arith.constant 0 : index
    %203 = vector.load %arg29[%c0_97, %c0_98] : memref<1x48xf32, #tpu.memory_space<vmem>>, vector<1x48xf32>
    %204 = vector.broadcast %203 : vector<1x48xf32> to vector<56x48xf32>
    %205 = arith.addf %202, %204 : vector<56x48xf32>
    %206 = vector.shape_cast %205 : vector<56x48xf32> to vector<7x8x48xf32>
    %c0_99 = arith.constant 0 : index
    %c0_100 = arith.constant 0 : index
    %207 = vector.load %arg28[%c0_99, %c0_100] : memref<16x48xf32, #tpu.memory_space<vmem>>, vector<16x48xf32>
    %c0_101 = arith.constant 0 : index
    %c0_102 = arith.constant 0 : index
    %208 = vector.load %arg30[%c0_101, %c0_102] : memref<1x48xf32, #tpu.memory_space<vmem>>, vector<1x48xf32>
    %209 = vector.extract_strided_slice %206 {offsets = [0, 0, 0], sizes = [1, 8, 48], strides = [1, 1, 1]} : vector<7x8x48xf32> to vector<1x8x48xf32>
    %210 = vector.shape_cast %209 : vector<1x8x48xf32> to vector<8x48xf32>
    %cst_103 = arith.constant dense<0.000000e+00> : vector<8x48xf32>
    %211 = tpu.matmul %192, %207, %cst_103 {dimension_numbers = #tpu.dot_dimension_numbers<[1], [0], [0], [1], [0, 0, 1, 1], [], []>} : vector<8x16xf32>, vector<16x48xf32>, vector<8x48xf32> -> vector<8x48xf32>
    %212 = vector.broadcast %208 : vector<1x48xf32> to vector<8x48xf32>
    %213 = arith.addf %211, %212 : vector<8x48xf32>
    %214 = vector.extract_strided_slice %210 {offsets = [0, 0], sizes = [8, 16], strides = [1, 1]} : vector<8x48xf32> to vector<8x16xf32>
    %215 = vector.extract_strided_slice %213 {offsets = [0, 0], sizes = [8, 16], strides = [1, 1]} : vector<8x48xf32> to vector<8x16xf32>
    %216 = arith.addf %214, %215 : vector<8x16xf32>
    %217 = arith.negf %216 : vector<8x16xf32>
    %218 = math.exp %217 : vector<8x16xf32>
    %cst_104 = arith.constant 1.000000e+00 : f32
    %219 = vector.broadcast %cst_104 : f32 to vector<8x16xf32>
    %220 = arith.addf %219, %218 : vector<8x16xf32>
    %221 = arith.divf %219, %220 : vector<8x16xf32>
    %222 = vector.extract_strided_slice %210 {offsets = [0, 16], sizes = [8, 16], strides = [1, 1]} : vector<8x48xf32> to vector<8x16xf32>
    %223 = vector.extract_strided_slice %213 {offsets = [0, 16], sizes = [8, 16], strides = [1, 1]} : vector<8x48xf32> to vector<8x16xf32>
    %224 = arith.addf %222, %223 : vector<8x16xf32>
    %225 = arith.negf %224 : vector<8x16xf32>
    %226 = math.exp %225 : vector<8x16xf32>
    %cst_105 = arith.constant 1.000000e+00 : f32
    %227 = vector.broadcast %cst_105 : f32 to vector<8x16xf32>
    %228 = arith.addf %227, %226 : vector<8x16xf32>
    %229 = arith.divf %227, %228 : vector<8x16xf32>
    %230 = vector.extract_strided_slice %210 {offsets = [0, 32], sizes = [8, 16], strides = [1, 1]} : vector<8x48xf32> to vector<8x16xf32>
    %231 = vector.extract_strided_slice %213 {offsets = [0, 32], sizes = [8, 16], strides = [1, 1]} : vector<8x48xf32> to vector<8x16xf32>
    %232 = arith.mulf %221, %231 : vector<8x16xf32>
    %233 = arith.addf %230, %232 : vector<8x16xf32>
    %234 = math.tanh %233 : vector<8x16xf32>
    %cst_106 = arith.constant 1.000000e+00 : f32
    %235 = vector.broadcast %cst_106 : f32 to vector<8x16xf32>
    %236 = arith.subf %235, %229 : vector<8x16xf32>
    %237 = arith.mulf %236, %234 : vector<8x16xf32>
    %238 = arith.mulf %229, %192 : vector<8x16xf32>
    %239 = arith.addf %237, %238 : vector<8x16xf32>
    %c0_107 = arith.constant 0 : index
    %c0_108 = arith.constant 0 : index
    %c0_109 = arith.constant 0 : index
    %240 = vector.load %arg36[%c0_107, %c0_108, %c0_109] : memref<7x8x16xf32, #tpu.memory_space<vmem>>, vector<1x8x16xf32>
    %241 = vector.shape_cast %240 : vector<1x8x16xf32> to vector<8x16xf32>
    %242 = vector.shape_cast %239 : vector<8x16xf32> to vector<1x8x16xf32>
    tpu.vector_store %arg36[%c0_107, %c0_108, %c0_109], %242 {strides = array<i32>} : memref<7x8x16xf32, #tpu.memory_space<vmem>>, vector<1x8x16xf32>,
    %243 = vector.extract_strided_slice %206 {offsets = [1, 0, 0], sizes = [1, 8, 48], strides = [1, 1, 1]} : vector<7x8x48xf32> to vector<1x8x48xf32>
    %244 = vector.shape_cast %243 : vector<1x8x48xf32> to vector<8x48xf32>
    %cst_110 = arith.constant dense<0.000000e+00> : vector<8x48xf32>
    %245 = tpu.matmul %239, %207, %cst_110 {dimension_numbers = #tpu.dot_dimension_numbers<[1], [0], [0], [1], [0, 0, 1, 1], [], []>} : vector<8x16xf32>, vector<16x48xf32>, vector<8x48xf32> -> vector<8x48xf32>
    %246 = vector.broadcast %208 : vector<1x48xf32> to vector<8x48xf32>
    %247 = arith.addf %245, %246 : vector<8x48xf32>
    %248 = vector.extract_strided_slice %244 {offsets = [0, 0], sizes = [8, 16], strides = [1, 1]} : vector<8x48xf32> to vector<8x16xf32>
    %249 = vector.extract_strided_slice %247 {offsets = [0, 0], sizes = [8, 16], strides = [1, 1]} : vector<8x48xf32> to vector<8x16xf32>
    %250 = arith.addf %248, %249 : vector<8x16xf32>
    %251 = arith.negf %250 : vector<8x16xf32>
    %252 = math.exp %251 : vector<8x16xf32>
    %cst_111 = arith.constant 1.000000e+00 : f32
    %253 = vector.broadcast %cst_111 : f32 to vector<8x16xf32>
    %254 = arith.addf %253, %252 : vector<8x16xf32>
    %255 = arith.divf %253, %254 : vector<8x16xf32>
    %256 = vector.extract_strided_slice %244 {offsets = [0, 16], sizes = [8, 16], strides = [1, 1]} : vector<8x48xf32> to vector<8x16xf32>
    %257 = vector.extract_strided_slice %247 {offsets = [0, 16], sizes = [8, 16], strides = [1, 1]} : vector<8x48xf32> to vector<8x16xf32>
    %258 = arith.addf %256, %257 : vector<8x16xf32>
    %259 = arith.negf %258 : vector<8x16xf32>
    %260 = math.exp %259 : vector<8x16xf32>
    %cst_112 = arith.constant 1.000000e+00 : f32
    %261 = vector.broadcast %cst_112 : f32 to vector<8x16xf32>
    %262 = arith.addf %261, %260 : vector<8x16xf32>
    %263 = arith.divf %261, %262 : vector<8x16xf32>
    %264 = vector.extract_strided_slice %244 {offsets = [0, 32], sizes = [8, 16], strides = [1, 1]} : vector<8x48xf32> to vector<8x16xf32>
    %265 = vector.extract_strided_slice %247 {offsets = [0, 32], sizes = [8, 16], strides = [1, 1]} : vector<8x48xf32> to vector<8x16xf32>
    %266 = arith.mulf %255, %265 : vector<8x16xf32>
    %267 = arith.addf %264, %266 : vector<8x16xf32>
    %268 = math.tanh %267 : vector<8x16xf32>
    %cst_113 = arith.constant 1.000000e+00 : f32
    %269 = vector.broadcast %cst_113 : f32 to vector<8x16xf32>
    %270 = arith.subf %269, %263 : vector<8x16xf32>
    %271 = arith.mulf %270, %268 : vector<8x16xf32>
    %272 = arith.mulf %263, %239 : vector<8x16xf32>
    %273 = arith.addf %271, %272 : vector<8x16xf32>
    %c1 = arith.constant 1 : index
    %c0_114 = arith.constant 0 : index
    %c0_115 = arith.constant 0 : index
    %274 = vector.load %arg36[%c1, %c0_114, %c0_115] : memref<7x8x16xf32, #tpu.memory_space<vmem>>, vector<1x8x16xf32>
    %275 = vector.shape_cast %274 : vector<1x8x16xf32> to vector<8x16xf32>
    %276 = vector.shape_cast %273 : vector<8x16xf32> to vector<1x8x16xf32>
    tpu.vector_store %arg36[%c1, %c0_114, %c0_115], %276 {strides = array<i32>} : memref<7x8x16xf32, #tpu.memory_space<vmem>>, vector<1x8x16xf32>,
    %277 = vector.extract_strided_slice %206 {offsets = [2, 0, 0], sizes = [1, 8, 48], strides = [1, 1, 1]} : vector<7x8x48xf32> to vector<1x8x48xf32>
    %278 = vector.shape_cast %277 : vector<1x8x48xf32> to vector<8x48xf32>
    %cst_116 = arith.constant dense<0.000000e+00> : vector<8x48xf32>
    %279 = tpu.matmul %273, %207, %cst_116 {dimension_numbers = #tpu.dot_dimension_numbers<[1], [0], [0], [1], [0, 0, 1, 1], [], []>} : vector<8x16xf32>, vector<16x48xf32>, vector<8x48xf32> -> vector<8x48xf32>
    %280 = vector.broadcast %208 : vector<1x48xf32> to vector<8x48xf32>
    %281 = arith.addf %279, %280 : vector<8x48xf32>
    %282 = vector.extract_strided_slice %278 {offsets = [0, 0], sizes = [8, 16], strides = [1, 1]} : vector<8x48xf32> to vector<8x16xf32>
    %283 = vector.extract_strided_slice %281 {offsets = [0, 0], sizes = [8, 16], strides = [1, 1]} : vector<8x48xf32> to vector<8x16xf32>
    %284 = arith.addf %282, %283 : vector<8x16xf32>
    %285 = arith.negf %284 : vector<8x16xf32>
    %286 = math.exp %285 : vector<8x16xf32>
    %cst_117 = arith.constant 1.000000e+00 : f32
    %287 = vector.broadcast %cst_117 : f32 to vector<8x16xf32>
    %288 = arith.addf %287, %286 : vector<8x16xf32>
    %289 = arith.divf %287, %288 : vector<8x16xf32>
    %290 = vector.extract_strided_slice %278 {offsets = [0, 16], sizes = [8, 16], strides = [1, 1]} : vector<8x48xf32> to vector<8x16xf32>
    %291 = vector.extract_strided_slice %281 {offsets = [0, 16], sizes = [8, 16], strides = [1, 1]} : vector<8x48xf32> to vector<8x16xf32>
    %292 = arith.addf %290, %291 : vector<8x16xf32>
    %293 = arith.negf %292 : vector<8x16xf32>
    %294 = math.exp %293 : vector<8x16xf32>
    %cst_118 = arith.constant 1.000000e+00 : f32
    %295 = vector.broadcast %cst_118 : f32 to vector<8x16xf32>
    %296 = arith.addf %295, %294 : vector<8x16xf32>
    %297 = arith.divf %295, %296 : vector<8x16xf32>
    %298 = vector.extract_strided_slice %278 {offsets = [0, 32], sizes = [8, 16], strides = [1, 1]} : vector<8x48xf32> to vector<8x16xf32>
    %299 = vector.extract_strided_slice %281 {offsets = [0, 32], sizes = [8, 16], strides = [1, 1]} : vector<8x48xf32> to vector<8x16xf32>
    %300 = arith.mulf %289, %299 : vector<8x16xf32>
    %301 = arith.addf %298, %300 : vector<8x16xf32>
    %302 = math.tanh %301 : vector<8x16xf32>
    %cst_119 = arith.constant 1.000000e+00 : f32
    %303 = vector.broadcast %cst_119 : f32 to vector<8x16xf32>
    %304 = arith.subf %303, %297 : vector<8x16xf32>
    %305 = arith.mulf %304, %302 : vector<8x16xf32>
    %306 = arith.mulf %297, %273 : vector<8x16xf32>
    %307 = arith.addf %305, %306 : vector<8x16xf32>
    %c2 = arith.constant 2 : index
    %c0_120 = arith.constant 0 : index
    %c0_121 = arith.constant 0 : index
    %308 = vector.load %arg36[%c2, %c0_120, %c0_121] : memref<7x8x16xf32, #tpu.memory_space<vmem>>, vector<1x8x16xf32>
    %309 = vector.shape_cast %308 : vector<1x8x16xf32> to vector<8x16xf32>
    %310 = vector.shape_cast %307 : vector<8x16xf32> to vector<1x8x16xf32>
    tpu.vector_store %arg36[%c2, %c0_120, %c0_121], %310 {strides = array<i32>} : memref<7x8x16xf32, #tpu.memory_space<vmem>>, vector<1x8x16xf32>,
    %311 = vector.extract_strided_slice %206 {offsets = [3, 0, 0], sizes = [1, 8, 48], strides = [1, 1, 1]} : vector<7x8x48xf32> to vector<1x8x48xf32>
    %312 = vector.shape_cast %311 : vector<1x8x48xf32> to vector<8x48xf32>
    %cst_122 = arith.constant dense<0.000000e+00> : vector<8x48xf32>
    %313 = tpu.matmul %307, %207, %cst_122 {dimension_numbers = #tpu.dot_dimension_numbers<[1], [0], [0], [1], [0, 0, 1, 1], [], []>} : vector<8x16xf32>, vector<16x48xf32>, vector<8x48xf32> -> vector<8x48xf32>
    %314 = vector.broadcast %208 : vector<1x48xf32> to vector<8x48xf32>
    %315 = arith.addf %313, %314 : vector<8x48xf32>
    %316 = vector.extract_strided_slice %312 {offsets = [0, 0], sizes = [8, 16], strides = [1, 1]} : vector<8x48xf32> to vector<8x16xf32>
    %317 = vector.extract_strided_slice %315 {offsets = [0, 0], sizes = [8, 16], strides = [1, 1]} : vector<8x48xf32> to vector<8x16xf32>
    %318 = arith.addf %316, %317 : vector<8x16xf32>
    %319 = arith.negf %318 : vector<8x16xf32>
    %320 = math.exp %319 : vector<8x16xf32>
    %cst_123 = arith.constant 1.000000e+00 : f32
    %321 = vector.broadcast %cst_123 : f32 to vector<8x16xf32>
    %322 = arith.addf %321, %320 : vector<8x16xf32>
    %323 = arith.divf %321, %322 : vector<8x16xf32>
    %324 = vector.extract_strided_slice %312 {offsets = [0, 16], sizes = [8, 16], strides = [1, 1]} : vector<8x48xf32> to vector<8x16xf32>
    %325 = vector.extract_strided_slice %315 {offsets = [0, 16], sizes = [8, 16], strides = [1, 1]} : vector<8x48xf32> to vector<8x16xf32>
    %326 = arith.addf %324, %325 : vector<8x16xf32>
    %327 = arith.negf %326 : vector<8x16xf32>
    %328 = math.exp %327 : vector<8x16xf32>
    %cst_124 = arith.constant 1.000000e+00 : f32
    %329 = vector.broadcast %cst_124 : f32 to vector<8x16xf32>
    %330 = arith.addf %329, %328 : vector<8x16xf32>
    %331 = arith.divf %329, %330 : vector<8x16xf32>
    %332 = vector.extract_strided_slice %312 {offsets = [0, 32], sizes = [8, 16], strides = [1, 1]} : vector<8x48xf32> to vector<8x16xf32>
    %333 = vector.extract_strided_slice %315 {offsets = [0, 32], sizes = [8, 16], strides = [1, 1]} : vector<8x48xf32> to vector<8x16xf32>
    %334 = arith.mulf %323, %333 : vector<8x16xf32>
    %335 = arith.addf %332, %334 : vector<8x16xf32>
    %336 = math.tanh %335 : vector<8x16xf32>
    %cst_125 = arith.constant 1.000000e+00 : f32
    %337 = vector.broadcast %cst_125 : f32 to vector<8x16xf32>
    %338 = arith.subf %337, %331 : vector<8x16xf32>
    %339 = arith.mulf %338, %336 : vector<8x16xf32>
    %340 = arith.mulf %331, %307 : vector<8x16xf32>
    %341 = arith.addf %339, %340 : vector<8x16xf32>
    %c3 = arith.constant 3 : index
    %c0_126 = arith.constant 0 : index
    %c0_127 = arith.constant 0 : index
    %342 = vector.load %arg36[%c3, %c0_126, %c0_127] : memref<7x8x16xf32, #tpu.memory_space<vmem>>, vector<1x8x16xf32>
    %343 = vector.shape_cast %342 : vector<1x8x16xf32> to vector<8x16xf32>
    %344 = vector.shape_cast %341 : vector<8x16xf32> to vector<1x8x16xf32>
    tpu.vector_store %arg36[%c3, %c0_126, %c0_127], %344 {strides = array<i32>} : memref<7x8x16xf32, #tpu.memory_space<vmem>>, vector<1x8x16xf32>,
    %345 = vector.extract_strided_slice %206 {offsets = [4, 0, 0], sizes = [1, 8, 48], strides = [1, 1, 1]} : vector<7x8x48xf32> to vector<1x8x48xf32>
    %346 = vector.shape_cast %345 : vector<1x8x48xf32> to vector<8x48xf32>
    %cst_128 = arith.constant dense<0.000000e+00> : vector<8x48xf32>
    %347 = tpu.matmul %341, %207, %cst_128 {dimension_numbers = #tpu.dot_dimension_numbers<[1], [0], [0], [1], [0, 0, 1, 1], [], []>} : vector<8x16xf32>, vector<16x48xf32>, vector<8x48xf32> -> vector<8x48xf32>
    %348 = vector.broadcast %208 : vector<1x48xf32> to vector<8x48xf32>
    %349 = arith.addf %347, %348 : vector<8x48xf32>
    %350 = vector.extract_strided_slice %346 {offsets = [0, 0], sizes = [8, 16], strides = [1, 1]} : vector<8x48xf32> to vector<8x16xf32>
    %351 = vector.extract_strided_slice %349 {offsets = [0, 0], sizes = [8, 16], strides = [1, 1]} : vector<8x48xf32> to vector<8x16xf32>
    %352 = arith.addf %350, %351 : vector<8x16xf32>
    %353 = arith.negf %352 : vector<8x16xf32>
    %354 = math.exp %353 : vector<8x16xf32>
    %cst_129 = arith.constant 1.000000e+00 : f32
    %355 = vector.broadcast %cst_129 : f32 to vector<8x16xf32>
    %356 = arith.addf %355, %354 : vector<8x16xf32>
    %357 = arith.divf %355, %356 : vector<8x16xf32>
    %358 = vector.extract_strided_slice %346 {offsets = [0, 16], sizes = [8, 16], strides = [1, 1]} : vector<8x48xf32> to vector<8x16xf32>
    %359 = vector.extract_strided_slice %349 {offsets = [0, 16], sizes = [8, 16], strides = [1, 1]} : vector<8x48xf32> to vector<8x16xf32>
    %360 = arith.addf %358, %359 : vector<8x16xf32>
    %361 = arith.negf %360 : vector<8x16xf32>
    %362 = math.exp %361 : vector<8x16xf32>
    %cst_130 = arith.constant 1.000000e+00 : f32
    %363 = vector.broadcast %cst_130 : f32 to vector<8x16xf32>
    %364 = arith.addf %363, %362 : vector<8x16xf32>
    %365 = arith.divf %363, %364 : vector<8x16xf32>
    %366 = vector.extract_strided_slice %346 {offsets = [0, 32], sizes = [8, 16], strides = [1, 1]} : vector<8x48xf32> to vector<8x16xf32>
    %367 = vector.extract_strided_slice %349 {offsets = [0, 32], sizes = [8, 16], strides = [1, 1]} : vector<8x48xf32> to vector<8x16xf32>
    %368 = arith.mulf %357, %367 : vector<8x16xf32>
    %369 = arith.addf %366, %368 : vector<8x16xf32>
    %370 = math.tanh %369 : vector<8x16xf32>
    %cst_131 = arith.constant 1.000000e+00 : f32
    %371 = vector.broadcast %cst_131 : f32 to vector<8x16xf32>
    %372 = arith.subf %371, %365 : vector<8x16xf32>
    %373 = arith.mulf %372, %370 : vector<8x16xf32>
    %374 = arith.mulf %365, %341 : vector<8x16xf32>
    %375 = arith.addf %373, %374 : vector<8x16xf32>
    %c4 = arith.constant 4 : index
    %c0_132 = arith.constant 0 : index
    %c0_133 = arith.constant 0 : index
    %376 = vector.load %arg36[%c4, %c0_132, %c0_133] : memref<7x8x16xf32, #tpu.memory_space<vmem>>, vector<1x8x16xf32>
    %377 = vector.shape_cast %376 : vector<1x8x16xf32> to vector<8x16xf32>
    %378 = vector.shape_cast %375 : vector<8x16xf32> to vector<1x8x16xf32>
    tpu.vector_store %arg36[%c4, %c0_132, %c0_133], %378 {strides = array<i32>} : memref<7x8x16xf32, #tpu.memory_space<vmem>>, vector<1x8x16xf32>,
    %379 = vector.extract_strided_slice %206 {offsets = [5, 0, 0], sizes = [1, 8, 48], strides = [1, 1, 1]} : vector<7x8x48xf32> to vector<1x8x48xf32>
    %380 = vector.shape_cast %379 : vector<1x8x48xf32> to vector<8x48xf32>
    %cst_134 = arith.constant dense<0.000000e+00> : vector<8x48xf32>
    %381 = tpu.matmul %375, %207, %cst_134 {dimension_numbers = #tpu.dot_dimension_numbers<[1], [0], [0], [1], [0, 0, 1, 1], [], []>} : vector<8x16xf32>, vector<16x48xf32>, vector<8x48xf32> -> vector<8x48xf32>
    %382 = vector.broadcast %208 : vector<1x48xf32> to vector<8x48xf32>
    %383 = arith.addf %381, %382 : vector<8x48xf32>
    %384 = vector.extract_strided_slice %380 {offsets = [0, 0], sizes = [8, 16], strides = [1, 1]} : vector<8x48xf32> to vector<8x16xf32>
    %385 = vector.extract_strided_slice %383 {offsets = [0, 0], sizes = [8, 16], strides = [1, 1]} : vector<8x48xf32> to vector<8x16xf32>
    %386 = arith.addf %384, %385 : vector<8x16xf32>
    %387 = arith.negf %386 : vector<8x16xf32>
    %388 = math.exp %387 : vector<8x16xf32>
    %cst_135 = arith.constant 1.000000e+00 : f32
    %389 = vector.broadcast %cst_135 : f32 to vector<8x16xf32>
    %390 = arith.addf %389, %388 : vector<8x16xf32>
    %391 = arith.divf %389, %390 : vector<8x16xf32>
    %392 = vector.extract_strided_slice %380 {offsets = [0, 16], sizes = [8, 16], strides = [1, 1]} : vector<8x48xf32> to vector<8x16xf32>
    %393 = vector.extract_strided_slice %383 {offsets = [0, 16], sizes = [8, 16], strides = [1, 1]} : vector<8x48xf32> to vector<8x16xf32>
    %394 = arith.addf %392, %393 : vector<8x16xf32>
    %395 = arith.negf %394 : vector<8x16xf32>
    %396 = math.exp %395 : vector<8x16xf32>
    %cst_136 = arith.constant 1.000000e+00 : f32
    %397 = vector.broadcast %cst_136 : f32 to vector<8x16xf32>
    %398 = arith.addf %397, %396 : vector<8x16xf32>
    %399 = arith.divf %397, %398 : vector<8x16xf32>
    %400 = vector.extract_strided_slice %380 {offsets = [0, 32], sizes = [8, 16], strides = [1, 1]} : vector<8x48xf32> to vector<8x16xf32>
    %401 = vector.extract_strided_slice %383 {offsets = [0, 32], sizes = [8, 16], strides = [1, 1]} : vector<8x48xf32> to vector<8x16xf32>
    %402 = arith.mulf %391, %401 : vector<8x16xf32>
    %403 = arith.addf %400, %402 : vector<8x16xf32>
    %404 = math.tanh %403 : vector<8x16xf32>
    %cst_137 = arith.constant 1.000000e+00 : f32
    %405 = vector.broadcast %cst_137 : f32 to vector<8x16xf32>
    %406 = arith.subf %405, %399 : vector<8x16xf32>
    %407 = arith.mulf %406, %404 : vector<8x16xf32>
    %408 = arith.mulf %399, %375 : vector<8x16xf32>
    %409 = arith.addf %407, %408 : vector<8x16xf32>
    %c5 = arith.constant 5 : index
    %c0_138 = arith.constant 0 : index
    %c0_139 = arith.constant 0 : index
    %410 = vector.load %arg36[%c5, %c0_138, %c0_139] : memref<7x8x16xf32, #tpu.memory_space<vmem>>, vector<1x8x16xf32>
    %411 = vector.shape_cast %410 : vector<1x8x16xf32> to vector<8x16xf32>
    %412 = vector.shape_cast %409 : vector<8x16xf32> to vector<1x8x16xf32>
    tpu.vector_store %arg36[%c5, %c0_138, %c0_139], %412 {strides = array<i32>} : memref<7x8x16xf32, #tpu.memory_space<vmem>>, vector<1x8x16xf32>,
    %413 = vector.extract_strided_slice %206 {offsets = [6, 0, 0], sizes = [1, 8, 48], strides = [1, 1, 1]} : vector<7x8x48xf32> to vector<1x8x48xf32>
    %414 = vector.shape_cast %413 : vector<1x8x48xf32> to vector<8x48xf32>
    %cst_140 = arith.constant dense<0.000000e+00> : vector<8x48xf32>
    %415 = tpu.matmul %409, %207, %cst_140 {dimension_numbers = #tpu.dot_dimension_numbers<[1], [0], [0], [1], [0, 0, 1, 1], [], []>} : vector<8x16xf32>, vector<16x48xf32>, vector<8x48xf32> -> vector<8x48xf32>
    %416 = vector.broadcast %208 : vector<1x48xf32> to vector<8x48xf32>
    %417 = arith.addf %415, %416 : vector<8x48xf32>
    %418 = vector.extract_strided_slice %414 {offsets = [0, 0], sizes = [8, 16], strides = [1, 1]} : vector<8x48xf32> to vector<8x16xf32>
    %419 = vector.extract_strided_slice %417 {offsets = [0, 0], sizes = [8, 16], strides = [1, 1]} : vector<8x48xf32> to vector<8x16xf32>
    %420 = arith.addf %418, %419 : vector<8x16xf32>
    %421 = arith.negf %420 : vector<8x16xf32>
    %422 = math.exp %421 : vector<8x16xf32>
    %cst_141 = arith.constant 1.000000e+00 : f32
    %423 = vector.broadcast %cst_141 : f32 to vector<8x16xf32>
    %424 = arith.addf %423, %422 : vector<8x16xf32>
    %425 = arith.divf %423, %424 : vector<8x16xf32>
    %426 = vector.extract_strided_slice %414 {offsets = [0, 16], sizes = [8, 16], strides = [1, 1]} : vector<8x48xf32> to vector<8x16xf32>
    %427 = vector.extract_strided_slice %417 {offsets = [0, 16], sizes = [8, 16], strides = [1, 1]} : vector<8x48xf32> to vector<8x16xf32>
    %428 = arith.addf %426, %427 : vector<8x16xf32>
    %429 = arith.negf %428 : vector<8x16xf32>
    %430 = math.exp %429 : vector<8x16xf32>
    %cst_142 = arith.constant 1.000000e+00 : f32
    %431 = vector.broadcast %cst_142 : f32 to vector<8x16xf32>
    %432 = arith.addf %431, %430 : vector<8x16xf32>
    %433 = arith.divf %431, %432 : vector<8x16xf32>
    %434 = vector.extract_strided_slice %414 {offsets = [0, 32], sizes = [8, 16], strides = [1, 1]} : vector<8x48xf32> to vector<8x16xf32>
    %435 = vector.extract_strided_slice %417 {offsets = [0, 32], sizes = [8, 16], strides = [1, 1]} : vector<8x48xf32> to vector<8x16xf32>
    %436 = arith.mulf %425, %435 : vector<8x16xf32>
    %437 = arith.addf %434, %436 : vector<8x16xf32>
    %438 = math.tanh %437 : vector<8x16xf32>
    %cst_143 = arith.constant 1.000000e+00 : f32
    %439 = vector.broadcast %cst_143 : f32 to vector<8x16xf32>
    %440 = arith.subf %439, %433 : vector<8x16xf32>
    %441 = arith.mulf %440, %438 : vector<8x16xf32>
    %442 = arith.mulf %433, %409 : vector<8x16xf32>
    %443 = arith.addf %441, %442 : vector<8x16xf32>
    %c6 = arith.constant 6 : index
    %c0_144 = arith.constant 0 : index
    %c0_145 = arith.constant 0 : index
    %444 = vector.load %arg36[%c6, %c0_144, %c0_145] : memref<7x8x16xf32, #tpu.memory_space<vmem>>, vector<1x8x16xf32>
    %445 = vector.shape_cast %444 : vector<1x8x16xf32> to vector<8x16xf32>
    %446 = vector.shape_cast %443 : vector<8x16xf32> to vector<1x8x16xf32>
    tpu.vector_store %arg36[%c6, %c0_144, %c0_145], %446 {strides = array<i32>} : memref<7x8x16xf32, #tpu.memory_space<vmem>>, vector<1x8x16xf32>,
    %c0_146 = arith.constant 0 : index
    %c0_147 = arith.constant 0 : index
    %c0_148 = arith.constant 0 : index
    %447 = vector.load %arg36[%c0_146, %c0_147, %c0_148] : memref<7x8x16xf32, #tpu.memory_space<vmem>>, vector<7x8x16xf32>
    %448 = vector.shape_cast %447 : vector<7x8x16xf32> to vector<56x16xf32>
    %c0_149 = arith.constant 0 : index
    %c0_150 = arith.constant 0 : index
    %449 = vector.load %arg31[%c0_149, %c0_150] : memref<16x16xf32, #tpu.memory_space<vmem>>, vector<16x16xf32>
    %cst_151 = arith.constant dense<0.000000e+00> : vector<56x16xf32>
    %450 = tpu.matmul %448, %449, %cst_151 {dimension_numbers = #tpu.dot_dimension_numbers<[1], [0], [0], [1], [0, 0, 1, 1], [], []>} : vector<56x16xf32>, vector<16x16xf32>, vector<56x16xf32> -> vector<56x16xf32>
    %c0_152 = arith.constant 0 : index
    %c0_153 = arith.constant 0 : index
    %451 = vector.load %arg32[%c0_152, %c0_153] : memref<1x16xf32, #tpu.memory_space<vmem>>, vector<1x16xf32>
    %452 = vector.broadcast %451 : vector<1x16xf32> to vector<56x16xf32>
    %453 = arith.addf %450, %452 : vector<56x16xf32>
    %cst_154 = arith.constant dense<0xFF800000> : vector<56xf32>
    %454 = vector.multi_reduction <maximumf>, %453, %cst_154 [1] : vector<56x16xf32> to vector<56xf32>
    %455 = vector.shape_cast %454 : vector<56xf32> to vector<56x1xf32>
    %456 = vector.broadcast %455 : vector<56x1xf32> to vector<56x16xf32>
    %457 = arith.subf %453, %456 : vector<56x16xf32>
    %458 = math.exp %457 : vector<56x16xf32>
    %cst_155 = arith.constant dense<0.000000e+00> : vector<56xf32>
    %459 = vector.multi_reduction <add>, %458, %cst_155 [1] : vector<56x16xf32> to vector<56xf32>
    %460 = vector.shape_cast %459 : vector<56xf32> to vector<56x1xf32>
    %461 = math.log %460 : vector<56x1xf32>
    %462 = arith.addf %455, %461 : vector<56x1xf32>
    %463 = vector.broadcast %462 : vector<56x1xf32> to vector<56x16xf32>
    %464 = arith.subf %453, %463 : vector<56x16xf32>
    %c0_156 = arith.constant 0 : index
    %c0_157 = arith.constant 0 : index
    %465 = vector.load %arg34[%c0_156, %c0_157] : memref<56x1xi32, #tpu.memory_space<vmem>>, vector<56x1xi32>
    %466 = tpu.iota {dimensions = array<i32: 1>} : vector<56x16xi32>
    %467 = vector.broadcast %465 : vector<56x1xi32> to vector<56x16xi32>
    %468 = arith.cmpi eq, %466, %467 : vector<56x16xi32>
    %cst_158 = arith.constant 0.000000e+00 : f32
    %469 = vector.broadcast %cst_158 : f32 to vector<56x16xf32>
    %470 = arith.select %468, %464, %469 : vector<56x16xi1>, vector<56x16xf32>
    %cst_159 = arith.constant dense<0.000000e+00> : vector<56xf32>
    %471 = vector.multi_reduction <add>, %470, %cst_159 [1] : vector<56x16xf32> to vector<56xf32>
    %472 = vector.shape_cast %471 : vector<56xf32> to vector<56x1xf32>
    %c0_i32 = arith.constant 0 : i32
    %473 = vector.broadcast %c0_i32 : i32 to vector<56x1xi32>
    %474 = arith.cmpi ne, %465, %473 : vector<56x1xi32>
    %475 = arith.extui %474 : vector<56x1xi1> to vector<56x1xi32>
    %476 = arith.sitofp %475 : vector<56x1xi32> to vector<56x1xf32>
    %477 = arith.mulf %472, %476 : vector<56x1xf32>
    %478 = vector.shape_cast %477 : vector<56x1xf32> to vector<1x56x1xf32>
    %cst_160 = arith.constant dense<0.000000e+00> : vector<1xf32>
    %479 = vector.multi_reduction <add>, %478, %cst_160 [1, 2] : vector<1x56x1xf32> to vector<1xf32>
    %480 = vector.shape_cast %479 : vector<1xf32> to vector<1x1x1xf32>
    %481 = vector.extract %480[0, 0, 0] : f32 from vector<1x1x1xf32>
    %482 = vector.broadcast %481 : f32 to vector<1x1xf32>
    %cst_161 = arith.constant 0.000000e+00 : f32
    %483 = vector.broadcast %cst_161 : f32 to vector<1x1xf32>
    %484 = arith.subf %483, %482 : vector<1x1xf32>
    %485 = vector.shape_cast %476 : vector<56x1xf32> to vector<1x56x1xf32>
    %cst_162 = arith.constant dense<0.000000e+00> : vector<1xf32>
    %486 = vector.multi_reduction <add>, %485, %cst_162 [1, 2] : vector<1x56x1xf32> to vector<1xf32>
    %487 = vector.shape_cast %486 : vector<1xf32> to vector<1x1x1xf32>
    %488 = vector.extract %487[0, 0, 0] : f32 from vector<1x1x1xf32>
    %489 = vector.broadcast %488 : f32 to vector<1x1xf32>
    %cst_163 = arith.constant 1.000000e+00 : f32
    %490 = vector.broadcast %cst_163 : f32 to vector<1x1xf32>
    %491 = arith.maximumf %489, %490 : vector<1x1xf32>
    %492 = arith.divf %484, %491 : vector<1x1xf32>
    %c0_164 = arith.constant 0 : index
    %c0_165 = arith.constant 0 : index
    %493 = vector.load %arg35[%c0_164, %c0_165] : memref<1x1xf32, #tpu.memory_space<vmem>>, vector<1x1xf32>
    tpu.vector_store %arg35[%c0_164, %c0_165], %492 {strides = array<i32>} : memref<1x1xf32, #tpu.memory_space<vmem>>, vector<1x1xf32>,
    return
  }
}

</mosaic_0001>

<bundles_post_ra>
// kernel: multi_discrete_policy_forward.1
= control target key start
LH: loop header
LB: loop body
LE: loop exit
PB: predicated region body
PF: predicated region fallthrough
CT: control target
= control target key end

     0   :  { %s7250_s6 = smov 1   ;;  %s7251_s10 = smov 2   ;;  %s8765_s0 = inlined_call_operand.smem [shape: u32[36], index: -1, kind: input, shape index: {}] }
   0x1   :  { %s7305_s5 = sld [smem:[%s8765_s0]]   ;;  %s7252_s14 = smov 3  }
   0x2   :  { %s7310_s9 = sld [smem:[%s8765_s0 + %s7250_s6]]   ;;  %s7253_s18 = smov 4  }
   0x3   :  { %s7315_s13 = sld [smem:[%s8765_s0 + %s7251_s10]]   ;;  %s7254_s22 = smov 5  }
   0x4   :  { %s7320_s17 = sld [smem:[%s8765_s0 + %s7252_s14]]   ;;  %s7255_s26 = smov 6  }
   0x5   :  { %s7325_s21 = sld [smem:[%s8765_s0 + %s7253_s18]]   ;;  %s7256_s30 = smov 7  }
   0x6   :  { %s7330_s25 = sld [smem:[%s8765_s0 + %s7254_s22]]   ;;  %s7257_s4 = smov 8  }
   0x7   :  { %s7335_s29 = sld [smem:[%s8765_s0 + %s7255_s26]]   ;;  %s7258_s10 = smov 9  }
   0x8   :  { %s7340_s3 = sld [smem:[%s8765_s0 + %s7256_s30]]   ;;  %s7259_s15 = smov 10  }
   0x9   :  { %s7345_s8 = sld [smem:[%s8765_s0 + %s7257_s4]]   ;;  %s7260_s20 = smov 11  }
   0xa   :  { %s7350_s14 = sld [smem:[%s8765_s0 + %s7258_s10]]   ;;  %s7261_s26 = smov 12  }
   0xb   :  { %s7355_s19 = sld [smem:[%s8765_s0 + %s7259_s15]]   ;;  %s7262_s1 = smov 13  }
   0xc   :  { %s7360_s24 = sld [smem:[%s8765_s0 + %s7260_s20]]   ;;  %s7263_s7 = smov 14  }
   0xd   :  { %s7365_s30 = sld [smem:[%s8765_s0 + %s7261_s26]]   ;;  %s7264_s15 = smov 15  }
   0xe   :  { %s7370_s6 = sld [smem:[%s8765_s0 + %s7262_s1]]   ;;  %s7265_s22 = smov 16  }
   0xf   :  { %s7375_s12 = sld [smem:[%s8765_s0 + %s7263_s7]]   ;;  %s7266_s28 = smov 17  }
  0x10   :  { %s7380_s20 = sld [smem:[%s8765_s0 + %s7264_s15]]   ;;  %s7267_s7 = smov 18  }
  0x11   :  { %s7385_s27 = sld [smem:[%s8765_s0 + %s7265_s22]]   ;;  %s7268_s15 = smov 19  }
  0x12   :  { %s7390_s4 = sld [smem:[%s8765_s0 + %s7266_s28]]   ;;  %s7269_s22 = smov 20  }
  0x13   :  { %s7270_s28 = smov 21  }
  0x14   :  { %8774 = sst [smem:[#allocation6_spill]] %s7370_s6 }
  0x15   :  { %s7395_s6 = sld [smem:[%s8765_s0 + %s7267_s7]]   ;;  %s7271_s7 = smov 22  }
  0x16   :  { %8775 = sst [smem:[#allocation7_spill]] %s7380_s20 }
  0x17   :  { %8776 = sst [smem:[#allocation8_spill]] %s7385_s27 }
  0x18   :  { %8777 = sst [smem:[#allocation9_spill]] %s7390_s4 }
  0x19   :  { %s7400_s20 = sld [smem:[%s8765_s0 + %s7268_s15]]   ;;  %s7272_s15 = smov 23  }
  0x1a   :  { %s7405_s27 = sld [smem:[%s8765_s0 + %s7269_s22]]   ;;  %s7273_s22 = smov 24  }
  0x1b   :  { %8778 = sst [smem:[#allocation10_spill]] %s7395_s6 }
  0x1c   :  { %s7410_s4 = sld [smem:[%s8765_s0 + %s7270_s28]]   ;;  %s7274_s28 = smov 25  }
  0x1d   :  { %s7415_s6 = sld [smem:[%s8765_s0 + %s7271_s7]]   ;;  %s7275_s7 = smov 26  }
  0x1f   :  { %8779 = sst [smem:[#allocation11_spill]] %s7400_s20 }
  0x20   :  { %8780 = sst [smem:[#allocation12_spill]] %s7405_s27 }
  0x21   :  { %s7420_s20 = sld [smem:[%s8765_s0 + %s7272_s15]]   ;;  %s7276_s15 = smov 27  }
  0x22   :  { %8781 = sst [smem:[#allocation13_spill]] %s7410_s4 }
  0x23   :  { %8782 = sst [smem:[#allocation14_spill]] %s7415_s6 }
  0x24   :  { %s7425_s27 = sld [smem:[%s8765_s0 + %s7273_s22]]   ;;  %s7277_s22 = smov 28  }
  0x25   :  { %s7430_s4 = sld [smem:[%s8765_s0 + %s7274_s28]]   ;;  %s7278_s28 = smov 29  }
  0x26   :  { %s7435_s6 = sld [smem:[%s8765_s0 + %s7275_s7]]   ;;  %s7279_s7 = smov 30  }
  0x27   :  { %8783 = sst [smem:[#allocation15_spill]] %s7420_s20 }
  0x28   :  { %s7440_s20 = sld [smem:[%s8765_s0 + %s7276_s15]]   ;;  %s7280_s15 = smov 31  }
  0x2a   :  { %8784 = sst [smem:[#allocation16_spill]] %s7425_s27 }
  0x2b   :  { %8785 = sst [smem:[#allocation17_spill]] %s7430_s4 }
  0x2c   :  { %8786 = sst [smem:[#allocation18_spill]] %s7435_s6 }
  0x2d   :  { %s7445_s27 = sld [smem:[%s8765_s0 + %s7277_s22]]   ;;  %s7281_s22 = smov 32  }
  0x2e   :  { %8787 = sst [smem:[#allocation19_spill]] %s7440_s20 }
  0x2f   :  { %s7450_s4 = sld [smem:[%s8765_s0 + %s7278_s28]]   ;;  %s7282_s28 = smov 33  }
  0x30   :  { %s7455_s6 = sld [smem:[%s8765_s0 + %s7279_s7]]   ;;  %s7283_s7 = smov 34  }
  0x31   :  { %s7460_s20 = sld [smem:[%s8765_s0 + %s7280_s15]]   ;;  %s7284_s15 = smov 35  }
  0x33   :  { %8788 = sst [smem:[#allocation20_spill]] %s7445_s27 }
  0x34   :  { %s7465_s27 = sld [smem:[%s8765_s0 + %s7281_s22]]  }
  0x35   :  { %8789 = sst [smem:[#allocation21_spill]] %s7450_s4 }
  0x36   :  { %8790 = sst [smem:[#allocation22_spill]] %s7455_s6 }
  0x37   :  { %8791 = sst [smem:[#allocation23_spill]] %s7460_s20 }
  0x38   :  { %s7470_s4 = sld [smem:[%s8765_s0 + %s7282_s28]]  }
  0x39   :  { %s7475_s6 = sld [smem:[%s8765_s0 + %s7283_s7]]  }
  0x3a   :  { %s7480_s20 = sld [smem:[%s8765_s0 + %s7284_s15]]  }
  0x3b   :  { %v148_v0 = vld [vmem:[%s7305_s5 + $0x8] sm:$0xff]  ;;  %v147_v1 = vld [vmem:[%s7305_s5] sm:$0xff]  ;;  %v7285_v2 = vmov 0   ;;  %vm291_vm0 = vcmask 1041408   ;;  %v264_v5 = vld [vmem:[%s7325_s21 + $0x18] sm:$0xff] }
  0x3c   :  { %7024 = vset.pattern.permute.xlu1 %v7285_v2  ;;  %7023 = vset.pattern.permute.xlu0 %v7285_v2  ;;  %v156_v3 = vld [vmem:[%s7310_s9 + $0x8] sm:$0xff]  ;;  %v155_v4 = vld [vmem:[%s7310_s9] sm:$0xff]  ;;  %v263_v6 = vld [vmem:[%s7325_s21 + $0x10] sm:$0xff] }
  0x3d   :  { %169 = vperm.xlu1 %7024, %v148_v0   ;;  %166 = vperm.xlu0 %7023, %v147_v1   ;;  %v265_v7 = vld [vmem:[%s7330_s25] sm:$0x3]  ;;  %v157_v8 = vld [vmem:[%s7310_s9 + $0x10] sm:$0xff] }
  0x3e   :  { %v149_v9 = vld [vmem:[%s7305_s5 + $0x10] sm:$0xff]  ;;  %6539 = vmatprep.subr.mxu1 %v264_v5  ;;  %6525 = vmatprep.subr.msk.mxu0 %vm291_vm0, %v265_v7 }
  0x41   :  { %217 = vperm.xlu1 %7024, %v156_v3   ;;  %214 = vperm.xlu0 %7023, %v155_v4  }
  0x42   :  { %76 = vsyncpa [#allocation4], 0  ;;  %6540 = vmatpush3.msra.mxu1 %v264_v5  ;;  %6526 = vmatpush3.msk.msra.mxu0 %vm291_vm0, %v265_v7  ;;  %v262_v10 = vld [vmem:[%s7325_s21 + $0x8] sm:$0xff]  ;;  %v158_v11 = vld [vmem:[%s7310_s9 + $0x18] sm:$0xff]  ;;  %v163_v22 = vlaneseq  ;;  %vm400_vm1 = vcmask 261120   ;;  %v7286_v26 = vmov 0.0  }
  0x43   :  { %6541 = vmatprep.subr.mxu1 %v263_v6  ;;  %v150_v12 = vld [vmem:[%s7305_s5 + $0x18] sm:$0xff]  ;;  %v261_v13 = vld [vmem:[%s7325_s21] sm:$0xff]  ;;  %v160_v16 = vld [vmem:[%s7310_s9 + $0x28] sm:$0xff]  ;;  %vm266_vm4 = vcmask 15360   ;;  %s7288_s0 = smov 96   ;;  %s7294_s21 = smov 16  }
  0x44   :  { %6542 = vmatpush3.msra.mxu1 %v263_v6  ;;  %v159_v14 = vld [vmem:[%s7310_s9 + $0x20] sm:$0xff]  ;;  %v152_v17 = vld [vmem:[%s7305_s5 + $0x28] sm:$0xff]  ;;  %v161_v18 = vld [vmem:[%s7310_s9 + $0x30] sm:$0xff]  ;;  %v7504_v23 = vand.u32 127, %v163_v22  ;;  %s8792_s25 = sld [smem:[#allocation6_spill]]  ;;  %s7295_s10 = smov 32  }
  0x45   :  { %220 = vperm.xlu1 %7024, %v157_v8   ;;  %172 = vperm.xlu0 %7023, %v149_v9   ;;  %v151_v15 = vld [vmem:[%s7305_s5 + $0x20] sm:$0xff]  ;;  %v153_v19 = vld [vmem:[%s7305_s5 + $0x30] sm:$0xff]  ;;  %v162_v20 = vld [vmem:[%s7310_s9 + $0x38] sm:$0xff]  ;;  %s7290_s9 = smov 80   ;;  %s8802_s22 = sld [smem:[#allocation18_spill]] }
  0x46   :  { %6543 = vmatprep.subr.mxu1 %v262_v10  ;;  %v154_v21 = vld [vmem:[%s7305_s5 + $0x38] sm:$0xff]  ;;  %v531_v59 = vld [vmem:[%s7320_s17 + $0x8] sm:$0xff]  ;;  %v530_v63 = vld [vmem:[%s7320_s17] sm:$0xff]  ;;  %s7289_s5 = smov 64   ;;  %s8803_s23 = sld [smem:[#allocation20_spill]] }
  0x47   :  { %6544 = vmatpush3.msra.mxu1 %v262_v10  ;;  %v532_v9 = vld [vmem:[%s7320_s17 + $0x10] sm:$0xff]  ;;  %s8804_s26 = sld [smem:[#allocation15_spill]]  ;;  %s7296_s15 = smov [#allocation3]  }
  0x48   :  { %6545 = vmatprep.subr.mxu1 %v261_v13  ;;  %s8805_s28 = sld [smem:[#allocation19_spill]]  ;;  %s6101_s16 = sshll.u32 %s7296_s15, 4  ;;  %s6102_s16 = int_to_ptr.vmem [resolvable:$true] %s6101_s16 }
  0x49   :  { %223 = vperm.xlu1 %7024, %v158_v11   ;;  %175 = vperm.xlu0 %7023, %v150_v12   ;;  %v533_v12 = vld [vmem:[%s7320_s17 + $0x18] sm:$0xff]  ;;  %s8806_s1 = sld [smem:[#allocation17_spill]]  ;;  %s7228_s18 = scalar_lea.vmem %s6102_s16, 16 }
  0x4a   :  { %6546 = vmatpush3.msra.mxu1 %v261_v13  ;;  %s8807_s2 = sld [smem:[#allocation21_spill]]  ;;  %p7229_p0 = scmp.ne.s32.totalorder %s6102_s16, %s7228_s18 }
  0x4b   :  { %s8808_s7 = sld [smem:[#allocation22_spill]]  ;;  %p7233_p1 = scmp.lt.s32.totalorder %s6102_s16, %s6102_s16 }
  0x4c   :  { %s8809_s11 = sld [smem:[#allocation23_spill]] }
  0x4d   :  { %226 = vperm.xlu1 %7024, %v159_v14   ;;  %178 = vperm.xlu0 %7023, %v151_v15  }
  0x51   :  { %229 = vperm.xlu1 %7024, %v160_v16   ;;  %181 = vperm.xlu0 %7023, %v152_v17  }
  0x55   :  { %232 = vperm.xlu1 %7024, %v161_v18   ;;  %184 = vperm.xlu0 %7023, %v153_v19   ;;  %v535_v18 = vld [vmem:[%s7320_s17 + $0x28] sm:$0xff] }
  0x59   :  { %235 = vperm.xlu1 %7024, %v162_v20   ;;  %187 = vperm.xlu0 %7023, %v154_v21  }
  0xb8   :  { %v170_v24 = vpop.permute.xlu1 %169  ;;  %v167_v25 = vpop.permute.xlu0 %166 }
  0xb9   :  { %vm190_vm2 = vcmp.eq.s32.totalorder %v7504_v23, %v170_v24  ;;  %vm189_vm3 = vcmp.eq.s32.totalorder %v7504_v23, %v167_v25  ;;  %v534_v24 = vld [vmem:[%s7320_s17 + $0x20] sm:$0xff] }
  0xba   :  { %v6145_v27 = vsel %vm190_vm2, 1.0, %v7286_v26  ;;  %v6144_v28 = vsel %vm189_vm3, 1.0, %v7286_v26 }
  0xbb   :  { %6547 = vmatprep.mubr.msk.f32.mxu1 %vm400_vm1, %v6144_v28 }
  0xbc   :  { %v218_v29 = vpop.permute.xlu1 %217  ;;  %6548 = vmatmul.mubr.msk.f32.vlgmr.msra.gmra.mxu1 %vm400_vm1, %v6145_v27  ;;  %v215_v30 = vpop.permute.xlu0 %214 }
  0xbd   :  { %vm238_vm5 = vcmp.eq.s32.totalorder %v7504_v23, %v218_v29  ;;  %vm237_vm6 = vcmp.eq.s32.totalorder %v7504_v23, %v215_v30 }
  0xbe   :  { %v6153_v31 = vsel %vm238_vm5, 1.0, %v7286_v26  ;;  %v6152_v32 = vsel %vm237_vm6, 1.0, %v7286_v26  ;;  %vm875_vm5 = vcmask 130048   ;;  %vm1545_vm6 = vcmask 64512  }
  0xbf   :  { %6527 = vmatprep.mubr.msk.f32.mxu0 %vm266_vm4, %v6152_v32 }
  0xc0   :  { %v221_v33 = vpop.permute.xlu1 %220  ;;  %6528 = vmatmul.mubr.msk.f32.vlgmr.msra.gmra.mxu0 %vm266_vm4, %v6153_v31  ;;  %v173_v34 = vpop.permute.xlu0 %172 }
  0xc1   :  { %vm239_vm7 = vcmp.eq.s32.totalorder %v7504_v23, %v221_v33  ;;  %vm191_vm8 = vcmp.eq.s32.totalorder %v7504_v23, %v173_v34  ;;  %v537_v34 = vld [vmem:[%s7320_s17 + $0x38] sm:$0xff] }
  0xc2   :  { %v6154_v35 = vsel %vm239_vm7, 1.0, %v7286_v26  ;;  %v6146_v36 = vsel %vm191_vm8, 1.0, %v7286_v26  ;;  %vm4127_vm7 = vcmask 523264   ;;  %vm4419_vm8 = vcmask 1041409  }
  0xc3   :  { %6530 = vmatprep.mubr.msk.f32.mxu0 %vm266_vm4, %v6154_v35  ;;  %6550 = vmatprep.mubr.msk.f32.mxu1 %vm400_vm1, %v6146_v36 }
  0xc4   :  { %v224_v37 = vpop.permute.xlu1 %223  ;;  %v176_v38 = vpop.permute.xlu0 %175 }
  0xc5   :  { %vm240_vm9 = vcmp.eq.s32.totalorder %v7504_v23, %v224_v37  ;;  %vm192_vm10 = vcmp.eq.s32.totalorder %v7504_v23, %v176_v38  ;;  %v536_v38 = vld [vmem:[%s7320_s17 + $0x30] sm:$0xff]  ;;  %s7291_s17 = smov 112  }
  0xc6   :  { %v6155_v39 = vsel %vm240_vm9, 1.0, %v7286_v26  ;;  %v6147_v40 = vsel %vm192_vm10, 1.0, %v7286_v26  ;;  %vm4422_vm9 = vcmask 1042434   ;;  %vm4425_vm10 = vcmask 1043459  }
  0xc7   :  { %6531 = vmatmul.mubr.msk.f32.gmra.mxu0 %vm266_vm4, %v6155_v39  ;;  %6551 = vmatmul.mubr.msk.f32.gmra.mxu1 %vm400_vm1, %v6147_v40 }
  0xc8   :  { %v227_v41 = vpop.permute.xlu1 %226  ;;  %v179_v42 = vpop.permute.xlu0 %178 }
  0xc9   :  { %vm241_vm11 = vcmp.eq.s32.totalorder %v7504_v23, %v227_v41  ;;  %vm193_vm12 = vcmp.eq.s32.totalorder %v7504_v23, %v179_v42 }
  0xca   :  { %v6156_v43 = vsel %vm241_vm11, 1.0, %v7286_v26  ;;  %v6148_v44 = vsel %vm193_vm12, 1.0, %v7286_v26  ;;  %vm4428_vm11 = vcmask 1044484   ;;  %vm4431_vm12 = vcmask 1045509  }
  0xcb   :  { %6533 = vmatprep.mubr.msk.f32.mxu0 %vm266_vm4, %v6156_v43  ;;  %6553 = vmatprep.mubr.msk.f32.mxu1 %vm400_vm1, %v6148_v44 }
  0xcc   :  { %v230_v45 = vpop.permute.xlu1 %229  ;;  %v182_v46 = vpop.permute.xlu0 %181 }
  0xcd   :  { %vm242_vm13 = vcmp.eq.s32.totalorder %v7504_v23, %v230_v45  ;;  %vm194_vm14 = vcmp.eq.s32.totalorder %v7504_v23, %v182_v46 }
  0xce   :  { %v6157_v47 = vsel %vm242_vm13, 1.0, %v7286_v26  ;;  %v6149_v48 = vsel %vm194_vm14, 1.0, %v7286_v26  ;;  %vm4434_vm13 = vcmask 1046534   ;;  %vm4437_vm14 = vcmask 1047559  }
  0xcf   :  { %6534 = vmatmul.mubr.msk.f32.gmra.mxu0 %vm266_vm4, %v6157_v47  ;;  %6554 = vmatmul.mubr.msk.f32.gmra.mxu1 %vm400_vm1, %v6149_v48 }
  0xd0   :  { %v233_v49 = vpop.permute.xlu1 %232  ;;  %v185_v50 = vpop.permute.xlu0 %184 }
  0xd1   :  { %vm243_vm15 = vcmp.eq.s32.totalorder %v7504_v23, %v233_v49  ;;  %vm195_vm0 = vcmp.eq.s32.totalorder %v7504_v23, %v185_v50 }
  0xd2   :  { %v6158_v51 = vsel %vm243_vm15, 1.0, %v7286_v26  ;;  %v6150_v52 = vsel %vm195_vm0, 1.0, %v7286_v26 }
  0xd3   :  { %6536 = vmatprep.mubr.msk.f32.mxu0 %vm266_vm4, %v6158_v51  ;;  %6556 = vmatprep.mubr.msk.f32.mxu1 %vm400_vm1, %v6150_v52 }
  0xd4   :  { %v236_v53 = vpop.permute.xlu1 %235  ;;  %v188_v54 = vpop.permute.xlu0 %187 }
  0xd5   :  { %vm244_vm2 = vcmp.eq.s32.totalorder %v7504_v23, %v236_v53  ;;  %vm196_vm3 = vcmp.eq.s32.totalorder %v7504_v23, %v188_v54 }
  0xd6   :  { %v6159_v55 = vsel %vm244_vm2, 1.0, %v7286_v26  ;;  %v6151_v56 = vsel %vm196_vm3, 1.0, %v7286_v26 }
  0xd7   :  { %6537 = vmatmul.mubr.msk.f32.gmra.mxu0 %vm266_vm4, %v6159_v55  ;;  %6557 = vmatmul.mubr.msk.f32.gmra.mxu1 %vm400_vm1, %v6151_v56  ;;  %vm7287_vm4 = vmmov 0  }
 0x17c   :  { %v6549_v57 = vpop.f32.mrf.mxu1 }
 0x17e   :  { %v491_v61 = vpop.f32.mrf.mxu1 }
 0x180   :  { %v6529_v58 = vpop.f32.mrf.mxu0 }
 0x181   :  { %v497_v60 = vadd.f32 %v6549_v57, %v6529_v58 }
 0x182   :  { %v361_v62 = vpop.f32.mrf.mxu0 }
 0x183   :  { %v492_v0 = vadd.f32 %v491_v61, %v361_v62  ;;  %v539_v1 = vadd.f32 %v531_v59, %v497_v60 }
 0x185   :  { %v551_v2 = vsel %vm400_vm1, %v539_v1, 0.0  ;;  %v538_v3 = vadd.f32 %v530_v63, %v492_v0 }
 0x186   :  { %552 = vadd.xlane.f32.xlu1 %v551_v2 }
 0x187   :  { %v6532_v4 = vpop.f32.mrf.mxu0  ;;  %v6552_v5 = vpop.f32.mrf.mxu1  ;;  %v548_v6 = vsel %vm400_vm1, %v538_v3, 0.0 }
 0x188   :  { %549 = vadd.xlane.f32.xlu0 %v548_v6  ;;  %v507_v10 = vadd.f32 %v6552_v5, %v6532_v4 }
 0x189   :  { %v371_v7 = vpop.f32.mrf.mxu0  ;;  %v501_v8 = vpop.f32.mrf.mxu1 }
 0x18a   :  { %v502_v11 = vadd.f32 %v501_v8, %v371_v7  ;;  %v541_v15 = vadd.f32 %v533_v12, %v507_v10 }
 0x18c   :  { %v540_v13 = vadd.f32 %v532_v9, %v502_v11  ;;  %v557_v27 = vsel %vm400_vm1, %v541_v15, 0.0 }
 0x18e   :  { %v554_v14 = vsel %vm400_vm1, %v540_v13, 0.0 }
 0x18f   :  { %v6535_v16 = vpop.f32.mrf.mxu0  ;;  %555 = vadd.xlane.f32.xlu0 %v554_v14  ;;  %v6555_v17 = vpop.f32.mrf.mxu1 }
 0x190   :  { %v517_v19 = vadd.f32 %v6555_v17, %v6535_v16 }
 0x191   :  { %v381_v20 = vpop.f32.mrf.mxu0  ;;  %v511_v21 = vpop.f32.mrf.mxu1 }
 0x192   :  { %v512_v25 = vadd.f32 %v511_v21, %v381_v20  ;;  %v543_v28 = vadd.f32 %v535_v18, %v517_v19  ;;  %v684_v20 = vld [vmem:[%s7345_s8 + $0x18] sm:$0xff]  ;;  %v683_v21 = vld [vmem:[%s7345_s8 + $0x10] sm:$0xff] }
 0x193   :  { %558 = vadd.xlane.f32.xlu0 %v557_v27  ;;  %6559 = vmatprep.subr.mxu0 %v684_v20 }
 0x194   :  { %v542_v29 = vadd.f32 %v534_v24, %v512_v25  ;;  %v563_v30 = vsel %vm400_vm1, %v543_v28, 0.0  ;;  %6964 = vmatprep.subr.mxu1 %v684_v20  ;;  %6560 = vmatpush3.msra.mxu0 %v684_v20  ;;  %v682_v24 = vld [vmem:[%s7345_s8 + $0x8] sm:$0xff]  ;;  %v681_v25 = vld [vmem:[%s7345_s8] sm:$0xff]  ;;  %s8795_s8 = sld [smem:[#allocation9_spill]] }
 0x195   :  { %6968 = vmatpush3.msra.mxu1 %v684_v20  ;;  %6561 = vmatprep.subr.mxu0 %v683_v21 }
 0x196   :  { %v560_v31 = vsel %vm400_vm1, %v542_v29, 0.0  ;;  %6965 = vmatprep.subr.mxu1 %v683_v21  ;;  %6562 = vmatpush3.msra.mxu0 %v683_v21 }
 0x197   :  { %v6538_v32 = vpop.f32.mrf.mxu0  ;;  %564 = vadd.xlane.f32.xlu0 %v563_v30  ;;  %561 = vadd.xlane.f32.xlu1 %v560_v31  ;;  %v6558_v33 = vpop.f32.mrf.mxu1 }
 0x198   :  { %v527_v35 = vadd.f32 %v6558_v33, %v6538_v32  ;;  %6969 = vmatpush3.msra.mxu1 %v683_v21  ;;  %6563 = vmatprep.subr.mxu0 %v682_v24 }
 0x199   :  { %v391_v36 = vpop.f32.mrf.mxu0  ;;  %v521_v37 = vpop.f32.mrf.mxu1  ;;  %6966 = vmatprep.subr.mxu1 %v682_v24  ;;  %6564 = vmatpush3.msra.mxu0 %v682_v24 }
 0x19a   :  { %v522_v39 = vadd.f32 %v521_v37, %v391_v36  ;;  %v545_v40 = vadd.f32 %v537_v34, %v527_v35  ;;  %6970 = vmatpush3.msra.mxu1 %v682_v24  ;;  %6565 = vmatprep.subr.mxu0 %v681_v25 }
 0x19b   :  { %6967 = vmatprep.subr.mxu1 %v681_v25  ;;  %6566 = vmatpush3.msra.mxu0 %v681_v25 }
 0x19c   :  { %v569_v41 = vsel %vm400_vm1, %v545_v40, 0.0  ;;  %v544_v42 = vadd.f32 %v536_v38, %v522_v39  ;;  %6971 = vmatpush3.msra.mxu1 %v681_v25  ;;  %6594 = vmatprep.subr.mxu0 %v7286_v26 }
 0x19d   :  { %570 = vadd.xlane.f32.xlu0 %v569_v41  ;;  %6579 = vmatprep.subr.mxu1 %v7286_v26 }
 0x19e   :  { %v566_v43 = vsel %vm400_vm1, %v544_v42, 0.0 }
 0x19f   :  { %567 = vadd.xlane.f32.xlu1 %v566_v43 }
 0x20f   :  { %v553_v44 = vpop.xlane.xlu1 %552 }
 0x210   :  { %v574_v45 = vmul.f32 0.03125, %v553_v44  ;;  %v6177_v44 = vld [vmem:[%s7335_s29] ss:$0 sm:$0xff]  ;;  %s8793_s29 = sld [smem:[#allocation8_spill]] }
 0x211   :  { %v550_v46 = vpop.xlane.xlu0 %549 }
 0x212   :  { %v7570_v47 = vsub.f32 %v539_v1, %v574_v45  ;;  %v573_v48 = vmul.f32 0.03125, %v550_v46 }
 0x214   :  { %v7572_v49 = vsub.f32 %v538_v3, %v573_v48  ;;  %v590_v50 = vmul.f32 %v7570_v47, %v7570_v47 }
 0x216   :  { %v600_v51 = vsel %vm400_vm1, %v590_v50, 0.0  ;;  %v589_v52 = vmul.f32 %v7572_v49, %v7572_v49 }
 0x217   :  { %601 = vadd.xlane.f32.xlu0 %v600_v51 }
 0x218   :  { %v556_v53 = vpop.xlane.xlu0 %555  ;;  %v597_v54 = vsel %vm400_vm1, %v589_v52, 0.0 }
 0x219   :  { %v575_v55 = vmul.f32 0.03125, %v556_v53  ;;  %598 = vadd.xlane.f32.xlu1 %v597_v54  ;;  %v6178_v54 = vld [vmem:[%s7340_s3] ss:$0 sm:$0xff]  ;;  %s8794_s3 = sld [smem:[#allocation7_spill]] }
 0x21b   :  { %v7580_v56 = vsub.f32 %v540_v13, %v575_v55 }
 0x21c   :  { %v559_v57 = vpop.xlane.xlu0 %558 }
 0x21d   :  { %v576_v58 = vmul.f32 0.03125, %v559_v57  ;;  %v591_v59 = vmul.f32 %v7580_v56, %v7580_v56 }
 0x21f   :  { %v7584_v60 = vsub.f32 %v541_v15, %v576_v58  ;;  %v603_v61 = vsel %vm400_vm1, %v591_v59, 0.0 }
 0x220   :  { %v562_v62 = vpop.xlane.xlu1 %561  ;;  %604 = vadd.xlane.f32.xlu1 %v603_v61  ;;  %v565_v63 = vpop.xlane.xlu0 %564 }
 0x221   :  { %v577_v0 = vmul.f32 0.03125, %v562_v62  ;;  %v578_v1 = vmul.f32 0.03125, %v565_v63  ;;  %v592_v2 = vmul.f32 %v7584_v60, %v7584_v60 }
 0x223   :  { %v7589_v3 = vsub.f32 %v542_v29, %v577_v0  ;;  %v7591_v4 = vsub.f32 %v543_v28, %v578_v1  ;;  %v606_v5 = vsel %vm400_vm1, %v592_v2, 0.0 }
 0x224   :  { %607 = vadd.xlane.f32.xlu0 %v606_v5 }
 0x225   :  { %v593_v6 = vmul.f32 %v7589_v3, %v7589_v3  ;;  %v594_v7 = vmul.f32 %v7591_v4, %v7591_v4 }
 0x226   :  { %v571_v8 = vpop.xlane.xlu0 %570 }
 0x227   :  { %v580_v9 = vmul.f32 0.03125, %v571_v8  ;;  %v609_v10 = vsel %vm400_vm1, %v593_v6, 0.0  ;;  %v612_v11 = vsel %vm400_vm1, %v594_v7, 0.0 }
 0x228   :  { %v568_v12 = vpop.xlane.xlu1 %567  ;;  %610 = vadd.xlane.f32.xlu1 %v609_v10  ;;  %613 = vadd.xlane.f32.xlu0 %v612_v11 }
 0x229   :  { %v7600_v13 = vsub.f32 %v545_v40, %v580_v9  ;;  %v579_v14 = vmul.f32 0.03125, %v568_v12 }
 0x22b   :  { %v7602_v15 = vsub.f32 %v544_v42, %v579_v14  ;;  %v596_v16 = vmul.f32 %v7600_v13, %v7600_v13 }
 0x22d   :  { %v618_v17 = vsel %vm400_vm1, %v596_v16, 0.0  ;;  %v595_v18 = vmul.f32 %v7602_v15, %v7602_v15 }
 0x22e   :  { %619 = vadd.xlane.f32.xlu0 %v618_v17 }
 0x22f   :  { %v615_v19 = vsel %vm400_vm1, %v595_v18, 0.0 }
 0x230   :  { %616 = vadd.xlane.f32.xlu1 %v615_v19 }
 0x2a0   :  { %v602_v27 = vpop.xlane.xlu0 %601 }
 0x2a1   :  { %v622_v28 = vmul.f32 0.03125, %v602_v27 }
 0x2a2   :  { %v599_v29 = vpop.xlane.xlu1 %598 }
 0x2a3   :  { %v630_v30 = vadd.f32 1e-12, %v622_v28  ;;  %v621_v31 = vmul.f32 0.03125, %v599_v29 }
 0x2a5   :  { %7026 = vrsqrt.f32 %v630_v30  ;;  %v629_v32 = vadd.f32 1e-12, %v621_v31 }
 0x2a7   :  { %7028 = vrsqrt.f32 %v629_v32 }
 0x2a9   :  { %v605_v33 = vpop.xlane.xlu1 %604 }
 0x2aa   :  { %v623_v34 = vmul.f32 0.03125, %v605_v33 }
 0x2ac   :  { %v631_v35 = vadd.f32 1e-12, %v623_v34 }
 0x2ad   :  { %v608_v36 = vpop.xlane.xlu0 %607 }
 0x2ae   :  { %7030 = vrsqrt.f32 %v631_v35  ;;  %v624_v37 = vmul.f32 0.03125, %v608_v36 }
 0x2b0   :  { %v632_v38 = vadd.f32 1e-12, %v624_v37 }
 0x2b1   :  { %v611_v39 = vpop.xlane.xlu1 %610  ;;  %v614_v40 = vpop.xlane.xlu0 %613 }
 0x2b2   :  { %v7027_v41 = vpop.eup %7026  ;;  %7032 = vrsqrt.f32 %v632_v38  ;;  %v625_v42 = vmul.f32 0.03125, %v611_v39  ;;  %v626_v43 = vmul.f32 0.03125, %v614_v40 }
 0x2b3   :  { %v646_v45 = vmul.f32 %v7027_v41, %v7570_v47 }
 0x2b4   :  { %v7029_v46 = vpop.eup %7028  ;;  %v633_v48 = vadd.f32 1e-12, %v625_v42  ;;  %v634_v50 = vadd.f32 1e-12, %v626_v43 }
 0x2b5   :  { %v645_v51 = vmul.f32 %v7029_v46, %v7572_v49  ;;  %v660_v52 = vmul.f32 %v6177_v44, %v646_v45 }
 0x2b6   :  { %7034 = vrsqrt.f32 %v633_v48 }
 0x2b7   :  { %7036 = vrsqrt.f32 %v634_v50  ;;  %v620_v53 = vpop.xlane.xlu0 %619  ;;  %v659_v55 = vmul.f32 %v6177_v44, %v645_v51  ;;  %v7622_v63 = vadd.f32 %v6178_v54, %v660_v52 }
 0x2b8   :  { %v628_v57 = vmul.f32 0.03125, %v620_v53  ;;  %v7292_v53 = vmov 1966171168  }
 0x2b9   :  { %v617_v58 = vpop.xlane.xlu1 %616  ;;  %v7620_v59 = vadd.f32 %v6178_v54, %v659_v55 }
 0x2ba   :  { %v636_v61 = vadd.f32 1e-12, %v628_v57  ;;  %v627_v62 = vmul.f32 0.03125, %v617_v58  ;;  %v828_v57 = vshrl.u32 %v163_v22, 7 }
 0x2bb   :  { %v7031_v47 = vpop.eup %7030  ;;  %6567 = vmatprep.mubr.msk.f32.mxu0 %vm400_vm1, %v7620_v59 }
 0x2bc   :  { %7038 = vrsqrt.f32 %v636_v61  ;;  %v635_v49 = vadd.f32 1e-12, %v627_v62  ;;  %6568 = vmatmul.mubr.msk.f32.vlgmr.msra.gmra.mxu0 %vm400_vm1, %v7622_v63  ;;  %v647_v0 = vmul.f32 %v7031_v47, %v7580_v56  ;;  %v821_v61 = vld [vmem:[%s7315_s13] sm:$0xff]  ;;  %s7293_s13 = smov 48  }
 0x2bd   :  { %6596 = vmatprep.mubr.msk.f32.mxu0 %vm7287_vm4, %v7286_v26 }
 0x2be   :  { %7040 = vrsqrt.f32 %v635_v49  ;;  %v661_v1 = vmul.f32 %v6177_v44, %v647_v0  ;;  %v1499_v49 = vsub.s32 0, %v828_v57 }
 0x2bf   :  { %v7033_v2 = vpop.eup %7032 }
 0x2c0   :  { %v648_v5 = vmul.f32 %v7033_v2, %v7584_v60  ;;  %v7630_v6 = vadd.f32 %v6178_v54, %v661_v1 }
 0x2c2   :  { %v662_v7 = vmul.f32 %v6177_v44, %v648_v5  ;;  %6570 = vmatprep.mubr.msk.f32.mxu1 %vm400_vm1, %v7630_v6 }
 0x2c3   :  { %v7035_v8 = vpop.eup %7034 }
 0x2c4   :  { %v7037_v9 = vpop.eup %7036  ;;  %v7634_v10 = vadd.f32 %v6178_v54, %v662_v7  ;;  %v649_v11 = vmul.f32 %v7035_v8, %v7589_v3  ;;  %v823_v8 = vcombine.high %v821_v61, %v821_v61 }
 0x2c5   :  { %v650_v12 = vmul.f32 %v7037_v9, %v7591_v4 }
 0x2c6   :  { %6571 = vmatmul.mubr.msk.f32.vlgmr.msra.gmra.mxu1 %vm400_vm1, %v7634_v10  ;;  %v663_v56 = vmul.f32 %v6177_v44, %v649_v11 }
 0x2c7   :  { %v664_v14 = vmul.f32 %v6177_v44, %v650_v12 }
 0x2c8   :  { %v7640_v60 = vadd.f32 %v6178_v54, %v663_v56 }
 0x2c9   :  { %v7039_v16 = vpop.eup %7038  ;;  %v7642_v17 = vadd.f32 %v6178_v54, %v664_v14 }
 0x2ca   :  { %6573 = vmatprep.mubr.msk.f32.mxu1 %vm400_vm1, %v7640_v60  ;;  %v652_v18 = vmul.f32 %v7039_v16, %v7600_v13  ;;  %v6179_v13 = vld [vmem:[%s7350_s14] ss:$0 sm:$0xff]  ;;  %s8796_s14 = sld [smem:[#allocation12_spill]] }
 0x2cb   :  { %v7041_v19 = vpop.eup %7040  ;;  %6574 = vmatmul.mubr.msk.f32.gmra.mxu1 %vm400_vm1, %v7642_v17 }
 0x2cc   :  { %v651_v3 = vmul.f32 %v7041_v19, %v7602_v15  ;;  %v666_v4 = vmul.f32 %v6177_v44, %v652_v18 }
 0x2ce   :  { %v665_v20 = vmul.f32 %v6177_v44, %v651_v3  ;;  %v7652_v24 = vadd.f32 %v6178_v54, %v666_v4 }
 0x2d0   :  { %v7650_v21 = vadd.f32 %v6178_v54, %v665_v20  ;;  %v825_v54 = vunpack.c.l.s4 %v7292_v53 }
 0x2d2   :  { %6576 = vmatprep.mubr.msk.f32.mxu1 %vm400_vm1, %v7650_v21  ;;  %v826_v55 = vunpack.c.0.s8 %v825_v54 }
 0x2d3   :  { %6577 = vmatmul.mubr.msk.f32.gmra.mxu1 %vm400_vm1, %v7652_v24 }
 0x2d4   :  { %6581 = vmatprep.mubr.msk.f32.mxu1 %vm7287_vm4, %v7286_v26  ;;  %v829_v58 = vsub.s32 %v826_v55, %v828_v57 }
 0x2d6   :  { %v830_v62 = vrot.slane %v821_v61, %v829_v58  ;;  %v837_v16 = vrot.slane %v823_v8, %v829_v58 }
 0x2d8   :  { %v846_v47 = vrot.slane %v830_v62, %v829_v58  ;;  %v838_v0 = vcombine.high %v830_v62, %v830_v62  ;;  %v839_v20 = vcombine.high %v837_v16, %v837_v16 }
 0x2da   :  { %v7763_v1 = vrot.slane %v846_v47, %v1499_v49  ;;  %v860_v2 = vrot.slane %v838_v0, %v829_v58 }
 0x2dc   :  { %v7768_v12 = vrot.slane %v860_v2, %v1499_v49  ;;  %v870_v4 = vcombine.high %v860_v2, %v860_v2 }
 0x37c   :  { %v6569_v15 = vpop.f32.mrf.mxu0 }
 0x37d   :  { %v7663_v25 = vadd.f32 %v6569_v15, %v6179_v13  ;;  %v853_v15 = vrot.slane %v837_v16, %v829_v58 }
 0x37e   :  { %v782_v27 = vpop.f32.mrf.mxu0 }
 0x37f   :  { %v7665_v28 = vadd.f32 %v6179_v13, %v782_v27  ;;  %951 = vrot.lane.b32.xlu0 %v7663_v25, %s7288_s0 }
 0x381   :  { %873 = vrot.lane.b32.xlu1 %v7665_v28, %s7288_s0 }
 0x386   :  { %v6572_v29 = vpop.f32.mrf.mxu1 }
 0x387   :  { %v7675_v33 = vadd.f32 %v6572_v29, %v6179_v13  ;;  %v7777_v29 = vrot.slane %v870_v4, %v1499_v49 }
 0x388   :  { %v792_v30 = vpop.f32.mrf.mxu1 }
 0x389   :  { %v7671_v31 = vadd.f32 %v6179_v13, %v792_v30  ;;  %v867_v30 = vrot.slane %v839_v20, %v829_v58 }
 0x38b   :  { %1028 = vrot.lane.b32.xlu1 %v7671_v31, %s7288_s0  ;;  %v6575_v32 = vpop.f32.mrf.mxu1  ;;  %v871_v57 = vcombine.high %v867_v30, %v867_v30 }
 0x38c   :  { %v7683_v36 = vadd.f32 %v6575_v32, %v6179_v13 }
 0x38d   :  { %v802_v34 = vpop.f32.mrf.mxu1 }
 0x38e   :  { %v7677_v35 = vadd.f32 %v6179_v13, %v802_v34  ;;  %v7779_v34 = vrot.slane %v853_v15, %v1499_v49 }
 0x38f   :  { %1105 = vrot.lane.b32.xlu1 %v7675_v33, %s7288_s0 }
 0x390   :  { %1182 = vrot.lane.b32.xlu0 %v7677_v35, %s7288_s0 }
 0x393   :  { %1259 = vrot.lane.b32.xlu1 %v7683_v36, %s7288_s0  ;;  %v6578_v37 = vpop.f32.mrf.mxu1 }
 0x394   :  { %v7687_v38 = vadd.f32 %v6578_v37, %v6179_v13  ;;  %v868_v37 = vcombine.high %v846_v47, %v846_v47 }
 0x395   :  { %v812_v39 = vpop.f32.mrf.mxu1 }
 0x396   :  { %v7689_v40 = vadd.f32 %v6179_v13, %v812_v39 }
 0x397   :  { %1413 = vrot.lane.b32.xlu1 %v7687_v38, %s7288_s0 }
 0x398   :  { %1336 = vrot.lane.b32.xlu0 %v7689_v40, %s7288_s0 }
 0x39b   :  { %1634 = vrot.lane.b32.xlu1 %v7665_v28, %s7289_s5 }
 0x39c   :  { %1710 = vrot.lane.b32.xlu0 %v7663_v25, %s7289_s5 }
 0x39f   :  { %1786 = vrot.lane.b32.xlu1 %v7671_v31, %s7289_s5 }
 0x3a0   :  { %1938 = vrot.lane.b32.xlu0 %v7677_v35, %s7289_s5 }
 0x3a3   :  { %1862 = vrot.lane.b32.xlu1 %v7675_v33, %s7289_s5 }
 0x3a4   :  { %2244 = vrot.lane.b32.xlu0 %v7665_v28, %s7290_s9 }
 0x3a7   :  { %2014 = vrot.lane.b32.xlu1 %v7683_v36, %s7289_s5 }
 0x3a8   :  { %2242 = vrot.lane.b32.xlu0 %v7665_v28, %s7291_s17 }
 0x3ab   :  { %2166 = vrot.lane.b32.xlu1 %v7687_v38, %s7289_s5 }
 0x3ac   :  { %2090 = vrot.lane.b32.xlu0 %v7689_v40, %s7289_s5 }
 0x3af   :  { %2322 = vrot.lane.b32.xlu1 %v7663_v25, %s7290_s9 }
 0x3b3   :  { %2320 = vrot.lane.b32.xlu1 %v7663_v25, %s7291_s17 }
 0x3f1   :  { %v952_v42 = vpop.permute.xlu0 %951 }
 0x3f3   :  { %v874_v41 = vpop.permute.xlu1 %873 }
 0x3f4   :  { %6580 = vmatpush3.xpose.msk.msra.mxu1 %vm875_vm5, %v874_v41 }
 0x3f5   :  { %6584 = vmatprep.subr.mxu1 %v7286_v26 }
 0x3f7   :  { %6582 = vmatmul.mubr.msk.f32.vlgmr.msra.gmra.mxu1 %vm875_vm5, %v7665_v28 }
 0x3f8   :  { %6585 = vmatpush3.xpose.msk.msra.mxu1 %vm875_vm5, %v952_v42  ;;  %6586 = vmatprep.mubr.msk.f32.mxu1 %vm7287_vm4, %v7286_v26 }
 0x3f9   :  { %6589 = vmatprep.subr.mxu1 %v7286_v26 }
 0x3fb   :  { %6587 = vmatmul.mubr.msk.f32.vlgmr.msra.gmra.mxu1 %vm875_vm5, %v7663_v25 }
 0x3fc   :  { %6591 = vmatprep.mubr.msk.f32.mxu1 %vm7287_vm4, %v7286_v26 }
 0x3fd   :  { %v1029_v43 = vpop.permute.xlu1 %1028 }
 0x3fe   :  { %6590 = vmatpush3.xpose.msk.msra.mxu1 %vm875_vm5, %v1029_v43 }
 0x3ff   :  { %6599 = vmatprep.subr.mxu1 %v7286_v26 }
 0x401   :  { %v1106_v44 = vpop.permute.xlu1 %1105  ;;  %6592 = vmatmul.mubr.msk.f32.vlgmr.msra.gmra.mxu1 %vm875_vm5, %v7671_v31 }
 0x402   :  { %6595 = vmatpush3.xpose.msk.msra.mxu0 %vm875_vm5, %v1106_v44  ;;  %v1183_v45 = vpop.permute.xlu0 %1182  ;;  %6601 = vmatprep.mubr.msk.f32.mxu1 %vm7287_vm4, %v7286_v26 }
 0x403   :  { %6600 = vmatpush3.xpose.msk.msra.mxu1 %vm875_vm5, %v1183_v45  ;;  %6604 = vmatprep.subr.mxu0 %v7286_v26 }
 0x404   :  { %6609 = vmatprep.subr.mxu1 %v7286_v26 }
 0x405   :  { %6597 = vmatmul.mubr.msk.f32.vlgmr.msra.gmra.mxu0 %vm875_vm5, %v7675_v33  ;;  %v1260_v46 = vpop.permute.xlu1 %1259 }
 0x406   :  { %6602 = vmatmul.mubr.msk.f32.vlgmr.msra.gmra.mxu1 %vm875_vm5, %v7677_v35  ;;  %6605 = vmatpush3.xpose.msk.msra.mxu0 %vm875_vm5, %v1260_v46  ;;  %v7782_v46 = vrot.slane %v867_v30, %v1499_v49 }
 0x407   :  { %6606 = vmatprep.mubr.msk.f32.mxu0 %vm7287_vm4, %v7286_v26  ;;  %6614 = vmatprep.subr.mxu0 %v7286_v26 }
 0x408   :  { %6611 = vmatprep.mubr.msk.f32.mxu1 %vm7287_vm4, %v7286_v26 }
 0x409   :  { %6607 = vmatmul.mubr.msk.f32.vlgmr.msra.gmra.mxu0 %vm875_vm5, %v7683_v36  ;;  %v1414_v48 = vpop.permute.xlu1 %1413 }
 0x40a   :  { %6615 = vmatpush3.xpose.msk.msra.mxu0 %vm875_vm5, %v1414_v48  ;;  %v1337_v50 = vpop.permute.xlu0 %1336  ;;  %6616 = vmatprep.mubr.msk.f32.mxu0 %vm7287_vm4, %v7286_v26 }
 0x40b   :  { %6610 = vmatpush3.xpose.msk.msra.mxu1 %vm875_vm5, %v1337_v50  ;;  %6624 = vmatprep.subr.mxu0 %v7286_v26 }
 0x40c   :  { %6619 = vmatprep.subr.mxu1 %v7286_v26 }
 0x40d   :  { %6617 = vmatmul.mubr.msk.f32.vlgmr.msra.gmra.mxu0 %vm875_vm5, %v7687_v38  ;;  %v1635_v51 = vpop.permute.xlu1 %1634 }
 0x40e   :  { %6612 = vmatmul.mubr.msk.f32.vlgmr.msra.gmra.mxu1 %vm875_vm5, %v7689_v40  ;;  %v1711_v52 = vpop.permute.xlu0 %1710  ;;  %6626 = vmatprep.mubr.msk.f32.mxu0 %vm7287_vm4, %v7286_v26 }
 0x40f   :  { %6620 = vmatpush3.msra.mxu1 %v1635_v51  ;;  %6625 = vmatpush3.msra.mxu0 %v1711_v52  ;;  %v7787_v51 = vrot.slane %v868_v37, %v1499_v49  ;;  %v869_v52 = vcombine.high %v853_v15, %v853_v15 }
 0x410   :  { %6621 = vmatprep.mubr.msk.f32.mxu1 %vm7287_vm4, %v7286_v26  ;;  %6629 = vmatprep.subr.mxu1 %v7286_v26 }
 0x411   :  { %6634 = vmatprep.subr.mxu0 %v7286_v26  ;;  %v7795_v0 = vrot.slane %v869_v52, %v1499_v49 }
 0x4b7   :  { %v946_v5 = vpop.f32.mrf.mxu1 }
 0x4b8   :  { %v1489_v7 = vmul.f32 0.25, %v946_v5 }
 0x4b9   :  { %v6583_v9 = vpop.f32.mrf.mxu1 }
 0x4ba   :  { %v7766_v11 = vadd.f32 %v7763_v1, %v1489_v7  ;;  %v7800_v9 = vrot.slane %v871_v57, %v1499_v49  ;;  %v7814_v49 = vpop.permute.xlu1 %1786 }
 0x4bb   :  { %v1023_v22 = vpop.f32.mrf.mxu1 }
 0x4bc   :  { %v1490_v56 = vmul.f32 0.25, %v1023_v22  ;;  %v1546_v14 = vsel %vm1545_vm6, %v7766_v11, -inf }
 0x4bd   :  { %1547 = vmax.xlane.f32.xlu0 %v1546_v14  ;;  %v6588_v18 = vpop.f32.mrf.mxu1 }
 0x4be   :  { %v7773_v19 = vadd.f32 %v7768_v12, %v1490_v56  ;;  %v7818_v15 = vpop.permute.xlu1 %1862 }
 0x4c0   :  { %v1549_v3 = vsel %vm1545_vm6, %v7773_v19, -inf }
 0x4c1   :  { %1550 = vmax.xlane.f32.xlu1 %v1549_v3  ;;  %v1100_v13 = vpop.f32.mrf.mxu1 }
 0x4c2   :  { %v1491_v53 = vmul.f32 0.25, %v1100_v13  ;;  %v7816_v13 = vpop.permute.xlu0 %1938  ;;  %v7822_v30 = vpop.permute.xlu1 %2014 }
 0x4c3   :  { %v6593_v27 = vpop.f32.mrf.mxu1 }
 0x4c4   :  { %v1539_v8 = vadd.f32 %v7787_v51, %v1491_v53 }
 0x4c5   :  { %v1177_v32 = vpop.f32.mrf.mxu0 }
 0x4c6   :  { %v1492_v39 = vmul.f32 0.25, %v1177_v32  ;;  %v1254_v41 = vpop.f32.mrf.mxu1  ;;  %v1552_v18 = vsel %vm1545_vm6, %v1539_v8, -inf  ;;  %v7820_v27 = vpop.permute.xlu0 %2244 }
 0x4c7   :  { %v1493_v42 = vmul.f32 0.25, %v1254_v41  ;;  %v6598_v43 = vpop.f32.mrf.mxu0  ;;  %v7826_v37 = vpop.permute.xlu1 %2166 }
 0x4c8   :  { %v6603_v44 = vpop.f32.mrf.mxu1  ;;  %v1540_v45 = vadd.f32 %v7777_v29, %v1492_v39 }
 0x4c9   :  { %v1331_v48 = vpop.f32.mrf.mxu0  ;;  %v7785_v50 = vadd.f32 %v7779_v34, %v1493_v42 }
 0x4ca   :  { %v1494_v54 = vmul.f32 0.25, %v1331_v48  ;;  %v1555_v55 = vsel %vm1545_vm6, %v1540_v45, -inf  ;;  %v7824_v32 = vpop.permute.xlu0 %2242 }
 0x4cb   :  { %v6608_v58 = vpop.f32.mrf.mxu0  ;;  %1556 = vmax.xlane.f32.xlu0 %v1555_v55  ;;  %v1558_v61 = vsel %vm1545_vm6, %v7785_v50, -inf  ;;  %v7830_v41 = vpop.permute.xlu1 %2322 }
 0x4cc   :  { %1559 = vmax.xlane.f32.xlu1 %v1558_v61  ;;  %v7793_v62 = vadd.f32 %v7782_v46, %v1494_v54 }
 0x4cd   :  { %v1485_v47 = vpop.f32.mrf.mxu0 }
 0x4ce   :  { %v1496_v2 = vmul.f32 0.25, %v1485_v47  ;;  %v1408_v5 = vpop.f32.mrf.mxu1  ;;  %v1561_v7 = vsel %vm1545_vm6, %v7793_v62, -inf  ;;  %v7828_v39 = vpop.permute.xlu0 %2090 }
 0x4cf   :  { %v1495_v22 = vmul.f32 0.25, %v1408_v5  ;;  %v6618_v56 = vpop.f32.mrf.mxu0  ;;  %1562 = vmax.xlane.f32.xlu0 %v1561_v7  ;;  %v7833_v48 = vpop.permute.xlu1 %2320 }
 0x4d0   :  { %v6613_v14 = vpop.f32.mrf.mxu1  ;;  %v7805_v3 = vadd.f32 %v7800_v9, %v1496_v2 }
 0x4d1   :  { %v1543_v16 = vadd.f32 %v7795_v0, %v1495_v22 }
 0x4d2   :  { %v1567_v20 = vsel %vm1545_vm6, %v7805_v3, -inf }
 0x4d3   :  { %1553 = vmax.xlane.f32.xlu0 %v1552_v18  ;;  %v1564_v4 = vsel %vm1545_vm6, %v1543_v16, -inf }
 0x4d4   :  { %1565 = vmax.xlane.f32.xlu1 %v1564_v4 }
 0x4d7   :  { %1568 = vmax.xlane.f32.xlu0 %v1567_v20 }
 0x4e5   :  { %2478 = vrot.lane.b32.xlu1 %v7675_v33, %s7290_s9 }
 0x4ed   :  { %2400 = vrot.lane.b32.xlu0 %v7671_v31, %s7290_s9 }
 0x546   :  { %v1548_v42 = vpop.xlane.xlu0 %1547 }
 0x547   :  { %v1570_v43 = vsub.f32 %v7766_v11, %v1548_v42 }
 0x549   :  { %v1578_v44 = vmul.f32 1.442695, %v1570_v43 }
 0x54a   :  { %v1551_v52 = vpop.xlane.xlu1 %1550 }
 0x54b   :  { %7042 = vpow2.f32 %v1578_v44  ;;  %v1571_v53 = vsub.f32 %v7773_v19, %v1551_v52 }
 0x54d   :  { %v1580_v57 = vmul.f32 1.442695, %v1571_v53 }
 0x554   :  { %v1557_v54 = vpop.xlane.xlu0 %1556 }
 0x555   :  { %v1573_v55 = vsub.f32 %v1540_v45, %v1557_v54  ;;  %v1560_v56 = vpop.xlane.xlu1 %1559 }
 0x556   :  { %v1574_v14 = vsub.f32 %v7785_v50, %v1560_v56 }
 0x557   :  { %v1584_v58 = vmul.f32 1.442695, %v1573_v55 }
 0x558   :  { %v7043_v61 = vpop.eup %7042  ;;  %v1563_v45 = vpop.xlane.xlu0 %1562  ;;  %v1586_v20 = vmul.f32 1.442695, %v1574_v14 }
 0x559   :  { %7044 = vpow2.f32 %v1584_v58  ;;  %v1594_v47 = vsel %vm1545_vm6, %v7043_v61, 0.0  ;;  %v1575_v44 = vsub.f32 %v7793_v62, %v1563_v45 }
 0x55a   :  { %1595 = vadd.xlane.f32.xlu1 %v1594_v47  ;;  %7046 = vpow2.f32 %v1580_v57 }
 0x55c   :  { %v1554_v7 = vpop.xlane.xlu0 %1553 }
 0x55d   :  { %v1572_v22 = vsub.f32 %v1539_v8, %v1554_v7  ;;  %v1566_v4 = vpop.xlane.xlu1 %1565  ;;  %v1588_v8 = vmul.f32 1.442695, %v1575_v44 }
 0x55e   :  { %v1576_v42 = vsub.f32 %v1543_v16, %v1566_v4 }
 0x55f   :  { %v1582_v18 = vmul.f32 1.442695, %v1572_v22 }
 0x560   :  { %v1590_v43 = vmul.f32 1.442695, %v1576_v42  ;;  %v1569_v52 = vpop.xlane.xlu0 %1568 }
 0x561   :  { %7048 = vpow2.f32 %v1582_v18  ;;  %v1577_v54 = vsub.f32 %v7805_v3, %v1569_v52  ;;  %v7888_v45 = vpop.permute.xlu1 %2478 }
 0x562   :  { %7050 = vpow2.f32 %v1586_v20 }
 0x563   :  { %7052 = vpow2.f32 %v1590_v43  ;;  %v1592_v16 = vmul.f32 1.442695, %v1577_v54 }
 0x564   :  { %7054 = vpow2.f32 %v1588_v8  ;;  %v2401_v22 = vpop.permute.xlu0 %2400 }
 0x565   :  { %7056 = vpow2.f32 %v1592_v16 }
 0x566   :  { %v7837_v2 = vpop.eup %7044 }
 0x567   :  { %v1603_v11 = vsel %vm1545_vm6, %v7837_v2, 0.0  ;;  %v7841_v5 = vpop.eup %7046 }
 0x568   :  { %1604 = vadd.xlane.f32.xlu0 %v1603_v11  ;;  %v1597_v19 = vsel %vm1545_vm6, %v7841_v5, 0.0 }
 0x56b   :  { %2476 = vrot.lane.b32.xlu1 %v7675_v33, %s7291_s17 }
 0x56c   :  { %1598 = vadd.xlane.f32.xlu0 %v1597_v19 }
 0x56e   :  { %v7851_v53 = vpop.eup %7048 }
 0x56f   :  { %v1600_v50 = vsel %vm1545_vm6, %v7851_v53, 0.0  ;;  %v7856_v55 = vpop.eup %7050 }
 0x570   :  { %v1606_v57 = vsel %vm1545_vm6, %v7856_v55, 0.0  ;;  %v7860_v58 = vpop.eup %7052 }
 0x571   :  { %v1612_v62 = vsel %vm1545_vm6, %v7860_v58, 0.0  ;;  %v7864_v3 = vpop.eup %7054 }
 0x572   :  { %v1609_v47 = vsel %vm1545_vm6, %v7864_v3, 0.0  ;;  %v7868_v11 = vpop.eup %7056 }
 0x573   :  { %v1615_v19 = vsel %vm1545_vm6, %v7868_v11, 0.0 }
 0x582   :  { %2398 = vrot.lane.b32.xlu0 %v7671_v31, %s7291_s17 }
 0x58f   :  { %1601 = vadd.xlane.f32.xlu1 %v1600_v50 }
 0x593   :  { %1607 = vadd.xlane.f32.xlu1 %v1606_v57 }
 0x597   :  { %1613 = vadd.xlane.f32.xlu1 %v1612_v62 }
 0x5a1   :  { %1610 = vadd.xlane.f32.xlu0 %v1609_v47 }
 0x5a5   :  { %1616 = vadd.xlane.f32.xlu0 %v1615_v19 }
 0x5a8   :  { %2634 = vrot.lane.b32.xlu1 %v7683_v36, %s7290_s9 }
 0x5ac   :  { %2632 = vrot.lane.b32.xlu1 %v7683_v36, %s7291_s17 }
 0x5b0   :  { %2790 = vrot.lane.b32.xlu1 %v7687_v38, %s7290_s9 }
 0x5b4   :  { %2788 = vrot.lane.b32.xlu1 %v7687_v38, %s7291_s17 }
 0x5bb   :  { %2556 = vrot.lane.b32.xlu0 %v7677_v35, %s7290_s9 }
 0x5bf   :  { %2554 = vrot.lane.b32.xlu0 %v7677_v35, %s7291_s17 }
 0x5c3   :  { %2712 = vrot.lane.b32.xlu0 %v7689_v40, %s7290_s9 }
 0x5c7   :  { %2710 = vrot.lane.b32.xlu0 %v7689_v40, %s7291_s17 }
 0x5e3   :  { %v1596_v7 = vpop.xlane.xlu1 %1595 }
 0x5e4   :  { %7058 = vrcp.f32 %v1596_v7 }
 0x5f1   :  { %v7059_v56 = vpop.eup %7058  ;;  %v1605_v14 = vpop.xlane.xlu0 %1604 }
 0x5f2   :  { %v1619_v18 = vmul.f32 %v7059_v56, %v7043_v61  ;;  %v7907_v61 = vpop.permute.xlu1 %2476 }
 0x5f4   :  { %6622 = vmatmul.mubr.msk.f32.vlgmr.msra.gmra.mxu1 %vm1545_vm6, %v1619_v18 }
 0x5f5   :  { %6630 = vmatpush3.msra.mxu1 %v7814_v49  ;;  %v1599_v4 = vpop.xlane.xlu0 %1598  ;;  %6631 = vmatprep.mubr.msk.f32.mxu1 %vm7287_vm4, %v7286_v26 }
 0x5f6   :  { %7060 = vrcp.f32 %v1599_v4  ;;  %6639 = vmatprep.subr.mxu1 %v7286_v26 }
 0x5f7   :  { %7062 = vrcp.f32 %v1605_v14 }
 0x5f9   :  { %v2399_v8 = vpop.permute.xlu0 %2398 }
 0x603   :  { %v7061_v20 = vpop.eup %7060 }
 0x604   :  { %v1621_v42 = vmul.f32 %v7061_v20, %v7841_v5  ;;  %v7063_v43 = vpop.eup %7062 }
 0x605   :  { %v1625_v49 = vmul.f32 %v7063_v43, %v7837_v2 }
 0x606   :  { %6627 = vmatmul.mubr.msk.f32.vlgmr.msra.gmra.mxu0 %vm1545_vm6, %v1621_v42 }
 0x607   :  { %6635 = vmatpush3.msra.mxu0 %v7818_v15  ;;  %6636 = vmatprep.mubr.msk.f32.mxu0 %vm7287_vm4, %v7286_v26 }
 0x608   :  { %6644 = vmatprep.subr.mxu0 %v7286_v26 }
 0x60a   :  { %6637 = vmatmul.mubr.msk.f32.vlgmr.msra.gmra.mxu0 %vm1545_vm6, %v1625_v49 }
 0x60b   :  { %6645 = vmatpush3.msra.mxu0 %v7822_v30  ;;  %6646 = vmatprep.mubr.msk.f32.mxu0 %vm7287_vm4, %v7286_v26 }
 0x60c   :  { %6654 = vmatprep.subr.mxu0 %v7286_v26 }
 0x618   :  { %v1602_v5 = vpop.xlane.xlu1 %1601 }
 0x619   :  { %7064 = vrcp.f32 %v1602_v5 }
 0x61c   :  { %v1608_v15 = vpop.xlane.xlu1 %1607 }
 0x61d   :  { %7066 = vrcp.f32 %v1608_v15 }
 0x620   :  { %v1614_v44 = vpop.xlane.xlu1 %1613 }
 0x621   :  { %7068 = vrcp.f32 %v1614_v44 }
 0x624   :  { %v2635_v62 = vpop.permute.xlu1 %2634 }
 0x626   :  { %v7065_v52 = vpop.eup %7064 }
 0x627   :  { %v1623_v2 = vmul.f32 %v7065_v52, %v7851_v53 }
 0x629   :  { %6632 = vmatmul.mubr.msk.f32.vlgmr.msra.gmra.mxu1 %vm1545_vm6, %v1623_v2 }
 0x62a   :  { %v7067_v30 = vpop.eup %7066  ;;  %6640 = vmatpush3.msra.mxu1 %v7816_v13  ;;  %v1611_v54 = vpop.xlane.xlu0 %1610  ;;  %6641 = vmatprep.mubr.msk.f32.mxu1 %vm7287_vm4, %v7286_v26 }
 0x62b   :  { %7070 = vrcp.f32 %v1611_v54  ;;  %6649 = vmatprep.subr.mxu1 %v7286_v26  ;;  %v1627_v50 = vmul.f32 %v7067_v30, %v7856_v55 }
 0x62d   :  { %6642 = vmatmul.mubr.msk.f32.vlgmr.msra.gmra.mxu1 %vm1545_vm6, %v1627_v50 }
 0x62e   :  { %v7069_v16 = vpop.eup %7068  ;;  %6650 = vmatpush3.msra.mxu1 %v7828_v39  ;;  %v1617_v53 = vpop.xlane.xlu0 %1616  ;;  %6651 = vmatprep.mubr.msk.f32.mxu1 %vm7287_vm4, %v7286_v26 }
 0x62f   :  { %7072 = vrcp.f32 %v1617_v53  ;;  %6659 = vmatprep.subr.mxu1 %v7286_v26  ;;  %v1631_v13 = vmul.f32 %v7069_v16, %v7860_v58 }
 0x631   :  { %6652 = vmatmul.mubr.msk.f32.vlgmr.msra.gmra.mxu1 %vm1545_vm6, %v1631_v13 }
 0x632   :  { %6660 = vmatpush3.xpose.msk.msra.mxu1 %vm875_vm5, %v7820_v27  ;;  %v2557_v55 = vpop.permute.xlu0 %2556  ;;  %6661 = vmatprep.mubr.msk.f32.mxu1 %vm7287_vm4, %v7286_v26 }
 0x633   :  { %6669 = vmatprep.subr.mxu1 %v7286_v26 }
 0x635   :  { %6662 = vmatmul.mubr.msk.f32.vlgmr.msra.gmra.mxu1 %vm875_vm5, %v7824_v32 }
 0x636   :  { %6670 = vmatpush3.xpose.msk.msra.mxu1 %vm875_vm5, %v2401_v22  ;;  %v2555_v39 = vpop.permute.xlu0 %2554  ;;  %6671 = vmatprep.mubr.msk.f32.mxu1 %vm7287_vm4, %v7286_v26 }
 0x637   :  { %6679 = vmatprep.subr.mxu1 %v7286_v26 }
 0x638   :  { %v7071_v57 = vpop.eup %7070 }
 0x639   :  { %6672 = vmatmul.mubr.msk.f32.vlgmr.msra.gmra.mxu1 %vm875_vm5, %v2399_v8  ;;  %v1629_v27 = vmul.f32 %v7071_v57, %v7864_v3 }
 0x63a   :  { %6680 = vmatpush3.xpose.msk.msra.mxu1 %vm875_vm5, %v2557_v55  ;;  %v2713_v58 = vpop.permute.xlu0 %2712  ;;  %6681 = vmatprep.mubr.msk.f32.mxu1 %vm7287_vm4, %v7286_v26 }
 0x63b   :  { %6647 = vmatmul.mubr.msk.f32.vlgmr.msra.gmra.mxu0 %vm1545_vm6, %v1629_v27  ;;  %6689 = vmatprep.subr.mxu1 %v7286_v26 }
 0x63c   :  { %v7073_v32 = vpop.eup %7072  ;;  %6655 = vmatpush3.msra.mxu0 %v7826_v37  ;;  %6656 = vmatprep.mubr.msk.f32.mxu0 %vm7287_vm4, %v7286_v26  ;;  %v2633_v37 = vpop.permute.xlu1 %2632 }
 0x63d   :  { %6682 = vmatmul.mubr.msk.f32.vlgmr.msra.gmra.mxu1 %vm875_vm5, %v2555_v39  ;;  %6664 = vmatprep.subr.mxu0 %v7286_v26  ;;  %v1633_v3 = vmul.f32 %v7073_v32, %v7868_v11 }
 0x63e   :  { %6690 = vmatpush3.xpose.msk.msra.mxu1 %vm875_vm5, %v2713_v58  ;;  %6691 = vmatprep.mubr.msk.f32.mxu1 %vm7287_vm4, %v7286_v26  ;;  %v2711_v47 = vpop.permute.xlu0 %2710 }
 0x63f   :  { %6657 = vmatmul.mubr.msk.f32.vlgmr.msra.gmra.mxu0 %vm1545_vm6, %v1633_v3  ;;  %6699 = vmatprep.subr.mxu1 %v7286_v26 }
 0x640   :  { %6665 = vmatpush3.xpose.msk.msra.mxu0 %vm875_vm5, %v7830_v41  ;;  %6666 = vmatprep.mubr.msk.f32.mxu0 %vm7287_vm4, %v7286_v26  ;;  %v2791_v41 = vpop.permute.xlu1 %2790 }
 0x641   :  { %6692 = vmatmul.mubr.msk.f32.vlgmr.msra.gmra.mxu1 %vm875_vm5, %v2711_v47  ;;  %6674 = vmatprep.subr.mxu0 %v7286_v26 }
 0x642   :  { %6701 = vmatprep.mubr.msk.f32.mxu1 %vm7287_vm4, %v7286_v26 }
 0x643   :  { %6667 = vmatmul.mubr.msk.f32.vlgmr.msra.gmra.mxu0 %vm875_vm5, %v7833_v48 }
 0x644   :  { %6675 = vmatpush3.xpose.msk.msra.mxu0 %vm875_vm5, %v7888_v45  ;;  %6676 = vmatprep.mubr.msk.f32.mxu0 %vm7287_vm4, %v7286_v26  ;;  %v2789_v48 = vpop.permute.xlu1 %2788 }
 0x645   :  { %6684 = vmatprep.subr.mxu0 %v7286_v26 }
 0x647   :  { %6677 = vmatmul.mubr.msk.f32.vlgmr.msra.gmra.mxu0 %vm875_vm5, %v7907_v61 }
 0x648   :  { %6685 = vmatpush3.xpose.msk.msra.mxu0 %vm875_vm5, %v2635_v62  ;;  %6686 = vmatprep.mubr.msk.f32.mxu0 %vm7287_vm4, %v7286_v26 }
 0x649   :  { %6694 = vmatprep.subr.mxu0 %v7286_v26 }
 0x64b   :  { %6687 = vmatmul.mubr.msk.f32.vlgmr.msra.gmra.mxu0 %vm875_vm5, %v2633_v37 }
 0x64c   :  { %6695 = vmatpush3.xpose.msk.msra.mxu0 %vm875_vm5, %v2791_v41  ;;  %6696 = vmatprep.mubr.msk.f32.mxu0 %vm7287_vm4, %v7286_v26 }
 0x64d   :  { %6704 = vmatprep.subr.mxu0 %v7286_v26 }
 0x64f   :  { %6697 = vmatmul.mubr.msk.f32.vlgmr.msra.gmra.mxu0 %vm875_vm5, %v2789_v48 }
 0x650   :  { %6706 = vmatprep.mubr.msk.f32.mxu0 %vm7287_vm4, %v7286_v26 }
 0x6b4   :  { %v7981_v11 = vpop.f32.mrf.mxu1 }
 0x6b6   :  { %v6623_v19 = vpop.f32.mrf.mxu1 }
 0x6c6   :  { %v7983_v45 = vpop.f32.mrf.mxu0 }
 0x6c8   :  { %v6628_v7 = vpop.f32.mrf.mxu0 }
 0x6ca   :  { %v7985_v22 = vpop.f32.mrf.mxu0 }
 0x6cc   :  { %v6638_v56 = vpop.f32.mrf.mxu0 }
 0x6e9   :  { %v7987_v14 = vpop.f32.mrf.mxu1 }
 0x6eb   :  { %v6633_v18 = vpop.f32.mrf.mxu1 }
 0x6ed   :  { %v7989_v4 = vpop.f32.mrf.mxu1 }
 0x6ef   :  { %v6643_v20 = vpop.f32.mrf.mxu1 }
 0x6f1   :  { %v7991_v42 = vpop.f32.mrf.mxu1 }
 0x6f3   :  { %v6653_v43 = vpop.f32.mrf.mxu1 }
 0x6f5   :  { %v2316_v49 = vpop.f32.mrf.mxu1 }
 0x6f6   :  { %v2866_v61 = vmul.f32 0.25, %v2316_v49 }
 0x6f7   :  { %v6663_v5 = vpop.f32.mrf.mxu1 }
 0x6f8   :  { %v2874_v15 = vadd.f32 %v2866_v61, %v7763_v1 }
 0x6f9   :  { %v2472_v44 = vpop.f32.mrf.mxu1 }
 0x6fa   :  { %v2868_v52 = vmul.f32 0.25, %v2472_v44  ;;  %v2882_v8 = vsel %vm1545_vm6, %v2874_v15, -inf }
 0x6fb   :  { %2883 = vmax.xlane.f32.xlu0 %v2882_v8  ;;  %v7995_v2 = vpop.f32.mrf.mxu0  ;;  %v6673_v30 = vpop.f32.mrf.mxu1 }
 0x6fc   :  { %v2876_v54 = vadd.f32 %v2868_v52, %v7787_v51 }
 0x6fd   :  { %v6648_v50 = vpop.f32.mrf.mxu0  ;;  %v2628_v16 = vpop.f32.mrf.mxu1 }
 0x6fe   :  { %v2888_v53 = vsel %vm1545_vm6, %v2876_v54, -inf  ;;  %v2870_v58 = vmul.f32 0.25, %v2628_v16 }
 0x6ff   :  { %2889 = vmax.xlane.f32.xlu0 %v2888_v53  ;;  %v7999_v13 = vpop.f32.mrf.mxu0  ;;  %v6683_v55 = vpop.f32.mrf.mxu1 }
 0x700   :  { %v2878_v48 = vadd.f32 %v2870_v58, %v7779_v34 }
 0x701   :  { %v6658_v39 = vpop.f32.mrf.mxu0  ;;  %v2784_v1 = vpop.f32.mrf.mxu1 }
 0x702   :  { %v2872_v37 = vmul.f32 0.25, %v2784_v1  ;;  %v2894_v43 = vsel %vm1545_vm6, %v2878_v48, -inf }
 0x703   :  { %v2394_v57 = vpop.f32.mrf.mxu0  ;;  %v6693_v27 = vpop.f32.mrf.mxu1 }
 0x704   :  { %v2867_v32 = vmul.f32 0.25, %v2394_v57  ;;  %v2880_v49 = vadd.f32 %v2872_v37, %v7795_v0 }
 0x705   :  { %v6668_v62 = vpop.f32.mrf.mxu0 }
 0x706   :  { %v2875_v3 = vadd.f32 %v2867_v32, %v7768_v12  ;;  %v2900_v52 = vsel %vm1545_vm6, %v2880_v49, -inf }
 0x707   :  { %v2550_v47 = vpop.f32.mrf.mxu0 }
 0x708   :  { %v2869_v51 = vmul.f32 0.25, %v2550_v47  ;;  %v2885_v41 = vsel %vm1545_vm6, %v2875_v3, -inf }
 0x709   :  { %2886 = vmax.xlane.f32.xlu1 %v2885_v41  ;;  %v6678_v19 = vpop.f32.mrf.mxu0 }
 0x70a   :  { %v2877_v7 = vadd.f32 %v2869_v51, %v7777_v29 }
 0x70b   :  { %v2706_v56 = vpop.f32.mrf.mxu0 }
 0x70c   :  { %v2871_v18 = vmul.f32 0.25, %v2706_v56  ;;  %v2891_v20 = vsel %vm1545_vm6, %v2877_v7, -inf }
 0x70d   :  { %2892 = vmax.xlane.f32.xlu0 %v2891_v20  ;;  %v6688_v12 = vpop.f32.mrf.mxu0  ;;  %2895 = vmax.xlane.f32.xlu1 %v2894_v43 }
 0x70e   :  { %v2879_v61 = vadd.f32 %v2871_v18, %v7782_v46 }
 0x70f   :  { %v2862_v5 = vpop.f32.mrf.mxu0 }
 0x710   :  { %v2873_v44 = vmul.f32 0.25, %v2862_v5  ;;  %v2897_v34 = vsel %vm1545_vm6, %v2879_v61, -inf }
 0x711   :  { %2898 = vmax.xlane.f32.xlu0 %v2897_v34  ;;  %v6698_v29 = vpop.f32.mrf.mxu0  ;;  %2901 = vmax.xlane.f32.xlu1 %v2900_v52 }
 0x712   :  { %v2881_v8 = vadd.f32 %v2873_v44, %v7800_v9 }
 0x714   :  { %v2903_v30 = vsel %vm1545_vm6, %v2881_v8, -inf }
 0x715   :  { %2904 = vmax.xlane.f32.xlu0 %v2903_v30 }
 0x722   :  { %2970 = vrot.lane.b32.xlu1 %v7665_v28, %s7293_s13 }
 0x726   :  { %3122 = vrot.lane.b32.xlu1 %v7671_v31, %s7293_s13 }
 0x72a   :  { %3198 = vrot.lane.b32.xlu1 %v7675_v33, %s7293_s13 }
 0x72b   :  { %3046 = vrot.lane.b32.xlu0 %v7663_v25, %s7293_s13 }
 0x72e   :  { %3350 = vrot.lane.b32.xlu1 %v7683_v36, %s7293_s13 }
 0x72f   :  { %3274 = vrot.lane.b32.xlu0 %v7677_v35, %s7293_s13 }
 0x784   :  { %v2884_v46 = vpop.xlane.xlu0 %2883 }
 0x785   :  { %v2906_v0 = vsub.f32 %v2874_v15, %v2884_v46 }
 0x787   :  { %v2914_v9 = vmul.f32 1.442695, %v2906_v0 }
 0x788   :  { %v2890_v50 = vpop.xlane.xlu0 %2889 }
 0x789   :  { %7074 = vpow2.f32 %v2914_v9  ;;  %v2908_v28 = vsub.f32 %v2876_v54, %v2890_v50 }
 0x78b   :  { %v2918_v16 = vmul.f32 1.442695, %v2908_v28 }
 0x78d   :  { %7076 = vpow2.f32 %v2918_v16 }
 0x792   :  { %v2887_v31 = vpop.xlane.xlu1 %2886 }
 0x793   :  { %v2907_v53 = vsub.f32 %v2875_v3, %v2887_v31 }
 0x795   :  { %v2916_v33 = vmul.f32 1.442695, %v2907_v53 }
 0x796   :  { %v8025_v55 = vpop.eup %7074  ;;  %v2896_v25 = vpop.xlane.xlu1 %2895 }
 0x797   :  { %v2893_v39 = vpop.xlane.xlu0 %2892  ;;  %7078 = vpow2.f32 %v2916_v33  ;;  %v2910_v36 = vsub.f32 %v2878_v48, %v2896_v25  ;;  %v2930_v35 = vsel %vm1545_vm6, %v8025_v55, 0.0 }
 0x798   :  { %v2909_v1 = vsub.f32 %v2877_v7, %v2893_v39  ;;  %2931 = vadd.xlane.f32.xlu1 %v2930_v35 }
 0x799   :  { %v2922_v15 = vmul.f32 1.442695, %v2910_v36 }
 0x79a   :  { %v2920_v57 = vmul.f32 1.442695, %v2909_v1  ;;  %v8029_v27 = vpop.eup %7076  ;;  %v2902_v54 = vpop.xlane.xlu1 %2901 }
 0x79b   :  { %v2899_v58 = vpop.xlane.xlu0 %2898  ;;  %7080 = vpow2.f32 %v2922_v15  ;;  %v2912_v32 = vsub.f32 %v2880_v49, %v2902_v54  ;;  %v2936_v3 = vsel %vm1545_vm6, %v8029_v27, 0.0 }
 0x79c   :  { %v2911_v62 = vsub.f32 %v2879_v61, %v2899_v58  ;;  %7082 = vpow2.f32 %v2920_v57  ;;  %2937 = vadd.xlane.f32.xlu1 %v2936_v3 }
 0x79d   :  { %v2926_v47 = vmul.f32 1.442695, %v2912_v32 }
 0x79e   :  { %v2924_v37 = vmul.f32 1.442695, %v2911_v62  ;;  %v2971_v51 = vpop.permute.xlu1 %2970 }
 0x79f   :  { %v2905_v41 = vpop.xlane.xlu0 %2904  ;;  %7084 = vpow2.f32 %v2926_v47  ;;  %6700 = vmatpush3.msra.mxu1 %v2971_v51 }
 0x7a0   :  { %v2913_v48 = vsub.f32 %v2881_v8, %v2905_v41  ;;  %7086 = vpow2.f32 %v2924_v37  ;;  %6709 = vmatprep.subr.mxu1 %v7286_v26  ;;  %v3621_v41 = vld [vmem:[%s7355_s19 + $0x18] sm:$0xff] }
 0x7a2   :  { %v2928_v19 = vmul.f32 1.442695, %v2913_v48  ;;  %v3123_v8 = vpop.permute.xlu1 %3122  ;;  %v3620_v48 = vld [vmem:[%s7355_s19 + $0x10] sm:$0xff] }
 0x7a3   :  { %v3047_v7 = vpop.permute.xlu0 %3046 }
 0x7a4   :  { %7088 = vpow2.f32 %v2928_v19  ;;  %6705 = vmatpush3.msra.mxu0 %v3047_v7  ;;  %v7079_v56 = vpop.eup %7078  ;;  %v3619_v19 = vld [vmem:[%s7355_s19 + $0x8] sm:$0xff] }
 0x7a5   :  { %6714 = vmatprep.subr.mxu0 %v7286_v26  ;;  %v2933_v18 = vsel %vm1545_vm6, %v7079_v56, 0.0 }
 0x7a6   :  { %2934 = vadd.xlane.f32.xlu0 %v2933_v18  ;;  %v3199_v30 = vpop.permute.xlu1 %3198  ;;  %v3618_v18 = vld [vmem:[%s7355_s19] sm:$0xff]  ;;  %s8797_s19 = sld [smem:[#allocation10_spill]] }
 0x7a7   :  { %v3275_v50 = vpop.permute.xlu0 %3274 }
 0x7a8   :  { %v7081_v20 = vpop.eup %7080 }
 0x7a9   :  { %v7083_v43 = vpop.eup %7082  ;;  %v2942_v49 = vsel %vm1545_vm6, %v7081_v20, 0.0 }
 0x7aa   :  { %2943 = vadd.xlane.f32.xlu1 %v2942_v49  ;;  %v2939_v12 = vsel %vm1545_vm6, %v7083_v43, 0.0  ;;  %v3351_v46 = vpop.permute.xlu1 %3350 }
 0x7ab   :  { %2940 = vadd.xlane.f32.xlu0 %v2939_v12 }
 0x7ac   :  { %v7085_v61 = vpop.eup %7084 }
 0x7ad   :  { %v8038_v5 = vpop.eup %7086  ;;  %v2948_v44 = vsel %vm1545_vm6, %v7085_v61, 0.0 }
 0x7ae   :  { %2949 = vadd.xlane.f32.xlu1 %v2948_v44  ;;  %v2945_v34 = vsel %vm1545_vm6, %v8038_v5, 0.0 }
 0x7af   :  { %2946 = vadd.xlane.f32.xlu0 %v2945_v34 }
 0x7b1   :  { %v8043_v52 = vpop.eup %7088 }
 0x7b2   :  { %v2951_v29 = vsel %vm1545_vm6, %v8043_v52, 0.0 }
 0x7b3   :  { %2952 = vadd.xlane.f32.xlu0 %v2951_v29 }
 0x7bf   :  { %3502 = vrot.lane.b32.xlu1 %v7687_v38, %s7293_s13 }
 0x7c9   :  { %3426 = vrot.lane.b32.xlu0 %v7689_v40, %s7293_s13 }
 0x821   :  { %v2932_v0 = vpop.xlane.xlu1 %2931 }
 0x822   :  { %7090 = vrcp.f32 %v2932_v0 }
 0x825   :  { %v2938_v9 = vpop.xlane.xlu1 %2937 }
 0x826   :  { %7092 = vrcp.f32 %v2938_v9 }
 0x82f   :  { %v7091_v28 = vpop.eup %7090  ;;  %v2935_v16 = vpop.xlane.xlu0 %2934 }
 0x830   :  { %7094 = vrcp.f32 %v2935_v16  ;;  %v2955_v31 = vmul.f32 %v7091_v28, %v8025_v55 }
 0x832   :  { %6702 = vmatmul.mubr.msk.f32.vlgmr.msra.gmra.mxu1 %vm1545_vm6, %v2955_v31 }
 0x833   :  { %v7093_v53 = vpop.eup %7092  ;;  %6710 = vmatpush3.msra.mxu1 %v3123_v8  ;;  %v2944_v38 = vpop.xlane.xlu1 %2943  ;;  %6711 = vmatprep.mubr.msk.f32.mxu1 %vm7287_vm4, %v7286_v26 }
 0x834   :  { %7096 = vrcp.f32 %v2944_v38  ;;  %v2941_v40 = vpop.xlane.xlu0 %2940  ;;  %6719 = vmatprep.subr.mxu1 %v7286_v26  ;;  %v2959_v33 = vmul.f32 %v7093_v53, %v8029_v27 }
 0x835   :  { %7098 = vrcp.f32 %v2941_v40 }
 0x836   :  { %6712 = vmatmul.mubr.msk.f32.vlgmr.msra.gmra.mxu1 %vm1545_vm6, %v2959_v33 }
 0x837   :  { %6720 = vmatpush3.msra.mxu1 %v3275_v50  ;;  %v2950_v25 = vpop.xlane.xlu1 %2949  ;;  %6721 = vmatprep.mubr.msk.f32.mxu1 %vm7287_vm4, %v7286_v26 }
 0x838   :  { %7100 = vrcp.f32 %v2950_v25  ;;  %v2947_v55 = vpop.xlane.xlu0 %2946  ;;  %6729 = vmatprep.subr.mxu1 %v7286_v26 }
 0x839   :  { %7102 = vrcp.f32 %v2947_v55 }
 0x83b   :  { %v3503_v47 = vpop.permute.xlu1 %3502 }
 0x83c   :  { %v2953_v39 = vpop.xlane.xlu0 %2952 }
 0x83d   :  { %v7095_v36 = vpop.eup %7094  ;;  %7104 = vrcp.f32 %v2953_v39  ;;  %v6236_v39 = vld [vmem:[%s7360_s24] ss:$0 sm:$0xff]  ;;  %s8798_s24 = sld [smem:[#allocation11_spill]] }
 0x83e   :  { %v2957_v1 = vmul.f32 %v7095_v36, %v7079_v56 }
 0x840   :  { %6707 = vmatmul.mubr.msk.f32.vlgmr.msra.gmra.mxu0 %vm1545_vm6, %v2957_v1  ;;  %v3427_v54 = vpop.permute.xlu0 %3426 }
 0x841   :  { %v7097_v35 = vpop.eup %7096  ;;  %6715 = vmatpush3.msra.mxu0 %v3199_v30  ;;  %6716 = vmatprep.mubr.msk.f32.mxu0 %vm7287_vm4, %v7286_v26 }
 0x842   :  { %v7099_v15 = vpop.eup %7098  ;;  %6724 = vmatprep.subr.mxu0 %v7286_v26  ;;  %v2963_v57 = vmul.f32 %v7097_v35, %v7081_v20 }
 0x843   :  { %v2961_v27 = vmul.f32 %v7099_v15, %v7083_v43 }
 0x844   :  { %6722 = vmatmul.mubr.msk.f32.vlgmr.msra.gmra.mxu1 %vm1545_vm6, %v2963_v57 }
 0x845   :  { %v7101_v58 = vpop.eup %7100  ;;  %6717 = vmatmul.mubr.msk.f32.vlgmr.msra.gmra.mxu0 %vm1545_vm6, %v2961_v27  ;;  %6730 = vmatpush3.msra.mxu1 %v3427_v54 }
 0x846   :  { %v7103_v32 = vpop.eup %7102  ;;  %6725 = vmatpush3.msra.mxu0 %v3351_v46  ;;  %6726 = vmatprep.mubr.msk.f32.mxu0 %vm7287_vm4, %v7286_v26  ;;  %v2967_v62 = vmul.f32 %v7101_v58, %v7085_v61 }
 0x847   :  { %6731 = vmatprep.mubr.msk.f32.mxu1 %vm7287_vm4, %v7286_v26  ;;  %6734 = vmatprep.subr.mxu0 %v7286_v26  ;;  %v2965_v3 = vmul.f32 %v7103_v32, %v8038_v5 }
 0x848   :  { %6732 = vmatmul.mubr.msk.f32.vlgmr.msra.gmra.mxu1 %vm1545_vm6, %v2967_v62  ;;  %6739 = vmatprep.subr.mxu1 %v3621_v41 }
 0x849   :  { %6727 = vmatmul.mubr.msk.f32.vlgmr.msra.gmra.mxu0 %vm1545_vm6, %v2965_v3  ;;  %6740 = vmatpush3.msra.mxu1 %v3621_v41 }
 0x84a   :  { %v7105_v37 = vpop.eup %7104  ;;  %6735 = vmatpush3.msra.mxu0 %v3503_v47  ;;  %6736 = vmatprep.mubr.msk.f32.mxu0 %vm7287_vm4, %v7286_v26 }
 0x84b   :  { %v2969_v51 = vmul.f32 %v7105_v37, %v8043_v52  ;;  %6741 = vmatprep.subr.mxu1 %v3620_v48 }
 0x84c   :  { %6742 = vmatpush3.msra.mxu1 %v3620_v48 }
 0x84d   :  { %6737 = vmatmul.mubr.msk.f32.vlgmr.msra.gmra.mxu0 %vm1545_vm6, %v2969_v51  ;;  %6743 = vmatprep.subr.mxu1 %v3619_v19 }
 0x84e   :  { %6744 = vmatpush3.msra.mxu1 %v3619_v19 }
 0x84f   :  { %6745 = vmatprep.subr.mxu1 %v3618_v18 }
 0x850   :  { %6746 = vmatpush3.msra.mxu1 %v3618_v18 }
 0x8f2   :  { %v3042_v7 = vpop.f32.mrf.mxu1 }
 0x8f3   :  { %3586 = vrot.lane.b32.xlu0 %v3042_v7, %s7294_s21 }
 0x8f4   :  { %v6703_v56 = vpop.f32.mrf.mxu1 }
 0x8f6   :  { %v3194_v20 = vpop.f32.mrf.mxu1 }
 0x8f7   :  { %3590 = vrot.lane.b32.xlu0 %v3194_v20, %s7294_s21 }
 0x8f8   :  { %v6713_v43 = vpop.f32.mrf.mxu1 }
 0x900   :  { %v3118_v49 = vpop.f32.mrf.mxu0 }
 0x901   :  { %3588 = vrot.lane.b32.xlu1 %v3118_v49, %s7294_s21 }
 0x902   :  { %v6708_v12 = vpop.f32.mrf.mxu0 }
 0x904   :  { %v3346_v61 = vpop.f32.mrf.mxu1 }
 0x905   :  { %v3270_v5 = vpop.f32.mrf.mxu0  ;;  %3594 = vrot.lane.b32.xlu0 %v3346_v61, %s7294_s21 }
 0x906   :  { %3592 = vrot.lane.b32.xlu1 %v3270_v5, %s7294_s21  ;;  %v6723_v44 = vpop.f32.mrf.mxu1 }
 0x907   :  { %v6718_v34 = vpop.f32.mrf.mxu0 }
 0x908   :  { %v3498_v52 = vpop.f32.mrf.mxu1 }
 0x909   :  { %v3422_v29 = vpop.f32.mrf.mxu0  ;;  %3598 = vrot.lane.b32.xlu0 %v3498_v52, %s7294_s21 }
 0x90a   :  { %3596 = vrot.lane.b32.xlu1 %v3422_v29, %s7294_s21  ;;  %v6733_v8 = vpop.f32.mrf.mxu1 }
 0x90b   :  { %v6728_v30 = vpop.f32.mrf.mxu0 }
 0x90d   :  { %v3574_v46 = vpop.f32.mrf.mxu0 }
 0x90e   :  { %3600 = vrot.lane.b32.xlu1 %v3574_v46, %s7294_s21 }
 0x90f   :  { %v6738_v0 = vpop.f32.mrf.mxu0 }
 0x965   :  { %v3587_v9 = vpop.permute.xlu0 %3586 }
 0x966   :  { %v3610_v50 = vsel %vm875_vm5, %v7981_v11, %v3587_v9 }
 0x967   :  { %6747 = vmatprep.mubr.msk.f32.mxu1 %vm400_vm1, %v3610_v50 }
 0x969   :  { %v3591_v28 = vpop.permute.xlu0 %3590 }
 0x96a   :  { %v3612_v53 = vsel %vm875_vm5, %v7987_v14, %v3591_v28 }
 0x973   :  { %v3589_v16 = vpop.permute.xlu1 %3588 }
 0x974   :  { %v3611_v31 = vsel %vm875_vm5, %v7983_v45, %v3589_v16 }
 0x975   :  { %6748 = vmatmul.mubr.msk.f32.vlgmr.msra.gmra.mxu1 %vm400_vm1, %v3611_v31 }
 0x976   :  { %6750 = vmatprep.mubr.msk.f32.mxu1 %vm400_vm1, %v3612_v53 }
 0x977   :  { %v3595_v38 = vpop.permute.xlu0 %3594 }
 0x978   :  { %v3593_v40 = vpop.permute.xlu1 %3592  ;;  %v3614_v11 = vsel %vm875_vm5, %v7989_v4, %v3595_v38 }
 0x979   :  { %v3613_v33 = vsel %vm875_vm5, %v7985_v22, %v3593_v40 }
 0x97a   :  { %6751 = vmatmul.mubr.msk.f32.gmra.mxu1 %vm400_vm1, %v3613_v33 }
 0x97b   :  { %6753 = vmatprep.mubr.msk.f32.mxu1 %vm400_vm1, %v3614_v11  ;;  %v3599_v45 = vpop.permute.xlu0 %3598 }
 0x97c   :  { %v3597_v25 = vpop.permute.xlu1 %3596  ;;  %v3616_v14 = vsel %vm875_vm5, %v7991_v42, %v3599_v45 }
 0x97d   :  { %v3615_v55 = vsel %vm875_vm5, %v7995_v2, %v3597_v25 }
 0x97e   :  { %6754 = vmatmul.mubr.msk.f32.gmra.mxu1 %vm400_vm1, %v3615_v55 }
 0x97f   :  { %6756 = vmatprep.mubr.msk.f32.mxu1 %vm400_vm1, %v3616_v14 }
 0x980   :  { %v3601_v4 = vpop.permute.xlu1 %3600 }
 0x981   :  { %v3617_v22 = vsel %vm875_vm5, %v7999_v13, %v3601_v4 }
 0x982   :  { %6757 = vmatmul.mubr.msk.f32.gmra.mxu1 %vm400_vm1, %v3617_v22 }
 0xa35   :  { %v6749_v36 = vpop.f32.mrf.mxu1 }
 0xa36   :  { %v3725_v1 = vadd.f32 %v6749_v36, %v6236_v39 }
 0xa37   :  { %v3719_v35 = vpop.f32.mrf.mxu1 }
 0xa38   :  { %v3759_v15 = vadd.f32 %v3725_v1, %v7622_v63  ;;  %v3720_v42 = vadd.f32 %v6236_v39, %v3719_v35 }
 0xa3a   :  { %v3758_v57 = vadd.f32 %v3720_v42, %v7620_v59  ;;  %v6752_v2 = vpop.f32.mrf.mxu1  ;;  %v3771_v27 = vsel %vm400_vm1, %v3759_v15, 0.0 }
 0xa3b   :  { %3772 = vadd.xlane.f32.xlu1 %v3771_v27  ;;  %v3735_v54 = vadd.f32 %v6752_v2, %v6236_v39 }
 0xa3c   :  { %v3729_v58 = vpop.f32.mrf.mxu1  ;;  %v3768_v32 = vsel %vm400_vm1, %v3758_v57, 0.0 }
 0xa3d   :  { %v3730_v13 = vadd.f32 %v6236_v39, %v3729_v58  ;;  %3769 = vadd.xlane.f32.xlu0 %v3768_v32  ;;  %v3761_v47 = vadd.f32 %v3735_v54, %v7634_v10  ;;  %v3903_v32 = vld [vmem:[%s7375_s12 + $0x18] sm:$0xff] }
 0xa3e   :  { %v6755_v62 = vpop.f32.mrf.mxu1  ;;  %6759 = vmatprep.subr.mxu0 %v3903_v32 }
 0xa3f   :  { %v3760_v3 = vadd.f32 %v3730_v13, %v7630_v6  ;;  %v3745_v63 = vadd.f32 %v6755_v62, %v6236_v39  ;;  %v3777_v7 = vsel %vm400_vm1, %v3761_v47, 0.0  ;;  %6760 = vmatpush3.msra.mxu0 %v3903_v32  ;;  %v3902_v13 = vld [vmem:[%s7375_s12 + $0x10] sm:$0xff]  ;;  %v3901_v62 = vld [vmem:[%s7375_s12 + $0x8] sm:$0xff] }
 0xa40   :  { %v3739_v37 = vpop.f32.mrf.mxu1  ;;  %6761 = vmatprep.subr.mxu0 %v3902_v13 }
 0xa41   :  { %v3740_v51 = vadd.f32 %v6236_v39, %v3739_v37  ;;  %v3774_v59 = vsel %vm400_vm1, %v3760_v3, 0.0  ;;  %v3763_v56 = vadd.f32 %v3745_v63, %v7642_v17  ;;  %6762 = vmatpush3.msra.mxu0 %v3902_v13  ;;  %v4118_v13 = vld [vmem:[%s8793_s29 + $0x30] sm:$0xff] }
 0xa42   :  { %3775 = vadd.xlane.f32.xlu0 %v3774_v59  ;;  %v6758_v41 = vpop.f32.mrf.mxu1  ;;  %6763 = vmatprep.subr.mxu0 %v3901_v62 }
 0xa43   :  { %v3762_v48 = vadd.f32 %v3740_v51, %v7640_v60  ;;  %v3755_v18 = vadd.f32 %v6758_v41, %v6236_v39  ;;  %v3783_v49 = vsel %vm400_vm1, %v3763_v56, 0.0  ;;  %6764 = vmatpush3.msra.mxu0 %v3901_v62  ;;  %v4117_v62 = vld [vmem:[%s8793_s29 + $0x28] sm:$0xff] }
 0xa44   :  { %v3749_v19 = vpop.f32.mrf.mxu1 }
 0xa45   :  { %v3750_v20 = vadd.f32 %v6236_v39, %v3749_v19  ;;  %v3780_v6 = vsel %vm400_vm1, %v3762_v48, 0.0  ;;  %v3765_v43 = vadd.f32 %v3755_v18, %v7652_v24 }
 0xa46   :  { %3778 = vadd.xlane.f32.xlu0 %v3777_v7  ;;  %3781 = vadd.xlane.f32.xlu1 %v3780_v6 }
 0xa47   :  { %v3764_v10 = vadd.f32 %v3750_v20, %v7650_v21  ;;  %v3789_v60 = vsel %vm400_vm1, %v3765_v43, 0.0 }
 0xa49   :  { %v3786_v12 = vsel %vm400_vm1, %v3764_v10, 0.0 }
 0xa4a   :  { %3784 = vadd.xlane.f32.xlu0 %v3783_v49  ;;  %3787 = vadd.xlane.f32.xlu1 %v3786_v12 }
 0xa4e   :  { %3790 = vadd.xlane.f32.xlu0 %v3789_v60 }
 0xac4   :  { %v3773_v17 = vpop.xlane.xlu1 %3772 }
 0xac5   :  { %v3793_v61 = vmul.f32 0.03125, %v3773_v17 }
 0xac6   :  { %v3770_v5 = vpop.xlane.xlu0 %3769 }
 0xac7   :  { %v8132_v44 = vsub.f32 %v3759_v15, %v3793_v61  ;;  %v3792_v34 = vmul.f32 0.03125, %v3770_v5 }
 0xac9   :  { %v8134_v52 = vsub.f32 %v3758_v57, %v3792_v34  ;;  %v3809_v21 = vmul.f32 %v8132_v44, %v8132_v44 }
 0xacb   :  { %v3776_v24 = vpop.xlane.xlu0 %3775  ;;  %v3819_v29 = vsel %vm400_vm1, %v3809_v21, 0.0  ;;  %v3808_v8 = vmul.f32 %v8134_v52, %v8134_v52 }
 0xacc   :  { %v3794_v30 = vmul.f32 0.03125, %v3776_v24  ;;  %3820 = vadd.xlane.f32.xlu0 %v3819_v29  ;;  %v6245_v29 = vld [vmem:[%s7365_s30] ss:$0 sm:$0xff]  ;;  %s8799_s30 = sld [smem:[#allocation14_spill]] }
 0xacd   :  { %v3816_v46 = vsel %vm400_vm1, %v3808_v8, 0.0 }
 0xace   :  { %v8142_v0 = vsub.f32 %v3760_v3, %v3794_v30  ;;  %3817 = vadd.xlane.f32.xlu1 %v3816_v46  ;;  %v3900_v3 = vld [vmem:[%s7375_s12] sm:$0xff]  ;;  %s8800_s12 = sld [smem:[#allocation16_spill]] }
 0xacf   :  { %v3782_v9 = vpop.xlane.xlu1 %3781  ;;  %v3779_v50 = vpop.xlane.xlu0 %3778  ;;  %6765 = vmatprep.subr.mxu0 %v3900_v3 }
 0xad0   :  { %v3796_v28 = vmul.f32 0.03125, %v3782_v9  ;;  %v3795_v16 = vmul.f32 0.03125, %v3779_v50  ;;  %v3810_v31 = vmul.f32 %v8142_v0, %v8142_v0  ;;  %6766 = vmatpush3.msra.mxu0 %v3900_v3  ;;  %v4116_v3 = vld [vmem:[%s8793_s29 + $0x20] sm:$0xff] }
 0xad1   :  { %6807 = vmatprep.subr.mxu0 %v7286_v26 }
 0xad2   :  { %v8146_v53 = vsub.f32 %v3762_v48, %v3796_v28  ;;  %v8148_v38 = vsub.f32 %v3761_v47, %v3795_v16  ;;  %v3822_v40 = vsel %vm400_vm1, %v3810_v31, 0.0  ;;  %v6246_v28 = vld [vmem:[%s8792_s25] ss:$0 sm:$0xff] }
 0xad3   :  { %v3788_v11 = vpop.xlane.xlu1 %3787  ;;  %3823 = vadd.xlane.f32.xlu1 %v3822_v40  ;;  %v3785_v33 = vpop.xlane.xlu0 %3784 }
 0xad4   :  { %v3798_v45 = vmul.f32 0.03125, %v3788_v11  ;;  %v3797_v25 = vmul.f32 0.03125, %v3785_v33  ;;  %v3812_v14 = vmul.f32 %v8146_v53, %v8146_v53  ;;  %v3811_v55 = vmul.f32 %v8148_v38, %v8148_v38 }
 0xad6   :  { %v8155_v4 = vsub.f32 %v3764_v10, %v3798_v45  ;;  %v8157_v22 = vsub.f32 %v3763_v56, %v3797_v25  ;;  %v3828_v39 = vsel %vm400_vm1, %v3812_v14, 0.0  ;;  %v3825_v36 = vsel %vm400_vm1, %v3811_v55, 0.0 }
 0xad7   :  { %3829 = vadd.xlane.f32.xlu1 %v3828_v39  ;;  %3826 = vadd.xlane.f32.xlu0 %v3825_v36  ;;  %v3791_v1 = vpop.xlane.xlu0 %3790 }
 0xad8   :  { %v3799_v35 = vmul.f32 0.03125, %v3791_v1  ;;  %v3814_v15 = vmul.f32 %v8155_v4, %v8155_v4  ;;  %v3813_v42 = vmul.f32 %v8157_v22, %v8157_v22 }
 0xada   :  { %v8165_v57 = vsub.f32 %v3765_v43, %v3799_v35  ;;  %v3834_v2 = vsel %vm400_vm1, %v3814_v15, 0.0  ;;  %v3831_v27 = vsel %vm400_vm1, %v3813_v42, 0.0 }
 0xadb   :  { %3835 = vadd.xlane.f32.xlu1 %v3834_v2  ;;  %3832 = vadd.xlane.f32.xlu0 %v3831_v27 }
 0xadc   :  { %v3815_v54 = vmul.f32 %v8165_v57, %v8165_v57 }
 0xade   :  { %v3837_v58 = vsel %vm400_vm1, %v3815_v54, 0.0 }
 0xadf   :  { %3838 = vadd.xlane.f32.xlu0 %v3837_v58 }
 0xb55   :  { %v3821_v47 = vpop.xlane.xlu0 %3820 }
 0xb56   :  { %v3841_v37 = vmul.f32 0.03125, %v3821_v47  ;;  %v4115_v47 = vld [vmem:[%s8793_s29 + $0x18] sm:$0xff] }
 0xb57   :  { %v3818_v63 = vpop.xlane.xlu1 %3817 }
 0xb58   :  { %v3849_v51 = vadd.f32 1e-12, %v3841_v37  ;;  %v3840_v59 = vmul.f32 0.03125, %v3818_v63  ;;  %v4114_v37 = vld [vmem:[%s8793_s29 + $0x10] sm:$0xff]  ;;  %v4113_v63 = vld [vmem:[%s8793_s29 + $0x8] sm:$0xff] }
 0xb5a   :  { %7106 = vrsqrt.f32 %v3849_v51  ;;  %v3848_v41 = vadd.f32 1e-12, %v3840_v59  ;;  %v4112_v51 = vld [vmem:[%s8793_s29] sm:$0xff] }
 0xb5b   :  { %v6247_v59 = vld [vmem:[%s8794_s3] ss:$0 sm:$0xff] }
 0xb5c   :  { %7108 = vrsqrt.f32 %v3848_v41  ;;  %v3824_v48 = vpop.xlane.xlu1 %3823 }
 0xb5d   :  { %v3842_v19 = vmul.f32 0.03125, %v3824_v48 }
 0xb5f   :  { %v3850_v7 = vadd.f32 1e-12, %v3842_v19 }
 0xb60   :  { %v3830_v56 = vpop.xlane.xlu1 %3829  ;;  %v3827_v18 = vpop.xlane.xlu0 %3826 }
 0xb61   :  { %7110 = vrsqrt.f32 %v3850_v7  ;;  %v3844_v20 = vmul.f32 0.03125, %v3830_v56  ;;  %v3843_v6 = vmul.f32 0.03125, %v3827_v18 }
 0xb63   :  { %v3852_v10 = vadd.f32 1e-12, %v3844_v20  ;;  %v3851_v43 = vadd.f32 1e-12, %v3843_v6 }
 0xb64   :  { %v3836_v49 = vpop.xlane.xlu1 %3835  ;;  %v3833_v12 = vpop.xlane.xlu0 %3832 }
 0xb65   :  { %7112 = vrsqrt.f32 %v3852_v10  ;;  %v3846_v60 = vmul.f32 0.03125, %v3836_v49  ;;  %v3845_v17 = vmul.f32 0.03125, %v3833_v12 }
 0xb66   :  { %7114 = vrsqrt.f32 %v3851_v43 }
 0xb67   :  { %v7107_v61 = vpop.eup %7106  ;;  %v3854_v5 = vadd.f32 1e-12, %v3846_v60  ;;  %v3853_v34 = vadd.f32 1e-12, %v3845_v17 }
 0xb68   :  { %v3865_v21 = vmul.f32 %v7107_v61, %v8132_v44  ;;  %v3839_v24 = vpop.xlane.xlu0 %3838 }
 0xb69   :  { %v7109_v8 = vpop.eup %7108  ;;  %7116 = vrsqrt.f32 %v3854_v5  ;;  %v3847_v30 = vmul.f32 0.03125, %v3839_v24 }
 0xb6a   :  { %7118 = vrsqrt.f32 %v3853_v34  ;;  %v3864_v46 = vmul.f32 %v7109_v8, %v8134_v52  ;;  %v3879_v50 = vmul.f32 %v6245_v29, %v3865_v21 }
 0xb6b   :  { %v3855_v9 = vadd.f32 1e-12, %v3847_v30 }
 0xb6c   :  { %v3878_v16 = vmul.f32 %v6245_v29, %v3864_v46  ;;  %v8183_v11 = vadd.f32 %v6246_v28, %v3879_v50 }
 0xb6d   :  { %7120 = vrsqrt.f32 %v3855_v9 }
 0xb6e   :  { %v7111_v31 = vpop.eup %7110  ;;  %v8181_v40 = vadd.f32 %v6246_v28, %v3878_v16 }
 0xb6f   :  { %v3866_v44 = vmul.f32 %v7111_v31, %v8142_v0 }
 0xb70   :  { %6767 = vmatprep.mubr.msk.f32.mxu0 %vm400_vm1, %v8181_v40 }
 0xb71   :  { %6768 = vmatmul.mubr.msk.f32.vlgmr.msra.gmra.mxu0 %vm400_vm1, %v8183_v11  ;;  %v3880_v33 = vmul.f32 %v6245_v29, %v3866_v44 }
 0xb72   :  { %v7113_v52 = vpop.eup %7112 }
 0xb73   :  { %v7115_v45 = vpop.eup %7114  ;;  %v8190_v25 = vadd.f32 %v6246_v28, %v3880_v33  ;;  %v3868_v14 = vmul.f32 %v7113_v52, %v8146_v53 }
 0xb74   :  { %v3867_v55 = vmul.f32 %v7115_v45, %v8148_v38 }
 0xb75   :  { %6770 = vmatprep.mubr.msk.f32.mxu0 %vm400_vm1, %v8190_v25  ;;  %v3882_v39 = vmul.f32 %v6245_v29, %v3868_v14 }
 0xb76   :  { %v7117_v0 = vpop.eup %7116  ;;  %v3881_v36 = vmul.f32 %v6245_v29, %v3867_v55 }
 0xb77   :  { %v7119_v1 = vpop.eup %7118  ;;  %v8196_v35 = vadd.f32 %v6246_v28, %v3882_v39  ;;  %v3870_v15 = vmul.f32 %v7117_v0, %v8155_v4 }
 0xb78   :  { %v8199_v42 = vadd.f32 %v6246_v28, %v3881_v36  ;;  %v3869_v2 = vmul.f32 %v7119_v1, %v8157_v22 }
 0xb79   :  { %v3884_v27 = vmul.f32 %v6245_v29, %v3870_v15 }
 0xb7a   :  { %v7121_v53 = vpop.eup %7120  ;;  %6771 = vmatmul.mubr.msk.f32.gmra.mxu0 %vm400_vm1, %v8199_v42  ;;  %v3883_v38 = vmul.f32 %v6245_v29, %v3869_v2 }
 0xb7b   :  { %6773 = vmatprep.mubr.msk.f32.mxu0 %vm400_vm1, %v8196_v35  ;;  %v8206_v54 = vadd.f32 %v6246_v28, %v3884_v27  ;;  %v3871_v4 = vmul.f32 %v7121_v53, %v8165_v57  ;;  %v4119_v57 = vld [vmem:[%s8793_s29 + $0x38] sm:$0xff] }
 0xb7c   :  { %v8209_v58 = vadd.f32 %v6246_v28, %v3883_v38  ;;  %6779 = vmatprep.subr.mxu1 %v4119_v57 }
 0xb7d   :  { %v3885_v32 = vmul.f32 %v6245_v29, %v3871_v4  ;;  %6780 = vmatpush3.msra.mxu1 %v4119_v57 }
 0xb7e   :  { %6774 = vmatmul.mubr.msk.f32.gmra.mxu0 %vm400_vm1, %v8209_v58  ;;  %6781 = vmatprep.subr.mxu1 %v4118_v13 }
 0xb7f   :  { %6776 = vmatprep.mubr.msk.f32.mxu0 %vm400_vm1, %v8206_v54  ;;  %v8215_v22 = vadd.f32 %v6246_v28, %v3885_v32  ;;  %6782 = vmatpush3.msra.mxu1 %v4118_v13 }
 0xb80   :  { %6783 = vmatprep.subr.mxu1 %v4117_v62 }
 0xb81   :  { %6784 = vmatpush3.msra.mxu1 %v4117_v62 }
 0xb82   :  { %6777 = vmatmul.mubr.msk.f32.gmra.mxu0 %vm400_vm1, %v8215_v22  ;;  %6785 = vmatprep.subr.mxu1 %v4116_v3 }
 0xb83   :  { %6815 = vmatprep.mubr.msk.f32.mxu0 %vm7287_vm4, %v7286_v26  ;;  %6786 = vmatpush3.msra.mxu1 %v4116_v3 }
 0xb84   :  { %6787 = vmatprep.subr.mxu1 %v4115_v47 }
 0xb85   :  { %6788 = vmatpush3.msra.mxu1 %v4115_v47 }
 0xb86   :  { %6789 = vmatprep.subr.mxu1 %v4114_v37 }
 0xb87   :  { %6790 = vmatpush3.msra.mxu1 %v4114_v37 }
 0xb88   :  { %6791 = vmatprep.subr.mxu1 %v4113_v63 }
 0xb89   :  { %6792 = vmatpush3.msra.mxu1 %v4113_v63 }
 0xb8a   :  { %6793 = vmatprep.subr.mxu1 %v4112_v51 }
 0xb8b   :  { %6794 = vmatpush3.msra.mxu1 %v4112_v51 }
 0xb8c   :  { %6829 = vmatprep.subr.mxu1 %v7286_v26 }
 0xc31   :  { %v6769_v41 = vpop.f32.mrf.mxu0 }
 0xc32   :  { %v8231_v48 = vadd.f32 %v6769_v41, %v6247_v59 }
 0xc33   :  { %v4001_v19 = vpop.f32.mrf.mxu0 }
 0xc34   :  { %v4041_v7 = vmul.f32 %v8231_v48, %v8231_v48  ;;  %v8235_v56 = vadd.f32 %v6247_v59, %v4001_v19 }
 0xc36   :  { %v4049_v18 = vmul.f32 %v4041_v7, %v8231_v48  ;;  %v4040_v20 = vmul.f32 %v8235_v56, %v8235_v56 }
 0xc38   :  { %v4057_v6 = vmul.f32 0.044715, %v4049_v18  ;;  %v4048_v10 = vmul.f32 %v4040_v20, %v8235_v56 }
 0xc3a   :  { %v4065_v43 = vadd.f32 %v4057_v6, %v8231_v48  ;;  %v4056_v49 = vmul.f32 0.044715, %v4048_v10  ;;  %v6772_v12 = vpop.f32.mrf.mxu0 }
 0xc3b   :  { %v8242_v60 = vadd.f32 %v6772_v12, %v6247_v59 }
 0xc3c   :  { %v4073_v17 = vmul.f32 0.7978846, %v4065_v43  ;;  %v4064_v61 = vadd.f32 %v4056_v49, %v8235_v56  ;;  %v4011_v5 = vpop.f32.mrf.mxu0 }
 0xc3d   :  { %v4043_v34 = vmul.f32 %v8242_v60, %v8242_v60  ;;  %v8247_v21 = vadd.f32 %v6247_v59, %v4011_v5 }
 0xc3e   :  { %7122 = vtanh.f32 %v4073_v17  ;;  %v4072_v24 = vmul.f32 0.7978846, %v4064_v61  ;;  %v6775_v29 = vpop.f32.mrf.mxu0 }
 0xc3f   :  { %v4051_v8 = vmul.f32 %v4043_v34, %v8242_v60  ;;  %v4042_v30 = vmul.f32 %v8247_v21, %v8247_v21  ;;  %v8252_v46 = vadd.f32 %v6775_v29, %v6247_v59 }
 0xc40   :  { %7124 = vtanh.f32 %v4072_v24  ;;  %v4021_v9 = vpop.f32.mrf.mxu0 }
 0xc41   :  { %v4059_v50 = vmul.f32 0.044715, %v4051_v8  ;;  %v4050_v28 = vmul.f32 %v4042_v30, %v8247_v21  ;;  %v4045_v16 = vmul.f32 %v8252_v46, %v8252_v46  ;;  %v8257_v31 = vadd.f32 %v6247_v59, %v4021_v9 }
 0xc42   :  { %v6778_v44 = vpop.f32.mrf.mxu0 }
 0xc43   :  { %v4067_v33 = vadd.f32 %v4059_v50, %v8242_v60  ;;  %v4058_v52 = vmul.f32 0.044715, %v4050_v28  ;;  %v4053_v45 = vmul.f32 %v4045_v16, %v8252_v46  ;;  %v4044_v14 = vmul.f32 %v8257_v31, %v8257_v31 }
 0xc44   :  { %v8263_v55 = vadd.f32 %v6778_v44, %v6247_v59  ;;  %v4031_v39 = vpop.f32.mrf.mxu0 }
 0xc45   :  { %v4075_v0 = vmul.f32 0.7978846, %v4067_v33  ;;  %v4066_v36 = vadd.f32 %v4058_v52, %v8247_v21  ;;  %v4061_v1 = vmul.f32 0.044715, %v4053_v45  ;;  %v4052_v15 = vmul.f32 %v4044_v14, %v8257_v31 }
 0xc46   :  { %v4047_v2 = vmul.f32 %v8263_v55, %v8263_v55  ;;  %v4032_v27 = vadd.f32 %v6247_v59, %v4031_v39 }
 0xc47   :  { %7126 = vtanh.f32 %v4075_v0  ;;  %v4074_v53 = vmul.f32 0.7978846, %v4066_v36  ;;  %v4069_v38 = vadd.f32 %v4061_v1, %v8252_v46  ;;  %v4060_v4 = vmul.f32 0.044715, %v4052_v15 }
 0xc48   :  { %v4055_v32 = vmul.f32 %v4047_v2, %v8263_v55  ;;  %v4046_v57 = vmul.f32 %v4032_v27, %v4032_v27 }
 0xc49   :  { %7128 = vtanh.f32 %v4074_v53  ;;  %v4077_v13 = vmul.f32 0.7978846, %v4069_v38  ;;  %v4068_v62 = vadd.f32 %v4060_v4, %v8257_v31 }
 0xc4a   :  { %v4063_v3 = vmul.f32 0.044715, %v4055_v32  ;;  %v4054_v47 = vmul.f32 %v4046_v57, %v4032_v27 }
 0xc4b   :  { %v7123_v37 = vpop.eup %7122  ;;  %7130 = vtanh.f32 %v4077_v13  ;;  %v4076_v63 = vmul.f32 0.7978846, %v4068_v62 }
 0xc4c   :  { %v4089_v51 = vadd.f32 1.0, %v7123_v37  ;;  %v4071_v59 = vadd.f32 %v4063_v3, %v8263_v55  ;;  %v4062_v41 = vmul.f32 0.044715, %v4054_v47 }
 0xc4d   :  { %v7125_v19 = vpop.eup %7124  ;;  %7132 = vtanh.f32 %v4076_v63 }
 0xc4e   :  { %v4079_v7 = vmul.f32 0.7978846, %v4071_v59  ;;  %v4070_v18 = vadd.f32 %v4062_v41, %v4032_v27  ;;  %v4088_v20 = vadd.f32 1.0, %v7125_v19  ;;  %v4097_v6 = vmul.f32 0.5, %v4089_v51 }
 0xc50   :  { %7134 = vtanh.f32 %v4079_v7  ;;  %v4078_v10 = vmul.f32 0.7978846, %v4070_v18  ;;  %v4096_v43 = vmul.f32 0.5, %v4088_v20  ;;  %v4105_v12 = vmul.f32 %v4097_v6, %v8231_v48 }
 0xc52   :  { %7136 = vtanh.f32 %v4078_v10  ;;  %v4104_v49 = vmul.f32 %v4096_v43, %v8235_v56 }
 0xc54   :  { %v7127_v17 = vpop.eup %7126  ;;  %6795 = vmatprep.mubr.msk.f32.mxu1 %vm4127_vm7, %v4104_v49 }
 0xc55   :  { %6796 = vmatmul.mubr.msk.f32.vlgmr.msra.gmra.mxu1 %vm4127_vm7, %v4105_v12  ;;  %v4091_v61 = vadd.f32 1.0, %v7127_v17 }
 0xc56   :  { %v7129_v5 = vpop.eup %7128 }
 0xc57   :  { %v4090_v34 = vadd.f32 1.0, %v7129_v5  ;;  %v4099_v29 = vmul.f32 0.5, %v4091_v61 }
 0xc58   :  { %v7131_v24 = vpop.eup %7130 }
 0xc59   :  { %v4098_v8 = vmul.f32 0.5, %v4090_v34  ;;  %v4093_v30 = vadd.f32 1.0, %v7131_v24  ;;  %v4107_v56 = vmul.f32 %v4099_v29, %v8242_v60 }
 0xc5a   :  { %v7133_v9 = vpop.eup %7132 }
 0xc5b   :  { %v4106_v50 = vmul.f32 %v4098_v8, %v8247_v21  ;;  %v4092_v28 = vadd.f32 1.0, %v7133_v9  ;;  %v4101_v16 = vmul.f32 0.5, %v4093_v30 }
 0xc5d   :  { %v7135_v48 = vpop.eup %7134  ;;  %6798 = vmatprep.mubr.msk.f32.mxu1 %vm4127_vm7, %v4106_v50  ;;  %v4100_v44 = vmul.f32 0.5, %v4092_v28  ;;  %v4109_v14 = vmul.f32 %v4101_v16, %v8252_v46 }
 0xc5e   :  { %6799 = vmatmul.mubr.msk.f32.gmra.mxu1 %vm4127_vm7, %v4107_v56  ;;  %v4095_v33 = vadd.f32 1.0, %v7135_v48 }
 0xc5f   :  { %v7137_v52 = vpop.eup %7136  ;;  %v4108_v45 = vmul.f32 %v4100_v44, %v8257_v31  ;;  %v6256_v31 = vld [vmem:[%s8795_s8] ss:$0 sm:$0xff] }
 0xc60   :  { %v4094_v39 = vadd.f32 1.0, %v7137_v52  ;;  %v4103_v21 = vmul.f32 0.5, %v4095_v33 }
 0xc61   :  { %6801 = vmatprep.mubr.msk.f32.mxu1 %vm4127_vm7, %v4108_v45 }
 0xc62   :  { %6802 = vmatmul.mubr.msk.f32.gmra.mxu1 %vm4127_vm7, %v4109_v14  ;;  %v4102_v60 = vmul.f32 0.5, %v4094_v39  ;;  %v4111_v36 = vmul.f32 %v4103_v21, %v8263_v55 }
 0xc64   :  { %v4110_v0 = vmul.f32 %v4102_v60, %v4032_v27 }
 0xc66   :  { %6804 = vmatprep.mubr.msk.f32.mxu1 %vm4127_vm7, %v4110_v0 }
 0xc67   :  { %6805 = vmatmul.mubr.msk.f32.gmra.mxu1 %vm4127_vm7, %v4111_v36 }
 0xc68   :  { %6837 = vmatprep.mubr.msk.f32.mxu1 %vm7287_vm4, %v7286_v26 }
 0xd15   :  { %v6797_v1 = vpop.f32.mrf.mxu1 }
 0xd16   :  { %v4224_v46 = vadd.f32 %v6797_v1, %v6256_v31 }
 0xd17   :  { %v4218_v15 = vpop.f32.mrf.mxu1 }
 0xd18   :  { %v4258_v2 = vadd.f32 %v4224_v46, %v8183_v11  ;;  %v4219_v53 = vadd.f32 %v6256_v31, %v4218_v15 }
 0xd1a   :  { %v4257_v38 = vadd.f32 %v4219_v53, %v8181_v40  ;;  %v4270_v27 = vsel %vm400_vm1, %v4258_v2, 0.0 }
 0xd1b   :  { %4271 = vadd.xlane.f32.xlu1 %v4270_v27 }
 0xd1c   :  { %v4267_v4 = vsel %vm400_vm1, %v4257_v38, 0.0 }
 0xd1e   :  { %v6800_v55 = vpop.f32.mrf.mxu1 }
 0xd1f   :  { %v4234_v32 = vadd.f32 %v6800_v55, %v6256_v31  ;;  %4268 = vadd.xlane.f32.xlu1 %v4267_v4 }
 0xd20   :  { %v4228_v57 = vpop.f32.mrf.mxu1 }
 0xd21   :  { %v4260_v13 = vadd.f32 %v4234_v32, %v8199_v42  ;;  %v4229_v62 = vadd.f32 %v6256_v31, %v4228_v57  ;;  %v4681_v57 = vld [vmem:[%s7470_s4] sm:$0xff] }
 0xd22   :  { %v6803_v3 = vpop.f32.mrf.mxu1 }
 0xd23   :  { %v4259_v47 = vadd.f32 %v4229_v62, %v8190_v25  ;;  %v4244_v37 = vadd.f32 %v6803_v3, %v6256_v31  ;;  %v4276_v11 = vsel %vm400_vm1, %v4260_v13, 0.0  ;;  %v4682_v62 = vld [vmem:[%s7470_s4 + $0x8] sm:$0xff]  ;;  %v4684_v3 = vld [vmem:[%s7470_s4 + $0x18] sm:$0xff] }
 0xd24   :  { %4277 = vadd.xlane.f32.xlu0 %v4276_v11  ;;  %v4238_v40 = vpop.f32.mrf.mxu1  ;;  %v4687_v11 = vld [vmem:[%s7470_s4 + $0x30] sm:$0xff] }
 0xd25   :  { %v4239_v63 = vadd.f32 %v6256_v31, %v4238_v40  ;;  %v4262_v51 = vadd.f32 %v4244_v37, %v8209_v58  ;;  %v4273_v19 = vsel %vm400_vm1, %v4259_v47, 0.0  ;;  %v4686_v37 = vld [vmem:[%s7470_s4 + $0x28] sm:$0xff]  ;;  %v4402_v40 = vld [vmem:[%s8796_s14 + $0x18] sm:$0xff] }
 0xd26   :  { %6808 = vmatpush3.msra.mxu0 %v4402_v40 }
 0xd27   :  { %v4261_v59 = vadd.f32 %v4239_v63, %v8196_v35  ;;  %v6806_v41 = vpop.f32.mrf.mxu1  ;;  %v4282_v6 = vsel %vm400_vm1, %v4262_v51, 0.0  ;;  %v4401_v63 = vld [vmem:[%s8796_s14 + $0x10] sm:$0xff]  ;;  %6809 = vmatprep.subr.mxu0 %v7286_v26 }
 0xd28   :  { %v4254_v7 = vadd.f32 %v6806_v41, %v6256_v31  ;;  %4274 = vadd.xlane.f32.xlu0 %v4273_v19  ;;  %6810 = vmatpush3.msra.mxu0 %v4401_v63 }
 0xd29   :  { %v4248_v42 = vpop.f32.mrf.mxu1  ;;  %v4279_v18 = vsel %vm400_vm1, %v4261_v59, 0.0  ;;  %6811 = vmatprep.subr.mxu0 %v7286_v26 }
 0xd2a   :  { %v4249_v20 = vadd.f32 %v6256_v31, %v4248_v42  ;;  %4280 = vadd.xlane.f32.xlu1 %v4279_v18  ;;  %v4264_v25 = vadd.f32 %v4254_v7, %v8215_v22 }
 0xd2c   :  { %v4263_v10 = vadd.f32 %v4249_v20, %v8206_v54  ;;  %4283 = vadd.xlane.f32.xlu0 %v4282_v6  ;;  %v4288_v35 = vsel %vm400_vm1, %v4264_v25, 0.0 }
 0xd2e   :  { %v4285_v58 = vsel %vm400_vm1, %v4263_v10, 0.0 }
 0xd2f   :  { %4286 = vadd.xlane.f32.xlu1 %v4285_v58 }
 0xd30   :  { %4289 = vadd.xlane.f32.xlu0 %v4288_v35 }
 0xda4   :  { %v4272_v43 = vpop.xlane.xlu1 %4271 }
 0xda5   :  { %v4292_v49 = vmul.f32 0.03125, %v4272_v43 }
 0xda7   :  { %v8307_v12 = vsub.f32 %v4258_v2, %v4292_v49 }
 0xda8   :  { %v4269_v17 = vpop.xlane.xlu1 %4268 }
 0xda9   :  { %v4291_v61 = vmul.f32 0.03125, %v4269_v17  ;;  %v4308_v22 = vmul.f32 %v8307_v12, %v8307_v12 }
 0xdab   :  { %v8311_v5 = vsub.f32 %v4257_v38, %v4291_v61  ;;  %v4318_v54 = vsel %vm400_vm1, %v4308_v22, 0.0 }
 0xdac   :  { %4319 = vadd.xlane.f32.xlu1 %v4318_v54 }
 0xdad   :  { %v4278_v34 = vpop.xlane.xlu0 %4277  ;;  %v4307_v24 = vmul.f32 %v8311_v5, %v8311_v5 }
 0xdae   :  { %v4294_v29 = vmul.f32 0.03125, %v4278_v34 }
 0xdaf   :  { %v4315_v8 = vsel %vm400_vm1, %v4307_v24, 0.0 }
 0xdb0   :  { %v8317_v30 = vsub.f32 %v4260_v13, %v4294_v29  ;;  %4316 = vadd.xlane.f32.xlu1 %v4315_v8  ;;  %v4683_v13 = vld [vmem:[%s7470_s4 + $0x10] sm:$0xff] }
 0xdb1   :  { %v4275_v9 = vpop.xlane.xlu0 %4274 }
 0xdb2   :  { %v4293_v50 = vmul.f32 0.03125, %v4275_v9  ;;  %v4310_v28 = vmul.f32 %v8317_v30, %v8317_v30 }
 0xdb3   :  { %v4281_v56 = vpop.xlane.xlu1 %4280 }
 0xdb4   :  { %v8321_v16 = vsub.f32 %v4259_v47, %v4293_v50  ;;  %v4295_v48 = vmul.f32 0.03125, %v4281_v56  ;;  %v4324_v44 = vsel %vm400_vm1, %v4310_v28, 0.0  ;;  %v4685_v47 = vld [vmem:[%s7470_s4 + $0x20] sm:$0xff]  ;;  %s8801_s4 = sld [smem:[#allocation13_spill]] }
 0xdb5   :  { %4325 = vadd.xlane.f32.xlu0 %v4324_v44  ;;  %v4284_v33 = vpop.xlane.xlu0 %4283 }
 0xdb6   :  { %v8324_v52 = vsub.f32 %v4261_v59, %v4295_v48  ;;  %v4296_v45 = vmul.f32 0.03125, %v4284_v33  ;;  %v4309_v14 = vmul.f32 %v8321_v16, %v8321_v16  ;;  %v4399_v59 = vld [vmem:[%s8796_s14] sm:$0xff] }
 0xdb7   :  { %v6265_v33 = vld [vmem:[%s8797_s19] ss:$0 sm:$0xff] }
 0xdb8   :  { %v8328_v39 = vsub.f32 %v4262_v51, %v4296_v45  ;;  %v4287_v21 = vpop.xlane.xlu1 %4286  ;;  %v4321_v60 = vsel %vm400_vm1, %v4309_v14, 0.0  ;;  %v4311_v0 = vmul.f32 %v8324_v52, %v8324_v52  ;;  %v4400_v51 = vld [vmem:[%s8796_s14 + $0x8] sm:$0xff] }
 0xdb9   :  { %v4297_v36 = vmul.f32 0.03125, %v4287_v21  ;;  %4322 = vadd.xlane.f32.xlu0 %v4321_v60  ;;  %v4290_v31 = vpop.xlane.xlu0 %4289  ;;  %6812 = vmatpush3.msra.mxu0 %v4400_v51 }
 0xdba   :  { %v4298_v1 = vmul.f32 0.03125, %v4290_v31  ;;  %v4327_v46 = vsel %vm400_vm1, %v4311_v0, 0.0  ;;  %v4312_v15 = vmul.f32 %v8328_v39, %v8328_v39  ;;  %6813 = vmatprep.subr.mxu0 %v7286_v26  ;;  %v6266_v0 = vld [vmem:[%s8798_s24] ss:$0 sm:$0xff] }
 0xdbb   :  { %v8336_v2 = vsub.f32 %v4263_v10, %v4297_v36  ;;  %4328 = vadd.xlane.f32.xlu1 %v4327_v46  ;;  %6814 = vmatpush3.msra.mxu0 %v4399_v59 }
 0xdbc   :  { %v8338_v53 = vsub.f32 %v4264_v25, %v4298_v1  ;;  %v4330_v38 = vsel %vm400_vm1, %v4312_v15, 0.0  ;;  %6818 = vmatprep.subr.mxu0 %v7286_v26 }
 0xdbd   :  { %4331 = vadd.xlane.f32.xlu0 %v4330_v38  ;;  %v4313_v27 = vmul.f32 %v8336_v2, %v8336_v2 }
 0xdbe   :  { %v4314_v55 = vmul.f32 %v8338_v53, %v8338_v53 }
 0xdbf   :  { %v4333_v4 = vsel %vm400_vm1, %v4313_v27, 0.0 }
 0xdc0   :  { %4334 = vadd.xlane.f32.xlu1 %v4333_v4  ;;  %v4336_v32 = vsel %vm400_vm1, %v4314_v55, 0.0 }
 0xdc1   :  { %4337 = vadd.xlane.f32.xlu0 %v4336_v32 }
 0xdd1   :  { %4689 = vperm.xlu1 %7024, %v4681_v57  }
 0xdd5   :  { %4695 = vperm.xlu1 %7024, %v4683_v13  }
 0xdd7   :  { %4692 = vperm.xlu0 %7023, %v4682_v62  }
 0xdd9   :  { %4698 = vperm.xlu1 %7024, %v4684_v3  }
 0xddb   :  { %4701 = vperm.xlu0 %7023, %v4685_v47  }
 0xddd   :  { %4704 = vperm.xlu1 %7024, %v4686_v37  }
 0xddf   :  { %4707 = vperm.xlu0 %7023, %v4687_v11  }
 0xe35   :  { %v4320_v41 = vpop.xlane.xlu1 %4319 }
 0xe36   :  { %v4340_v19 = vmul.f32 0.03125, %v4320_v41 }
 0xe38   :  { %v4348_v42 = vadd.f32 1e-12, %v4340_v19 }
 0xe39   :  { %v4317_v7 = vpop.xlane.xlu1 %4316 }
 0xe3a   :  { %v4339_v18 = vmul.f32 0.03125, %v4317_v7  ;;  %7138 = vrsqrt.f32 %v4348_v42 }
 0xe3c   :  { %v4347_v20 = vadd.f32 1e-12, %v4339_v18 }
 0xe3e   :  { %v4326_v25 = vpop.xlane.xlu0 %4325  ;;  %7140 = vrsqrt.f32 %v4347_v20 }
 0xe3f   :  { %v4342_v6 = vmul.f32 0.03125, %v4326_v25 }
 0xe41   :  { %v4350_v10 = vadd.f32 1e-12, %v4342_v6 }
 0xe42   :  { %v4323_v58 = vpop.xlane.xlu0 %4322 }
 0xe43   :  { %7142 = vrsqrt.f32 %v4350_v10  ;;  %v4341_v35 = vmul.f32 0.03125, %v4323_v58 }
 0xe44   :  { %v4329_v43 = vpop.xlane.xlu1 %4328 }
 0xe45   :  { %v4349_v49 = vadd.f32 1e-12, %v4341_v35  ;;  %v4343_v17 = vmul.f32 0.03125, %v4329_v43  ;;  %v4515_v35 = vld [vmem:[%s8799_s30 + $0x18] sm:$0xff]  ;;  %v4514_v43 = vld [vmem:[%s8799_s30 + $0x10] sm:$0xff] }
 0xe46   :  { %v4332_v61 = vpop.xlane.xlu0 %4331 }
 0xe47   :  { %7144 = vrsqrt.f32 %v4349_v49  ;;  %v4351_v22 = vadd.f32 1e-12, %v4343_v17  ;;  %v4344_v54 = vmul.f32 0.03125, %v4332_v61  ;;  %v7139_v9 = vpop.eup %7138  ;;  %v4513_v49 = vld [vmem:[%s8799_s30 + $0x8] sm:$0xff]  ;;  %v4512_v17 = vld [vmem:[%s8799_s30] sm:$0xff]  ;;  %v4600_v61 = vld [vmem:[%s8800_s12 + $0x18] sm:$0xff] }
 0xe48   :  { %v4364_v44 = vmul.f32 %v7139_v9, %v8307_v12  ;;  %6830 = vmatpush3.msra.mxu1 %v4600_v61 }
 0xe49   :  { %7146 = vrsqrt.f32 %v4351_v22  ;;  %v4352_v34 = vadd.f32 1e-12, %v4344_v54  ;;  %v4335_v24 = vpop.xlane.xlu1 %4334  ;;  %v4599_v22 = vld [vmem:[%s8800_s12 + $0x10] sm:$0xff]  ;;  %6831 = vmatprep.subr.mxu1 %v7286_v26  ;;  %v4598_v54 = vld [vmem:[%s8800_s12 + $0x8] sm:$0xff] }
 0xe4a   :  { %v4345_v29 = vmul.f32 0.03125, %v4335_v24  ;;  %v4338_v8 = vpop.xlane.xlu0 %4337  ;;  %v4378_v60 = vmul.f32 %v6265_v33, %v4364_v44  ;;  %6832 = vmatpush3.msra.mxu1 %v4599_v22 }
 0xe4b   :  { %7148 = vrsqrt.f32 %v4352_v34  ;;  %v4346_v50 = vmul.f32 0.03125, %v4338_v8  ;;  %v7141_v56 = vpop.eup %7140  ;;  %6833 = vmatprep.subr.mxu1 %v7286_v26  ;;  %v6267_v34 = vld [vmem:[%s8801_s4] ss:$0 sm:$0xff] }
 0xe4c   :  { %v4353_v28 = vadd.f32 1e-12, %v4345_v29  ;;  %v4363_v14 = vmul.f32 %v7141_v56, %v8311_v5  ;;  %v4392_v38 = vadd.f32 %v6266_v0, %v4378_v60  ;;  %6834 = vmatpush3.msra.mxu1 %v4598_v54  ;;  %v4730_v56 = vld [vmem:[%s8802_s22] sm:$0xff] }
 0xe4d   :  { %v4354_v48 = vadd.f32 1e-12, %v4346_v50  ;;  %6835 = vmatprep.subr.mxu1 %v7286_v26  ;;  %v4690_v9 = vpop.permute.xlu1 %4689  ;;  %v4731_v50 = vld [vmem:[%s8802_s22 + $0x8] sm:$0xff] }
 0xe4e   :  { %7150 = vrsqrt.f32 %v4353_v28  ;;  %v4377_v31 = vmul.f32 %v6265_v33, %v4363_v14  ;;  %vm4709_vm15 = vcmp.eq.s32.totalorder %v7504_v23, %v4690_v9 }
 0xe4f   :  { %7152 = vrsqrt.f32 %v4354_v48  ;;  %v6273_v44 = vsel %vm4709_vm15, 1.0, %v7286_v26  ;;  %vm6042_vm15 = vcmask 7168  }
 0xe50   :  { %v7143_v45 = vpop.eup %7142  ;;  %v4391_v4 = vadd.f32 %v6266_v0, %v4377_v31 }
 0xe51   :  { %v4366_v21 = vmul.f32 %v7143_v45, %v8317_v30  ;;  %v4418_v30 = vrot.slane %v4392_v38, 7  ;;  %v4597_v38 = vld [vmem:[%s8800_s12] sm:$0xff] }
 0xe52   :  { %v4693_v48 = vpop.permute.xlu0 %4692  ;;  %6836 = vmatpush3.msra.mxu1 %v4597_v38 }
 0xe53   :  { %v4380_v1 = vmul.f32 %v6265_v33, %v4366_v21  ;;  %vm4710_vm0 = vcmp.eq.s32.totalorder %v7504_v23, %v4693_v48  ;;  %6865 = vmatprep.subr.mxu1 %v7286_v26  ;;  %v8499_v48 = vld [vmem:[%s8808_s7] ss:$0 sm:$0xff] }
 0xe54   :  { %v7145_v36 = vpop.eup %7144  ;;  %v6274_v45 = vsel %vm4710_vm0, 1.0, %v7286_v26 }
 0xe55   :  { %v4365_v46 = vmul.f32 %v7145_v36, %v8321_v16  ;;  %v4394_v32 = vadd.f32 %v6266_v0, %v4380_v1 }
 0xe56   :  { %v7147_v15 = vpop.eup %7146  ;;  %v4702_v60 = vpop.permute.xlu0 %4701 }
 0xe57   :  { %v4379_v27 = vmul.f32 %v6265_v33, %v4365_v46  ;;  %v4367_v12 = vmul.f32 %v7147_v15, %v8324_v52  ;;  %v4424_v11 = vrot.slane %v4394_v32, 5  ;;  %v4420_v52 = vsel %vm4419_vm8, %v4418_v30, %v4391_v4 }
 0xe58   :  { %v7149_v55 = vpop.eup %7148  ;;  %vm4713_vm6 = vcmp.eq.s32.totalorder %v7504_v23, %v4702_v60 }
 0xe59   :  { %v4393_v57 = vadd.f32 %v6266_v0, %v4379_v27  ;;  %v4381_v13 = vmul.f32 %v6265_v33, %v4367_v12  ;;  %v4368_v5 = vmul.f32 %v7149_v55, %v8328_v39  ;;  %v6277_v31 = vsel %vm4713_vm6, 1.0, %v7286_v26  ;;  %v8435_v27 = vld [vmem:[%s8803_s23 + $0x8] sm:$0xff]  ;;  %v8438_v12 = vld [vmem:[%s8803_s23] sm:$0xff] }
 0xe5a   :  { %v4708_v1 = vpop.permute.xlu0 %4707  ;;  %v6269_v55 = vld [vmem:[%s8804_s26] ss:$0 sm:$0xff] }
 0xe5b   :  { %v7151_v62 = vpop.eup %7150  ;;  %v4421_v3 = vrot.slane %v4393_v57, 6  ;;  %v4395_v47 = vadd.f32 %v6266_v0, %v4381_v13  ;;  %v4382_v37 = vmul.f32 %v6265_v33, %v4368_v5  ;;  %vm4715_vm8 = vcmp.eq.s32.totalorder %v7504_v23, %v4708_v1  ;;  %v4854_v5 = vld [vmem:[%s8805_s28 + $0x8] sm:$0xff] }
 0xe5c   :  { %v7153_v16 = vpop.eup %7152  ;;  %v4369_v40 = vmul.f32 %v7151_v62, %v8336_v2  ;;  %v6279_v15 = vsel %vm4715_vm8, 1.0, %v7286_v26  ;;  %v4853_v62 = vld [vmem:[%s8805_s28] sm:$0xff] }
 0xe5d   :  { %v4370_v63 = vmul.f32 %v7153_v16, %v8338_v53  ;;  %v4396_v51 = vadd.f32 %v6266_v0, %v4382_v37  ;;  %v4423_v59 = vsel %vm4422_vm9, %v4421_v3, %v4420_v52  ;;  %v4427_v19 = vrot.slane %v4395_v47, 4 }
 0xe5e   :  { %v4383_v41 = vmul.f32 %v6265_v33, %v4369_v40  ;;  %v4426_v39 = vsel %vm4425_vm10, %v4424_v11, %v4423_v59 }
 0xe5f   :  { %v4384_v7 = vmul.f32 %v6265_v33, %v4370_v63  ;;  %v4430_v42 = vrot.slane %v4396_v51, 3  ;;  %v4429_v20 = vsel %vm4428_vm11, %v4427_v19, %v4426_v39  ;;  %v4696_v33 = vpop.permute.xlu1 %4695 }
 0xe60   :  { %v4397_v18 = vadd.f32 %v6266_v0, %v4383_v41  ;;  %vm4711_vm2 = vcmp.eq.s32.totalorder %v7504_v23, %v4696_v33 }
 0xe61   :  { %v4398_v25 = vadd.f32 %v6266_v0, %v4384_v7  ;;  %v4432_v6 = vsel %vm4431_vm12, %v4430_v42, %v4429_v20  ;;  %v6275_v21 = vsel %vm4711_vm2, 1.0, %v7286_v26  ;;  %v6271_v7 = vld [vmem:[%s8806_s1] ss:$0 sm:$0xff] }
 0xe62   :  { %v4433_v2 = vrot.slane %v4397_v18, 2 }
 0xe63   :  { %v4436_v53 = vrot.slane %v4398_v25, 1  ;;  %v4699_v14 = vpop.permute.xlu1 %4698 }
 0xe64   :  { %v4435_v10 = vsel %vm4434_vm13, %v4433_v2, %v4432_v6  ;;  %vm4712_vm3 = vcmp.eq.s32.totalorder %v7504_v23, %v4699_v14  ;;  %v6287_v2 = vld [vmem:[%s8807_s2] ss:$0 sm:$0xff] }
 0xe65   :  { %v4438_v58 = vsel %vm4437_vm14, %v4436_v53, %v4435_v10  ;;  %v6276_v0 = vsel %vm4712_vm3, 1.0, %v7286_v26 }
 0xe66   :  { %6816 = vmatmul.mubr.msk.f32.vlgmr.msra.gmra.mxu0 %vm400_vm1, %v4438_v58 }
 0xe67   :  { %6826 = vmatprep.mubr.msk.f32.mxu0 %vm7287_vm4, %v7286_v26  ;;  %6819 = vmatpush3.msra.mxu0 %v4515_v35  ;;  %v4705_v36 = vpop.permute.xlu1 %4704 }
 0xe68   :  { %6820 = vmatprep.subr.mxu0 %v7286_v26  ;;  %vm4714_vm7 = vcmp.eq.s32.totalorder %v7504_v23, %v4705_v36 }
 0xe69   :  { %6821 = vmatpush3.msra.mxu0 %v4514_v43  ;;  %v6278_v46 = vsel %vm4714_vm7, 1.0, %v7286_v26 }
 0xe6a   :  { %6822 = vmatprep.subr.mxu0 %v7286_v26 }
 0xe6b   :  { %6823 = vmatpush3.msra.mxu0 %v4513_v49 }
 0xe6c   :  { %6824 = vmatprep.subr.mxu0 %v7286_v26 }
 0xe6d   :  { %6825 = vmatpush3.msra.mxu0 %v4512_v17 }
 0xe6e   :  { %6840 = vmatprep.subr.mxu0 %v7286_v26 }
 0xf26   :  { %v4507_v24 = vpop.f32.mrf.mxu0 }
 0xf27   :  { %v4508_v29 = vadd.f32 %v6267_v34, %v4507_v24 }
 0xf28   :  { %v6817_v8 = vpop.f32.mrf.mxu0 }
 0xf29   :  { %7154 = vtanh.f32 %v4508_v29 }
 0xf36   :  { %v7155_v28 = vpop.eup %7154 }
 0xf37   :  { %6827 = vmatmul.mubr.msk.f32.vlgmr.msra.gmra.mxu0 %vm400_vm1, %v7155_v28 }
 0xf38   :  { %6841 = vmatpush3.msra.mxu0 %v4731_v50  ;;  %6844 = vmatprep.mubr.msk.f32.mxu0 %vm7287_vm4, %v7286_v26 }
 0xf39   :  { %6842 = vmatprep.subr.mxu0 %v7286_v26 }
 0xf3a   :  { %6843 = vmatpush3.msra.mxu0 %v4730_v56 }
 0xf3b   :  { %6845 = vmatmul.mubr.msk.f32.vlgmr.msra.gmra.mxu0 %vm875_vm5, %v6273_v44  ;;  %6890 = vmatprep.subr.mxu0 %v7286_v26 }
 0xf3c   :  { %6847 = vmatprep.mubr.msk.f32.mxu0 %vm7287_vm4, %v7286_v26  ;;  %6891 = vmatpush3.msra.mxu0 %v8435_v27 }
 0xf3d   :  { %6892 = vmatprep.subr.mxu0 %v7286_v26 }
 0xf3e   :  { %6893 = vmatpush3.msra.mxu0 %v8438_v12 }
 0xf3f   :  { %6848 = vmatmul.mubr.msk.f32.gmra.mxu0 %vm875_vm5, %v6274_v45  ;;  %6897 = vmatprep.subr.mxu0 %v7286_v26 }
 0xf40   :  { %6850 = vmatprep.mubr.msk.f32.mxu0 %vm7287_vm4, %v7286_v26 }
 0xf43   :  { %6851 = vmatmul.mubr.msk.f32.gmra.mxu0 %vm875_vm5, %v6275_v21 }
 0xf44   :  { %6853 = vmatprep.mubr.msk.f32.mxu0 %vm7287_vm4, %v7286_v26 }
 0xf47   :  { %6854 = vmatmul.mubr.msk.f32.gmra.mxu0 %vm875_vm5, %v6276_v0 }
 0xf48   :  { %6856 = vmatprep.mubr.msk.f32.mxu0 %vm7287_vm4, %v7286_v26 }
 0xf4b   :  { %6857 = vmatmul.mubr.msk.f32.gmra.mxu0 %vm875_vm5, %v6277_v31 }
 0xf4c   :  { %6859 = vmatprep.mubr.msk.f32.mxu0 %vm7287_vm4, %v7286_v26 }
 0xf4f   :  { %6860 = vmatmul.mubr.msk.f32.gmra.mxu0 %vm875_vm5, %v6278_v46 }
 0xf50   :  { %6862 = vmatprep.mubr.msk.f32.mxu0 %vm7287_vm4, %v7286_v26 }
 0xf53   :  { %6863 = vmatmul.mubr.msk.f32.gmra.mxu0 %vm875_vm5, %v6279_v15 }
 0xf54   :  { %6894 = vmatprep.mubr.msk.f32.mxu0 %vm7287_vm4, %v7286_v26 }
 0xff7   :  { %v4592_v4 = vpop.f32.mrf.mxu0 }
 0xff8   :  { %v4593_v32 = vadd.f32 %v6269_v55, %v4592_v4 }
 0xff9   :  { %v6828_v57 = vpop.f32.mrf.mxu0 }
 0xffa   :  { %v4596_v13 = vmax.f32 %v4593_v32, 0.0 }
 0xffb   :  { %v4819_v30 = vpop.f32.mrf.mxu0 }
 0xffc   :  { %6838 = vmatmul.mubr.msk.f32.vlgmr.msra.gmra.mxu1 %vm400_vm1, %v4596_v13 }
 0xffd   :  { %v6846_v3 = vpop.f32.mrf.mxu0  ;;  %6866 = vmatpush3.msra.mxu1 %v4854_v5  ;;  %6869 = vmatprep.mubr.msk.f32.mxu1 %vm7287_vm4, %v7286_v26 }
 0xffe   :  { %6867 = vmatprep.subr.mxu1 %v7286_v26 }
 0xfff   :  { %v4824_v47 = vpop.f32.mrf.mxu0  ;;  %6868 = vmatpush3.msra.mxu1 %v4853_v62 }
0x1000   :  { %6870 = vmatmul.mubr.msk.f32.vlgmr.msra.gmra.mxu1 %vm875_vm5, %v4819_v30  ;;  %6904 = vmatprep.subr.mxu1 %v7286_v26 }
0x1001   :  { %v6849_v37 = vpop.f32.mrf.mxu0  ;;  %6872 = vmatprep.mubr.msk.f32.mxu1 %vm7287_vm4, %v7286_v26  ;;  %6905 = vmatpush3.msra.mxu1 %v8435_v27 }
0x1002   :  { %6906 = vmatprep.subr.mxu1 %v7286_v26 }
0x1003   :  { %v4829_v16 = vpop.f32.mrf.mxu0  ;;  %6907 = vmatpush3.msra.mxu1 %v8438_v12 }
0x1004   :  { %6873 = vmatmul.mubr.msk.f32.gmra.mxu1 %vm875_vm5, %v4824_v47  ;;  %6918 = vmatprep.subr.mxu1 %v7286_v26 }
0x1005   :  { %v6852_v11 = vpop.f32.mrf.mxu0  ;;  %6875 = vmatprep.mubr.msk.f32.mxu1 %vm7287_vm4, %v7286_v26 }
0x1007   :  { %v4834_v40 = vpop.f32.mrf.mxu0 }
0x1008   :  { %6876 = vmatmul.mubr.msk.f32.gmra.mxu1 %vm875_vm5, %v4829_v16 }
0x1009   :  { %v6855_v52 = vpop.f32.mrf.mxu0  ;;  %6878 = vmatprep.mubr.msk.f32.mxu1 %vm7287_vm4, %v7286_v26 }
0x100b   :  { %v4839_v63 = vpop.f32.mrf.mxu0 }
0x100c   :  { %6879 = vmatmul.mubr.msk.f32.gmra.mxu1 %vm875_vm5, %v4834_v40 }
0x100d   :  { %v6858_v51 = vpop.f32.mrf.mxu0  ;;  %6881 = vmatprep.mubr.msk.f32.mxu1 %vm7287_vm4, %v7286_v26 }
0x100f   :  { %v4844_v59 = vpop.f32.mrf.mxu0 }
0x1010   :  { %6882 = vmatmul.mubr.msk.f32.gmra.mxu1 %vm875_vm5, %v4839_v63 }
0x1011   :  { %v6861_v41 = vpop.f32.mrf.mxu0  ;;  %6884 = vmatprep.mubr.msk.f32.mxu1 %vm7287_vm4, %v7286_v26 }
0x1013   :  { %v4849_v39 = vpop.f32.mrf.mxu0 }
0x1014   :  { %6885 = vmatmul.mubr.msk.f32.gmra.mxu1 %vm875_vm5, %v4844_v59 }
0x1015   :  { %v6864_v19 = vpop.f32.mrf.mxu0  ;;  %6887 = vmatprep.mubr.msk.f32.mxu1 %vm7287_vm4, %v7286_v26 }
0x1018   :  { %6888 = vmatmul.mubr.msk.f32.gmra.mxu1 %vm875_vm5, %v4849_v39 }
0x1019   :  { %6908 = vmatprep.mubr.msk.f32.mxu1 %vm7287_vm4, %v7286_v26 }
0x10bc   :  { %v4677_v42 = vpop.f32.mrf.mxu1 }
0x10bd   :  { %v4678_v18 = vadd.f32 %v6271_v7, %v4677_v42 }
0x10be   :  { %v6839_v20 = vpop.f32.mrf.mxu1 }
0x10bf   :  { %6895 = vmatmul.mubr.msk.f32.vlgmr.msra.gmra.mxu0 %vm875_vm5, %v4678_v18 }
0x10c0   :  { %v4949_v25 = vpop.f32.mrf.mxu1  ;;  %6898 = vmatpush3.msra.mxu0 %v8435_v27  ;;  %6901 = vmatprep.mubr.msk.f32.mxu0 %vm7287_vm4, %v7286_v26 }
0x10c1   :  { %6899 = vmatprep.subr.mxu0 %v7286_v26  ;;  %v4950_v14 = vadd.f32 %v6287_v2, %v4949_v25 }
0x10c2   :  { %v6871_v6 = vpop.f32.mrf.mxu1  ;;  %6900 = vmatpush3.msra.mxu0 %v8438_v12 }
0x10c3   :  { %6911 = vmatprep.subr.mxu0 %v7286_v26 }
0x10c4   :  { %v4954_v53 = vpop.f32.mrf.mxu1 }
0x10c5   :  { %v8486_v10 = vadd.f32 %v6287_v2, %v4954_v53 }
0x10c6   :  { %v6874_v58 = vpop.f32.mrf.mxu1 }
0x10c8   :  { %v4959_v35 = vpop.f32.mrf.mxu1 }
0x10c9   :  { %v8488_v43 = vadd.f32 %v6287_v2, %v4959_v35 }
0x10ca   :  { %v6877_v49 = vpop.f32.mrf.mxu1 }
0x10cc   :  { %v4964_v17 = vpop.f32.mrf.mxu1 }
0x10cd   :  { %v8490_v61 = vadd.f32 %v6287_v2, %v4964_v17 }
0x10ce   :  { %v6880_v22 = vpop.f32.mrf.mxu1 }
0x10d0   :  { %v4969_v54 = vpop.f32.mrf.mxu1 }
0x10d1   :  { %v8492_v34 = vadd.f32 %v6287_v2, %v4969_v54 }
0x10d2   :  { %v6883_v24 = vpop.f32.mrf.mxu1 }
0x10d4   :  { %v4974_v29 = vpop.f32.mrf.mxu1 }
0x10d5   :  { %v8494_v8 = vadd.f32 %v6287_v2, %v4974_v29 }
0x10d6   :  { %v6886_v9 = vpop.f32.mrf.mxu1 }
0x10d8   :  { %v4979_v50 = vpop.f32.mrf.mxu1 }
0x10d9   :  { %v8496_v28 = vadd.f32 %v6287_v2, %v4979_v50 }
0x10da   :  { %v6889_v56 = vpop.f32.mrf.mxu1 }
0x117f   :  { %v5061_v44 = vpop.f32.mrf.mxu0 }
0x1180   :  { %v5062_v33 = vadd.f32 %v8499_v48, %v5061_v44 }
0x1181   :  { %v6896_v45 = vpop.f32.mrf.mxu0 }
0x1182   :  { %5073 = vrot.lane.b32.xlu1 %v5062_v33, %s7288_s0  ;;  %v5065_v21 = vadd.f32 %v5062_v33, %v4950_v14 }
0x1184   :  { %v6297_v60 = vmul.f32 -1.442695, %v5065_v21 }
0x1186   :  { %7156 = vpow2.f32 %v6297_v60 }
0x1193   :  { %v7157_v0 = vpop.eup %7156 }
0x1194   :  { %v5069_v36 = vadd.f32 1.0, %v7157_v0 }
0x1196   :  { %7158 = vrcp.f32 %v5069_v36 }
0x11a3   :  { %v7159_v31 = vpop.eup %7158 }
0x11a4   :  { %v5083_v32 = vsub.f32 1.0, %v7159_v31 }
0x11f4   :  { %v5074_v1 = vpop.permute.xlu1 %5073 }
0x11f5   :  { %v5076_v46 = vmul.f32 %v7159_v31, %v5074_v1 }
0x11f7   :  { %5078 = vrot.lane.b32.xlu0 %v5076_v46, %s7295_s10 }
0x11fb   :  { %5089 = vrot.lane.b32.xlu0 %v4678_v18, %s7294_s21 }
0x1269   :  { %v5079_v15 = vpop.permute.xlu0 %5078 }
0x126a   :  { %v5081_v38 = vadd.f32 %v5079_v15, %v4950_v14 }
0x126c   :  { %7160 = vtanh.f32 %v5081_v38 }
0x126d   :  { %v5090_v4 = vpop.permute.xlu0 %5089 }
0x126e   :  { %v5092_v13 = vmul.f32 %v7159_v31, %v5090_v4 }
0x1279   :  { %v7161_v55 = vpop.eup %7160 }
0x127a   :  { %5085 = vrot.lane.b32.xlu1 %v7161_v55, %s7291_s17 }
0x12ec   :  { %v5086_v57 = vpop.permute.xlu1 %5085 }
0x12ed   :  { %v5088_v5 = vmul.f32 %v5086_v57, %v5083_v32 }
0x12ef   :  { %v5093_v30 = vadd.f32 %v5092_v13, %v5088_v5 }
0x12f1   :  { %5095 = vrot.lane.b32.xlu1 %v5093_v30, %s7291_s17 }
0x1363   :  { %v5096_v62 = vpop.permute.xlu1 %5095 }
0x1364   :  { %5098 = vst.msk [vmem:[#allocation2] sm:$0xff] %vm875_vm5, %v5096_v62  ;;  %6902 = vmatmul.mubr.msk.f32.vlgmr.msra.gmra.mxu0 %vm875_vm5, %v5096_v62 }
0x1365   :  { %6912 = vmatpush3.msra.mxu0 %v8435_v27  ;;  %6915 = vmatprep.mubr.msk.f32.mxu0 %vm7287_vm4, %v7286_v26 }
0x1366   :  { %6913 = vmatprep.subr.mxu0 %v7286_v26 }
0x1367   :  { %6914 = vmatpush3.msra.mxu0 %v8438_v12 }
0x1368   :  { %6925 = vmatprep.subr.mxu0 %v7286_v26 }
0x1424   :  { %v5167_v3 = vpop.f32.mrf.mxu0 }
0x1425   :  { %v5168_v47 = vadd.f32 %v8499_v48, %v5167_v3 }
0x1426   :  { %v6903_v37 = vpop.f32.mrf.mxu0 }
0x1427   :  { %5179 = vrot.lane.b32.xlu0 %v5168_v47, %s7288_s0  ;;  %v5171_v16 = vadd.f32 %v5168_v47, %v8486_v10 }
0x1429   :  { %v6299_v11 = vmul.f32 -1.442695, %v5171_v16 }
0x142b   :  { %7162 = vpow2.f32 %v6299_v11 }
0x1438   :  { %v7163_v40 = vpop.eup %7162 }
0x1439   :  { %v5175_v52 = vadd.f32 1.0, %v7163_v40 }
0x143b   :  { %7164 = vrcp.f32 %v5175_v52 }
0x1448   :  { %v7165_v63 = vpop.eup %7164 }
0x1449   :  { %v5189_v7 = vsub.f32 1.0, %v7165_v63  ;;  %v5195_v18 = vmul.f32 %v7165_v63, %v5093_v30 }
0x1499   :  { %v5180_v51 = vpop.permute.xlu0 %5179 }
0x149a   :  { %v5182_v59 = vmul.f32 %v7165_v63, %v5180_v51 }
0x149c   :  { %5184 = vrot.lane.b32.xlu1 %v5182_v59, %s7295_s10 }
0x150e   :  { %v5185_v41 = vpop.permute.xlu1 %5184 }
0x150f   :  { %v5187_v39 = vadd.f32 %v5185_v41, %v8486_v10 }
0x1511   :  { %7166 = vtanh.f32 %v5187_v39 }
0x151e   :  { %v7167_v19 = vpop.eup %7166 }
0x151f   :  { %5191 = vrot.lane.b32.xlu0 %v7167_v19, %s7291_s17 }
0x1591   :  { %v5192_v42 = vpop.permute.xlu0 %5191 }
0x1592   :  { %v5194_v20 = vmul.f32 %v5192_v42, %v5189_v7 }
0x1594   :  { %v5196_v25 = vadd.f32 %v5195_v18, %v5194_v20 }
0x1596   :  { %5198 = vrot.lane.b32.xlu1 %v5196_v25, %s7291_s17 }
0x1608   :  { %v5199_v6 = vpop.permute.xlu1 %5198 }
0x1609   :  { %5202 = vst.msk [vmem:[#allocation2 + $0x8] sm:$0xff] %vm875_vm5, %v5199_v6  ;;  %6909 = vmatmul.mubr.msk.f32.vlgmr.msra.gmra.mxu1 %vm875_vm5, %v5199_v6 }
0x160a   :  { %6919 = vmatpush3.msra.mxu1 %v8435_v27  ;;  %6922 = vmatprep.mubr.msk.f32.mxu1 %vm7287_vm4, %v7286_v26 }
0x160b   :  { %6920 = vmatprep.subr.mxu1 %v7286_v26 }
0x160c   :  { %6921 = vmatpush3.msra.mxu1 %v8438_v12 }
0x160d   :  { %6932 = vmatprep.subr.mxu1 %v7286_v26 }
0x16c9   :  { %v5271_v2 = vpop.f32.mrf.mxu1 }
0x16ca   :  { %v5272_v53 = vadd.f32 %v8499_v48, %v5271_v2  ;;  %v5730_v2 = vld [vmem:[%s8809_s11] sm:$0xff] }
0x16cb   :  { %v6910_v10 = vpop.f32.mrf.mxu1 }
0x16cc   :  { %5283 = vrot.lane.b32.xlu0 %v5272_v53, %s7288_s0  ;;  %v5275_v58 = vadd.f32 %v5272_v53, %v8488_v43  ;;  %v5724_v53 = vld [vmem:[#allocation2 + $0x8] sm:$0xff] }
0x16ce   :  { %v6301_v35 = vmul.f32 -1.442695, %v5275_v58 }
0x16d0   :  { %7168 = vpow2.f32 %v6301_v35 }
0x16dd   :  { %v7169_v49 = vpop.eup %7168 }
0x16de   :  { %v5279_v17 = vadd.f32 1.0, %v7169_v49 }
0x16e0   :  { %7170 = vrcp.f32 %v5279_v17 }
0x16ed   :  { %v7171_v22 = vpop.eup %7170 }
0x16ee   :  { %v5293_v56 = vsub.f32 1.0, %v7171_v22  ;;  %v5299_v33 = vmul.f32 %v7171_v22, %v5196_v25  ;;  %v5731_v25 = vld [vmem:[%s8809_s11 + $0x8] sm:$0xff] }
0x173e   :  { %v5284_v54 = vpop.permute.xlu0 %5283 }
0x173f   :  { %v5286_v24 = vmul.f32 %v7171_v22, %v5284_v54 }
0x1741   :  { %5288 = vrot.lane.b32.xlu1 %v5286_v24, %s7295_s10 }
0x17b3   :  { %v5289_v29 = vpop.permute.xlu1 %5288 }
0x17b4   :  { %v5291_v9 = vadd.f32 %v5289_v29, %v8488_v43 }
0x17b6   :  { %7172 = vtanh.f32 %v5291_v9 }
0x17c3   :  { %v7173_v50 = vpop.eup %7172 }
0x17c4   :  { %5295 = vrot.lane.b32.xlu0 %v7173_v50, %s7291_s17 }
0x1836   :  { %v5296_v44 = vpop.permute.xlu0 %5295 }
0x1837   :  { %v5298_v45 = vmul.f32 %v5296_v44, %v5293_v56 }
0x1839   :  { %v5300_v14 = vadd.f32 %v5299_v33, %v5298_v45 }
0x183b   :  { %5302 = vrot.lane.b32.xlu1 %v5300_v14, %s7291_s17 }
0x18ad   :  { %v5303_v21 = vpop.permute.xlu1 %5302 }
0x18ae   :  { %5306 = vst.msk [vmem:[#allocation2 + $0x10] sm:$0xff] %vm875_vm5, %v5303_v21  ;;  %6916 = vmatmul.mubr.msk.f32.vlgmr.msra.gmra.mxu0 %vm875_vm5, %v5303_v21 }
0x18af   :  { %6926 = vmatpush3.msra.mxu0 %v8435_v27  ;;  %6929 = vmatprep.mubr.msk.f32.mxu0 %vm7287_vm4, %v7286_v26 }
0x18b0   :  { %6927 = vmatprep.subr.mxu0 %v7286_v26 }
0x18b1   :  { %6928 = vmatpush3.msra.mxu0 %v8438_v12 }
0x18b2   :  { %6939 = vmatprep.subr.mxu0 %v7286_v26 }
0x18b5   :  { %v5725_v10 = vld [vmem:[#allocation2 + $0x10] sm:$0xff] }
0x196e   :  { %v5375_v43 = vpop.f32.mrf.mxu0 }
0x196f   :  { %v5376_v60 = vadd.f32 %v8499_v48, %v5375_v43 }
0x1970   :  { %v6917_v0 = vpop.f32.mrf.mxu0 }
0x1971   :  { %5387 = vrot.lane.b32.xlu0 %v5376_v60, %s7288_s0  ;;  %v5379_v36 = vadd.f32 %v5376_v60, %v8490_v61 }
0x1973   :  { %v6303_v31 = vmul.f32 -1.442695, %v5379_v36 }
0x1975   :  { %7174 = vpow2.f32 %v6303_v31 }
0x1982   :  { %v7175_v1 = vpop.eup %7174 }
0x1983   :  { %v5383_v46 = vadd.f32 1.0, %v7175_v1 }
0x1985   :  { %7176 = vrcp.f32 %v5383_v46 }
0x1992   :  { %v7177_v15 = vpop.eup %7176 }
0x1993   :  { %v5397_v13 = vsub.f32 1.0, %v7177_v15  ;;  %v5403_v30 = vmul.f32 %v7177_v15, %v5300_v14 }
0x19e3   :  { %v5388_v38 = vpop.permute.xlu0 %5387 }
0x19e4   :  { %v5390_v55 = vmul.f32 %v7177_v15, %v5388_v38 }
0x19e6   :  { %5392 = vrot.lane.b32.xlu1 %v5390_v55, %s7295_s10 }
0x1a58   :  { %v5393_v4 = vpop.permute.xlu1 %5392 }
0x1a59   :  { %v5395_v32 = vadd.f32 %v5393_v4, %v8490_v61 }
0x1a5b   :  { %7178 = vtanh.f32 %v5395_v32 }
0x1a68   :  { %v7179_v57 = vpop.eup %7178 }
0x1a69   :  { %5399 = vrot.lane.b32.xlu0 %v7179_v57, %s7291_s17 }
0x1adb   :  { %v5400_v5 = vpop.permute.xlu0 %5399 }
0x1adc   :  { %v5402_v62 = vmul.f32 %v5400_v5, %v5397_v13 }
0x1ade   :  { %v5404_v3 = vadd.f32 %v5403_v30, %v5402_v62 }
0x1ae0   :  { %5406 = vrot.lane.b32.xlu1 %v5404_v3, %s7291_s17 }
0x1b52   :  { %v5407_v47 = vpop.permute.xlu1 %5406 }
0x1b53   :  { %5410 = vst.msk [vmem:[#allocation2 + $0x18] sm:$0xff] %vm875_vm5, %v5407_v47  ;;  %6923 = vmatmul.mubr.msk.f32.vlgmr.msra.gmra.mxu1 %vm875_vm5, %v5407_v47 }
0x1b54   :  { %6933 = vmatpush3.msra.mxu1 %v8435_v27  ;;  %6936 = vmatprep.mubr.msk.f32.mxu1 %vm7287_vm4, %v7286_v26 }
0x1b55   :  { %6934 = vmatprep.subr.mxu1 %v7286_v26 }
0x1b56   :  { %6935 = vmatpush3.msra.mxu1 %v8438_v12 }
0x1b5a   :  { %v5726_v58 = vld [vmem:[#allocation2 + $0x18] sm:$0xff] }
0x1c13   :  { %v5479_v61 = vpop.f32.mrf.mxu1 }
0x1c14   :  { %v5480_v37 = vadd.f32 %v8499_v48, %v5479_v61 }
0x1c15   :  { %v6924_v16 = vpop.f32.mrf.mxu1 }
0x1c16   :  { %5491 = vrot.lane.b32.xlu0 %v5480_v37, %s7288_s0  ;;  %v5483_v11 = vadd.f32 %v5480_v37, %v8492_v34 }
0x1c18   :  { %v6305_v40 = vmul.f32 -1.442695, %v5483_v11 }
0x1c1a   :  { %7180 = vpow2.f32 %v6305_v40 }
0x1c27   :  { %v7181_v52 = vpop.eup %7180 }
0x1c28   :  { %v5487_v63 = vadd.f32 1.0, %v7181_v52 }
0x1c2a   :  { %7182 = vrcp.f32 %v5487_v63 }
0x1c37   :  { %v7183_v27 = vpop.eup %7182 }
0x1c38   :  { %v5501_v19 = vsub.f32 1.0, %v7183_v27  ;;  %v5507_v42 = vmul.f32 %v7183_v27, %v5404_v3 }
0x1c88   :  { %v5492_v51 = vpop.permute.xlu0 %5491 }
0x1c89   :  { %v5494_v59 = vmul.f32 %v7183_v27, %v5492_v51 }
0x1c8b   :  { %5496 = vrot.lane.b32.xlu1 %v5494_v59, %s7295_s10 }
0x1cfd   :  { %v5497_v12 = vpop.permute.xlu1 %5496 }
0x1cfe   :  { %v5499_v41 = vadd.f32 %v5497_v12, %v8492_v34  ;;  %v5723_v34 = vld [vmem:[#allocation2] sm:$0xff] }
0x1cff   :  { %v8611_v12 = vld [vmem:[%s7465_s27] ss:$0 sm:$0xff] }
0x1d00   :  { %7184 = vtanh.f32 %v5499_v41 }
0x1d0d   :  { %v7185_v39 = vpop.eup %7184 }
0x1d0e   :  { %5503 = vrot.lane.b32.xlu0 %v7185_v39, %s7291_s17 }
0x1d80   :  { %v5504_v7 = vpop.permute.xlu0 %5503 }
0x1d81   :  { %v5506_v18 = vmul.f32 %v5504_v7, %v5501_v19 }
0x1d83   :  { %v5508_v20 = vadd.f32 %v5507_v42, %v5506_v18 }
0x1d85   :  { %5510 = vrot.lane.b32.xlu1 %v5508_v20, %s7291_s17 }
0x1df7   :  { %v5511_v6 = vpop.permute.xlu1 %5510 }
0x1df8   :  { %5514 = vst.msk [vmem:[#allocation2 + $0x20] sm:$0xff] %vm875_vm5, %v5511_v6  ;;  %6930 = vmatmul.mubr.msk.f32.vlgmr.msra.gmra.mxu0 %vm875_vm5, %v5511_v6 }
0x1df9   :  { %6940 = vmatpush3.msra.mxu0 %v5731_v25  ;;  %6943 = vmatprep.mubr.msk.f32.mxu0 %vm7287_vm4, %v7286_v26 }
0x1dfa   :  { %6941 = vmatprep.subr.mxu0 %v7286_v26 }
0x1dfb   :  { %6942 = vmatpush3.msra.mxu0 %v5730_v2 }
0x1dfc   :  { %6944 = vmatmul.mubr.msk.f32.vlgmr.msra.gmra.mxu0 %vm875_vm5, %v5723_v34 }
0x1dfd   :  { %6946 = vmatprep.mubr.msk.f32.mxu0 %vm7287_vm4, %v7286_v26 }
0x1dff   :  { %v5727_v35 = vld [vmem:[#allocation2 + $0x20] sm:$0xff] }
0x1e00   :  { %6947 = vmatmul.mubr.msk.f32.gmra.mxu0 %vm875_vm5, %v5724_v53 }
0x1e01   :  { %6949 = vmatprep.mubr.msk.f32.mxu0 %vm7287_vm4, %v7286_v26 }
0x1e04   :  { %6950 = vmatmul.mubr.msk.f32.gmra.mxu0 %vm875_vm5, %v5725_v10 }
0x1e05   :  { %6952 = vmatprep.mubr.msk.f32.mxu0 %vm7287_vm4, %v7286_v26 }
0x1e08   :  { %6953 = vmatmul.mubr.msk.f32.gmra.mxu0 %vm875_vm5, %v5726_v58 }
0x1e09   :  { %6955 = vmatprep.mubr.msk.f32.mxu0 %vm7287_vm4, %v7286_v26 }
0x1e0c   :  { %6956 = vmatmul.mubr.msk.f32.gmra.mxu0 %vm875_vm5, %v5727_v35 }
0x1e0d   :  { %6958 = vmatprep.mubr.msk.f32.mxu0 %vm7287_vm4, %v7286_v26 }
0x1eb8   :  { %v5583_v49 = vpop.f32.mrf.mxu0 }
0x1eb9   :  { %v5584_v17 = vadd.f32 %v8499_v48, %v5583_v49 }
0x1eba   :  { %v6931_v22 = vpop.f32.mrf.mxu0 }
0x1ebb   :  { %5595 = vrot.lane.b32.xlu0 %v5584_v17, %s7288_s0  ;;  %v5587_v21 = vadd.f32 %v5584_v17, %v8494_v8 }
0x1ebc   :  { %v5826_v54 = vpop.f32.mrf.mxu0 }
0x1ebd   :  { %v6307_v43 = vmul.f32 -1.442695, %v5587_v21  ;;  %v8614_v41 = vadd.f32 %v8611_v12, %v5826_v54 }
0x1ebe   :  { %v6945_v24 = vpop.f32.mrf.mxu0 }
0x1ebf   :  { %7186 = vpow2.f32 %v6307_v43  ;;  %v5860_v19 = vsel %vm875_vm5, %v8614_v41, -inf }
0x1ec0   :  { %v8590_v29 = vpop.f32.mrf.mxu0 }
0x1ec1   :  { %v8636_v10 = vadd.f32 %v8611_v12, %v8590_v29 }
0x1ec2   :  { %v6948_v9 = vpop.f32.mrf.mxu0 }
0x1ec3   :  { %v5863_v35 = vsel %vm875_vm5, %v8636_v10, -inf }
0x1ec4   :  { %v5836_v50 = vpop.f32.mrf.mxu0 }
0x1ec5   :  { %v8617_v39 = vadd.f32 %v8611_v12, %v5836_v50 }
0x1ec6   :  { %v6951_v56 = vpop.f32.mrf.mxu0 }
0x1ec8   :  { %v5841_v44 = vpop.f32.mrf.mxu0 }
0x1ec9   :  { %v8622_v7 = vadd.f32 %v8611_v12, %v5841_v44 }
0x1eca   :  { %v6954_v33 = vpop.f32.mrf.mxu0 }
0x1ecb   :  { %v5869_v18 = vsel %vm875_vm5, %v8622_v7, -inf }
0x1ecc   :  { %v8592_v45 = vpop.f32.mrf.mxu0  ;;  %v7187_v60 = vpop.eup %7186 }
0x1ecd   :  { %v5591_v0 = vadd.f32 1.0, %v7187_v60  ;;  %v8640_v58 = vadd.f32 %v8611_v12, %v8592_v45 }
0x1ece   :  { %v6957_v14 = vpop.f32.mrf.mxu0 }
0x1ecf   :  { %7188 = vrcp.f32 %v5591_v0  ;;  %v5872_v49 = vsel %vm875_vm5, %v8640_v58, -inf }
0x1edc   :  { %v7189_v36 = vpop.eup %7188 }
0x1edd   :  { %v5605_v55 = vsub.f32 1.0, %v7189_v36  ;;  %v5611_v32 = vmul.f32 %v7189_v36, %v5508_v20 }
0x1f2d   :  { %v5596_v31 = vpop.permute.xlu0 %5595 }
0x1f2e   :  { %v5598_v1 = vmul.f32 %v7189_v36, %v5596_v31 }
0x1f30   :  { %5600 = vrot.lane.b32.xlu1 %v5598_v1, %s7295_s10  ;;  %v8666_v1 = vld [vmem:[%s7475_s6 + $0x8] sm:$0xff] }
0x1f31   :  { %vm6015_vm14 = vcmp.ne.s32.totalorder %v8666_v1, 0 }
0x1fa2   :  { %v5601_v46 = vpop.permute.xlu1 %5600 }
0x1fa3   :  { %v5603_v15 = vadd.f32 %v5601_v46, %v8494_v8  ;;  %v8670_v46 = vld [vmem:[%s7475_s6 + $0x20] sm:$0xff] }
0x1fa4   :  { %vm6018_vm3 = vcmp.ne.s32.totalorder %v8670_v46, 0 }
0x1fa5   :  { %7190 = vtanh.f32 %v5603_v15 }
0x1fb2   :  { %v7191_v38 = vpop.eup %7190 }
0x1fb3   :  { %5607 = vrot.lane.b32.xlu0 %v7191_v38, %s7291_s17 }
0x2025   :  { %v5608_v4 = vpop.permute.xlu0 %5607 }
0x2026   :  { %v5610_v57 = vmul.f32 %v5608_v4, %v5605_v55 }
0x2028   :  { %v5612_v13 = vadd.f32 %v5611_v32, %v5610_v57 }
0x202a   :  { %5614 = vrot.lane.b32.xlu1 %v5612_v13, %s7291_s17 }
0x209c   :  { %v5615_v5 = vpop.permute.xlu1 %5614 }
0x209d   :  { %5618 = vst.msk [vmem:[#allocation2 + $0x28] sm:$0xff] %vm875_vm5, %v5615_v5  ;;  %6937 = vmatmul.mubr.msk.f32.vlgmr.msra.gmra.mxu1 %vm875_vm5, %v5615_v5 }
0x20a4   :  { %v5728_v30 = vld [vmem:[#allocation2 + $0x28] sm:$0xff] }
0x20a5   :  { %6959 = vmatmul.mubr.msk.f32.gmra.mxu0 %vm875_vm5, %v5728_v30 }
0x20a6   :  { %6961 = vmatprep.mubr.msk.f32.mxu0 %vm7287_vm4, %v7286_v26 }
0x215d   :  { %v5687_v8 = vpop.f32.mrf.mxu1 }
0x215e   :  { %v5688_v62 = vadd.f32 %v8499_v48, %v5687_v8 }
0x215f   :  { %v6938_v3 = vpop.f32.mrf.mxu1 }
0x2160   :  { %5699 = vrot.lane.b32.xlu0 %v5688_v62, %s7288_s0  ;;  %v5691_v37 = vadd.f32 %v5688_v62, %v8496_v28  ;;  %s7232_s0 = scalar_lea.vmem %s6102_s16, 32 }
0x2161   :  { %p7234_p2 = scmp.lt.s32.totalorder %s7232_s0, %s7228_s18 }
0x2162   :  { %v6309_v16 = vmul.f32 -1.442695, %v5691_v37 }
0x2163   :  { %p7235_p3 = por %p7234_p2, %p7233_p1 }
0x2164   :  { %7192 = vpow2.f32 %v6309_v16 }
0x2165   :  { %v5851_v47 = vpop.f32.mrf.mxu0  ;;  %p7236_p4 = pnand %p7235_p3, %p7229_p0 }
0x2166   :  { %v8627_v42 = vadd.f32 %v8611_v12, %v5851_v47 }
0x2167   :  { %v6960_v61 = vpop.f32.mrf.mxu0 }
0x2168   :  { %v5875_v20 = vsel %vm875_vm5, %v8627_v42, -inf }
0x2171   :  { %v7193_v11 = vpop.eup %7192 }
0x2172   :  { %v5695_v40 = vadd.f32 1.0, %v7193_v11 }
0x2174   :  { %7194 = vrcp.f32 %v5695_v40 }
0x2181   :  { %v7195_v52 = vpop.eup %7194 }
0x2182   :  { %v5709_v25 = vsub.f32 1.0, %v7195_v52  ;;  %v5715_v2 = vmul.f32 %v7195_v52, %v5612_v13 }
0x21d2   :  { %v5700_v63 = vpop.permute.xlu0 %5699 }
0x21d3   :  { %v5702_v27 = vmul.f32 %v7195_v52, %v5700_v63  ;;  %v8686_v52 = vld [vmem:[%s7475_s6] sm:$0xff]  ;;  %v8690_v63 = vld [vmem:[%s7475_s6 + $0x10] sm:$0xff] }
0x21d4   :  { %vm6014_vm13 = vcmp.ne.s32.totalorder %v8686_v52, 0  ;;  %vm6016_vm0 = vcmp.ne.s32.totalorder %v8690_v63, 0 }
0x21d5   :  { %5704 = vrot.lane.b32.xlu1 %v5702_v27, %s7295_s10  ;;  %v8694_v27 = vld [vmem:[%s7475_s6 + $0x18] sm:$0xff] }
0x21d6   :  { %vm6017_vm2 = vcmp.ne.s32.totalorder %v8694_v27, 0 }
0x2247   :  { %v5705_v51 = vpop.permute.xlu1 %5704 }
0x2248   :  { %v5707_v48 = vadd.f32 %v5705_v51, %v8496_v28  ;;  %v5866_v28 = vsel %vm875_vm5, %v8617_v39, -inf  ;;  %v8698_v51 = vld [vmem:[%s7475_s6 + $0x28] sm:$0xff] }
0x2249   :  { %vm6019_vm6 = vcmp.ne.s32.totalorder %v8698_v51, 0 }
0x224a   :  { %7196 = vtanh.f32 %v5707_v48 }
0x2257   :  { %v7197_v59 = vpop.eup %7196 }
0x2258   :  { %5711 = vrot.lane.b32.xlu0 %v7197_v59, %s7291_s17 }
0x2277   :  { %5861 = vmax.xlane.f32.xlu0 %v5860_v19 }
0x227b   :  { %5867 = vmax.xlane.f32.xlu0 %v5866_v28 }
0x227f   :  { %5870 = vmax.xlane.f32.xlu0 %v5869_v18 }
0x2283   :  { %5876 = vmax.xlane.f32.xlu0 %v5875_v20 }
0x22ca   :  { %v5712_v6 = vpop.permute.xlu0 %5711 }
0x22cb   :  { %v5714_v34 = vmul.f32 %v5712_v6, %v5709_v25 }
0x22cd   :  { %v5716_v53 = vadd.f32 %v5715_v2, %v5714_v34 }
0x22cf   :  { %5718 = vrot.lane.b32.xlu1 %v5716_v53, %s7291_s17 }
0x22f3   :  { %5864 = vmax.xlane.f32.xlu1 %v5863_v35 }
0x22f7   :  { %5873 = vmax.xlane.f32.xlu1 %v5872_v49 }
0x2300   :  { %v8646_v17 = vpop.xlane.xlu0 %5861 }
0x2301   :  { %v5881_v22 = vsub.f32 %v8614_v41, %v8646_v17 }
0x2303   :  { %v5888_v54 = vmul.f32 1.442695, %v5881_v22 }
0x2304   :  { %v8650_v24 = vpop.xlane.xlu0 %5867 }
0x2305   :  { %7198 = vpow2.f32 %v5888_v54  ;;  %v5883_v29 = vsub.f32 %v8617_v39, %v8650_v24 }
0x2307   :  { %v5892_v9 = vmul.f32 1.442695, %v5883_v29 }
0x2308   :  { %v5871_v15 = vpop.xlane.xlu0 %5870 }
0x2309   :  { %7200 = vpow2.f32 %v5892_v9  ;;  %v5884_v55 = vsub.f32 %v8622_v7, %v5871_v15 }
0x230b   :  { %v5894_v57 = vmul.f32 1.442695, %v5884_v55 }
0x230c   :  { %v5877_v32 = vpop.xlane.xlu0 %5876 }
0x230d   :  { %v5886_v13 = vsub.f32 %v8627_v42, %v5877_v32 }
0x230f   :  { %v5898_v5 = vmul.f32 1.442695, %v5886_v13 }
0x2312   :  { %v7199_v50 = vpop.eup %7198 }
0x2313   :  { %v5902_v56 = vsel %vm875_vm5, %v7199_v50, 0.0 }
0x2314   :  { %5903 = vadd.xlane.f32.xlu0 %v5902_v56 }
0x2316   :  { %v7201_v44 = vpop.eup %7200 }
0x2317   :  { %v5908_v33 = vsel %vm875_vm5, %v7201_v44, 0.0 }
0x2318   :  { %5909 = vadd.xlane.f32.xlu0 %v5908_v33 }
0x2341   :  { %v5719_v45 = vpop.permute.xlu1 %5718 }
0x2342   :  { %5722 = vst.msk [vmem:[#allocation2 + $0x30] sm:$0xff] %vm875_vm5, %v5719_v45 }
0x2349   :  { %v5729_v14 = vld [vmem:[#allocation2 + $0x30] sm:$0xff] }
0x234a   :  { %6962 = vmatmul.mubr.msk.f32.gmra.mxu0 %vm875_vm5, %v5729_v14 }
0x237c   :  { %v8658_v21 = vpop.xlane.xlu1 %5864 }
0x237d   :  { %v5882_v38 = vsub.f32 %v8636_v10, %v8658_v21 }
0x237f   :  { %v5890_v4 = vmul.f32 1.442695, %v5882_v38 }
0x2380   :  { %v8660_v43 = vpop.xlane.xlu1 %5873 }
0x2381   :  { %v5885_v60 = vsub.f32 %v8640_v58, %v8660_v43 }
0x2383   :  { %v5896_v0 = vmul.f32 1.442695, %v5885_v60 }
0x2385   :  { %7202 = vpow2.f32 %v5896_v0 }
0x2386   :  { %7204 = vpow2.f32 %v5890_v4 }
0x2387   :  { %7206 = vpow2.f32 %v5894_v57 }
0x2388   :  { %7208 = vpow2.f32 %v5898_v5 }
0x2392   :  { %v7203_v36 = vpop.eup %7202 }
0x2393   :  { %v5914_v31 = vsel %vm875_vm5, %v7203_v36, 0.0  ;;  %v7205_v47 = vpop.eup %7204 }
0x2394   :  { %5915 = vadd.xlane.f32.xlu0 %v5914_v31  ;;  %v5905_v61 = vsel %vm875_vm5, %v7205_v47, 0.0  ;;  %v7207_v37 = vpop.eup %7206 }
0x2395   :  { %v5911_v16 = vsel %vm875_vm5, %v7207_v37, 0.0  ;;  %v7209_v11 = vpop.eup %7208 }
0x2396   :  { %v5917_v40 = vsel %vm875_vm5, %v7209_v11, 0.0 }
0x239d   :  { %v5904_v48 = vpop.xlane.xlu0 %5903 }
0x239e   :  { %7210 = vlog2.f32 %v5904_v48 }
0x23aa   :  { %5962 = vperm.xlu0 %7023, %v8666_v1  }
0x23ab   :  { %v7211_v18 = vpop.eup %7210 }
0x23ac   :  { %v5924_v20 = vmul.f32 0.6931472, %v7211_v18 }
0x23ae   :  { %5971 = vperm.xlu0 %7023, %v8670_v46   ;;  %v5937_v2 = vadd.f32 %v5924_v20, %v8646_v17  ;;  %v6320_v20 = vsel %vm6016_vm0, 1.0, %v7286_v26 }
0x23af   :  { %v6070_v1 = vsel %vm6042_vm15, %v6320_v20, 0.0 }
0x23b0   :  { %v5944_v34 = vsub.f32 %v8614_v41, %v5937_v2  ;;  %v6322_v2 = vsel %vm6018_vm3, 1.0, %v7286_v26 }
0x240a   :  { %v5856_v30 = vpop.f32.mrf.mxu0 }
0x240b   :  { %v8678_v8 = vadd.f32 %v8611_v12, %v5856_v30 }
0x240c   :  { %v6963_v62 = vpop.f32.mrf.mxu0 }
0x240d   :  { %v5878_v3 = vsel %vm875_vm5, %v8678_v8, -inf }
0x240e   :  { %5879 = vmax.xlane.f32.xlu1 %v5878_v3 }
0x2412   :  { %5906 = vadd.xlane.f32.xlu1 %v5905_v61 }
0x2416   :  { %5912 = vadd.xlane.f32.xlu1 %v5911_v16 }
0x241a   :  { %5918 = vadd.xlane.f32.xlu1 %v5917_v40 }
0x242b   :  { %5959 = vperm.xlu1 %7024, %v8686_v52   ;;  %v6321_v52 = vsel %vm6017_vm2, 1.0, %v7286_v26 }
0x242f   :  { %5965 = vperm.xlu1 %7024, %v8690_v63   ;;  %v6074_v63 = vsel %vm6042_vm15, %v6322_v2, 0.0 }
0x2433   :  { %5968 = vperm.xlu1 %7024, %v8694_v27  }
0x2437   :  { %5974 = vperm.xlu1 %7024, %v8698_v51  }
0x2497   :  { %v8701_v59 = vpop.xlane.xlu1 %5879 }
0x2498   :  { %v5887_v12 = vsub.f32 %v8678_v8, %v8701_v59 }
0x249a   :  { %v5900_v19 = vmul.f32 1.442695, %v5887_v12 }
0x249b   :  { %v5907_v28 = vpop.xlane.xlu1 %5906 }
0x249c   :  { %7212 = vpow2.f32 %v5900_v19 }
0x249f   :  { %v5913_v25 = vpop.xlane.xlu1 %5912 }
0x24a0   :  { %7214 = vlog2.f32 %v5913_v25 }
0x24a3   :  { %v5919_v6 = vpop.xlane.xlu1 %5918 }
0x24a4   :  { %7216 = vlog2.f32 %v5919_v6  ;;  %v6072_v6 = vsel %vm6042_vm15, %v6321_v52, 0.0 }
0x24a5   :  { %7218 = vlog2.f32 %v5907_v28 }
0x24a7   :  { %v5960_v53 = vpop.permute.xlu1 %5959 }
0x24a8   :  { %vm5979_vm1 = vcmp.eq.s32.totalorder %v7504_v23, %v5960_v53 }
0x24a9   :  { %v7213_v35 = vpop.eup %7212  ;;  %v5986_v49 = vsel %vm5979_vm1, %v5944_v34, 0.0 }
0x24aa   :  { %v5920_v22 = vsel %vm875_vm5, %v7213_v35, 0.0  ;;  %v5993_v54 = vsel %vm875_vm5, %v5986_v49, 0.0  ;;  %v6323_v35 = vsel %vm6019_vm6, 1.0, %v7286_v26 }
0x24ab   :  { %5921 = vadd.xlane.f32.xlu0 %v5920_v22  ;;  %5994 = vadd.xlane.f32.xlu1 %v5993_v54  ;;  %v5966_v29 = vpop.permute.xlu1 %5965  ;;  %v6076_v22 = vsel %vm6042_vm15, %v6323_v35, 0.0 }
0x24ac   :  { %vm5981_vm11 = vcmp.eq.s32.totalorder %v7504_v23, %v5966_v29 }
0x24ad   :  { %v7215_v9 = vpop.eup %7214 }
0x24ae   :  { %v5930_v50 = vmul.f32 0.6931472, %v7215_v9 }
0x24af   :  { %v5969_v56 = vpop.permute.xlu1 %5968 }
0x24b0   :  { %v5940_v17 = vadd.f32 %v5930_v50, %v5871_v15  ;;  %vm5982_vm4 = vcmp.eq.s32.totalorder %v7504_v23, %v5969_v56  ;;  %v8717_v15 = vld [vmem:[%s7475_s6 + $0x30] sm:$0xff] }
0x24b1   :  { %v7217_v44 = vpop.eup %7216  ;;  %vm6020_vm7 = vcmp.ne.s32.totalorder %v8717_v15, 0 }
0x24b2   :  { %v5934_v33 = vmul.f32 0.6931472, %v7217_v44  ;;  %v5947_v41 = vsub.f32 %v8622_v7, %v5940_v17  ;;  %v5910_v7 = vpop.xlane.xlu0 %5909  ;;  %v7219_v4 = vpop.eup %7218  ;;  %v6324_v46 = vsel %vm6020_vm7, 1.0, %v7286_v26 }
0x24b3   :  { %v5975_v60 = vpop.permute.xlu1 %5974  ;;  %7220 = vlog2.f32 %v5910_v7  ;;  %v6078_v51 = vsel %vm6042_vm15, %v6324_v46, 0.0 }
0x24b4   :  { %v5989_v45 = vsel %vm5982_vm4, %v5947_v41, 0.0  ;;  %v5942_v14 = vadd.f32 %v5934_v33, %v5877_v32  ;;  %vm5984_vm9 = vcmp.eq.s32.totalorder %v7504_v23, %v5975_v60  ;;  %v5926_v32 = vmul.f32 0.6931472, %v7219_v4 }
0x24b5   :  { %v6002_v0 = vsel %vm875_vm5, %v5989_v45, 0.0 }
0x24b6   :  { %v5949_v36 = vsub.f32 %v8627_v42, %v5942_v14  ;;  %6003 = vadd.xlane.f32.xlu1 %v6002_v0  ;;  %v5916_v55 = vpop.xlane.xlu0 %5915  ;;  %v5938_v42 = vadd.f32 %v5926_v32, %v8658_v21 }
0x24b7   :  { %7222 = vlog2.f32 %v5916_v55 }
0x24b8   :  { %v5991_v31 = vsel %vm5984_vm9, %v5949_v36, 0.0  ;;  %v5945_v3 = vsub.f32 %v8636_v10, %v5938_v42 }
0x24b9   :  { %v6008_v38 = vsel %vm875_vm5, %v5991_v31, 0.0 }
0x24ba   :  { %6009 = vadd.xlane.f32.xlu1 %v6008_v38  ;;  %v5963_v62 = vpop.permute.xlu0 %5962 }
0x24bb   :  { %vm5980_vm10 = vcmp.eq.s32.totalorder %v7504_v23, %v5963_v62 }
0x24bc   :  { %v5987_v37 = vsel %vm5980_vm10, %v5945_v3, 0.0 }
0x24bd   :  { %v5996_v11 = vsel %vm875_vm5, %v5987_v37, 0.0 }
0x24be   :  { %v5972_v40 = vpop.permute.xlu0 %5971 }
0x24bf   :  { %vm5983_vm12 = vcmp.eq.s32.totalorder %v7504_v23, %v5972_v40 }
0x24c0   :  { %v7221_v57 = vpop.eup %7220 }
0x24c1   :  { %5977 = vperm.xlu0 %7023, %v8717_v15   ;;  %v5928_v5 = vmul.f32 0.6931472, %v7221_v57 }
0x24c3   :  { %v5939_v47 = vadd.f32 %v5928_v5, %v8650_v24 }
0x24c4   :  { %v7223_v13 = vpop.eup %7222 }
0x24c5   :  { %v5932_v30 = vmul.f32 0.6931472, %v7223_v13  ;;  %v5946_v16 = vsub.f32 %v8617_v39, %v5939_v47  ;;  %v6318_v39 = vsel %vm6014_vm13, 1.0, %v7286_v26 }
0x24c6   :  { %v6067_v19 = vsel %vm6042_vm15, %v6318_v39, 0.0 }
0x24c7   :  { %v5941_v61 = vadd.f32 %v5932_v30, %v8660_v43  ;;  %v5988_v48 = vsel %vm5981_vm11, %v5946_v16, 0.0 }
0x24c8   :  { %v5999_v10 = vsel %vm875_vm5, %v5988_v48, 0.0 }
0x24c9   :  { %v5948_v21 = vsub.f32 %v8640_v58, %v5941_v61  ;;  %v6319_v58 = vsel %vm6015_vm14, 1.0, %v7286_v26 }
0x24ca   :  { %v6068_v28 = vsel %vm6042_vm15, %v6319_v58, 0.0 }
0x24cb   :  { %v5990_v24 = vsel %vm5983_vm12, %v5948_v21, 0.0  ;;  %v6069_v18 = vadd.f32 %v6068_v28, %v6067_v19 }
0x24cc   :  { %v6005_v43 = vsel %vm875_vm5, %v5990_v24, 0.0 }
0x24cd   :  { %v6071_v25 = vadd.f32 %v6070_v1, %v6069_v18 }
0x24cf   :  { %v6073_v34 = vadd.f32 %v6072_v6, %v6071_v25 }
0x24d1   :  { %v6075_v49 = vadd.f32 %v6074_v63, %v6073_v34 }
0x24d3   :  { %v6077_v50 = vadd.f32 %v6076_v22, %v6075_v49 }
0x24d5   :  { %v6079_v44 = vadd.f32 %v6078_v51, %v6077_v50 }
0x24e0   :  { %5997 = vadd.xlane.f32.xlu0 %v5996_v11 }
0x24e4   :  { %6000 = vadd.xlane.f32.xlu0 %v5999_v10 }
0x24e8   :  { %6006 = vadd.xlane.f32.xlu0 %v6005_v43 }
0x2534   :  { %v5922_v12 = vpop.xlane.xlu0 %5921  ;;  %v5995_v41 = vpop.xlane.xlu1 %5994 }
0x2535   :  { %7224 = vlog2.f32 %v5922_v12  ;;  %v6035_v14 = vmul.f32 %v6318_v39, %v5995_v41 }
0x2537   :  { %v6043_v0 = vsel %vm6042_vm15, %v6035_v14, 0.0 }
0x253c   :  { %v5978_v29 = vpop.permute.xlu0 %5977 }
0x253d   :  { %vm5985_vm8 = vcmp.eq.s32.totalorder %v7504_v23, %v5978_v29 }
0x2542   :  { %v7225_v53 = vpop.eup %7224 }
0x2543   :  { %v5936_v27 = vmul.f32 0.6931472, %v7225_v53 }
0x2545   :  { %v5943_v54 = vadd.f32 %v5936_v27, %v8701_v59 }
0x2547   :  { %v5950_v9 = vsub.f32 %v8678_v8, %v5943_v54  ;;  %v6004_v8 = vpop.xlane.xlu1 %6003 }
0x2548   :  { %v6038_v38 = vmul.f32 %v6321_v52, %v6004_v8 }
0x2549   :  { %v5992_v56 = vsel %vm5985_vm8, %v5950_v9, 0.0 }
0x254a   :  { %v6011_v17 = vsel %vm875_vm5, %v5992_v56, 0.0  ;;  %v6048_v55 = vsel %vm6042_vm15, %v6038_v38, 0.0  ;;  %vm6093_vm5 = vcmask 0  }
0x254b   :  { %6012 = vadd.xlane.f32.xlu0 %v6011_v17  ;;  %v6010_v4 = vpop.xlane.xlu1 %6009 }
0x254c   :  { %v6040_v42 = vmul.f32 %v6323_v35, %v6010_v4 }
0x254e   :  { %v6052_v30 = vsel %vm6042_vm15, %v6040_v42, 0.0 }
0x254f   :  { %6080 = vadd.xlane.f32.xlu0 %v6079_v44 }
0x2569   :  { %v5998_v33 = vpop.xlane.xlu0 %5997 }
0x256a   :  { %v6036_v59 = vmul.f32 %v6319_v58, %v5998_v33 }
0x256c   :  { %v6044_v26 = vsel %vm6042_vm15, %v6036_v59, 0.0 }
0x256d   :  { %v6001_v45 = vpop.xlane.xlu0 %6000  ;;  %v6045_v36 = vadd.f32 %v6044_v26, %v6043_v0 }
0x256e   :  { %v6037_v60 = vmul.f32 %v6320_v20, %v6001_v45 }
0x2570   :  { %v6046_v23 = vsel %vm6042_vm15, %v6037_v60, 0.0 }
0x2571   :  { %v6007_v31 = vpop.xlane.xlu0 %6006  ;;  %v6047_v15 = vadd.f32 %v6046_v23, %v6045_v36 }
0x2572   :  { %v6039_v7 = vmul.f32 %v6322_v2, %v6007_v31 }
0x2573   :  { %v6049_v32 = vadd.f32 %v6048_v55, %v6047_v15 }
0x2574   :  { %v6050_v57 = vsel %vm6042_vm15, %v6039_v7, 0.0 }
0x2575   :  { %v6051_v13 = vadd.f32 %v6050_v57, %v6049_v32 }
0x2577   :  { %v6053_v3 = vadd.f32 %v6052_v30, %v6051_v13 }
0x25d4   :  { %v6013_v5 = vpop.xlane.xlu0 %6012 }
0x25d5   :  { %v6041_v62 = vmul.f32 %v6324_v46, %v6013_v5 }
0x25d7   :  { %v6054_v47 = vsel %vm6042_vm15, %v6041_v62, 0.0 }
0x25d8   :  { %v6055_v61 = vadd.f32 %v6054_v47, %v6053_v3  ;;  %v6081_v37 = vpop.xlane.xlu0 %6080 }
0x25d9   :  { %v6082_v16 = vrot.slane %v6081_v37, 4 }
0x25da   :  { %6056 = vadd.xlane.f32.xlu1 %v6055_v61 }
0x25db   :  { %v6083_v11 = vadd.f32 %v6082_v16, %v6081_v37 }
0x25dd   :  { %v6084_v21 = vrot.slane %v6083_v11, 2 }
0x25df   :  { %v6085_v24 = vadd.f32 %v6084_v21, %v6083_v11 }
0x25e1   :  { %v6086_v58 = vrot.slane %v6085_v24, 1 }
0x25e3   :  { %v6087_v28 = vadd.f32 %v6086_v58, %v6085_v24 }
0x2663   :  { %v6057_v40 = vpop.xlane.xlu1 %6056 }
0x2664   :  { %v6058_v48 = vrot.slane %v6057_v40, 4 }
0x2666   :  { %v6059_v10 = vadd.f32 %v6058_v48, %v6057_v40 }
0x2668   :  { %v6060_v43 = vrot.slane %v6059_v10, 2 }
0x266a   :  { %v6061_v39 = vadd.f32 %v6060_v43, %v6059_v10 }
0x266c   :  { %v6062_v12 = vrot.slane %v6061_v39, 1 }
0x266e   :  { %v6063_v19 = vadd.f32 %v6062_v12, %v6061_v39 }
0x2670   :  { %6972 = vpush %v6063_v19 }
0x2671   :  { %6974 = vpush %v6087_v28 }
0x26a1   :  { %s6973_s6 = spop %6972 }
0x26a2   :  { %s6975_s27 = spop %6974  ;;  %v6065_v1 = vstv %s6973_s6 }
0x26a3   :  { %v6089_v18 = vstv %s6975_s27  ;;  %v6066_v52 = vsub.f32 0.0, %v6065_v1 }
0x26a4   :  { %v6090_v20 = vmax.f32 %v6089_v18, 1.0 }
0x26a6   :  { %7226 = vrcp.f32 %v6090_v20 }
0x26b3   :  { %v7227_v25 = vpop.eup %7226 }
0x26b4   :  { %v6092_v6 = vmul.f32 %v7227_v25, %v6066_v52 }
0x26b6   :  { %6094 = vst.msk [vmem:[#allocation3] sm:$0x1] %vm6093_vm5, %v6092_v6 }
0x26b7   :  { %7239 = shalt.err (!%p7236_p4)
}
0x26b8   :  { %6104 = dma.vmem_to_hbm [thread:$0]  %s6102_s16, 16, %s7480_s20, [#allocation4]  }
0x26b9   :  { %7248 = dma.done.wait [#allocation4], 16  }
0x26ba   :  { %7249 = vsyncadd [#allocation4], 4294967280 }
0x26bb   :  { %6108 = vsyncpa [#allocation4], 1 }

</bundles_post_ra>
